<compile_context>
chip_gen: v7x
topology: tpu7x:2x2x1
jax: 0.10.0
libtpu: 0.0.40
codegen_flags: <defaults>
</compile_context>

<pallas_src>
import jax
import jax.numpy as jnp
from jax.experimental import pallas as pl
from jax.experimental.pallas import tpu as pltpu


def _softplus(v):
    # numerically stable softplus, matches torch.nn.functional.softplus
    return jnp.maximum(v, 0.0) + jnp.log1p(jnp.exp(-jnp.abs(v)))


def _mi_kernel(x1_ref, x2_ref, w1_ref, b1_ref, w2_ref, b2_ref, w3_ref, b3_ref,
               out_jsd_ref, out_nwj_ref):
    """Fused MI-estimator forward for both branches in one MLP pass."""
    B, s1 = x1_ref.shape

    x1 = x1_ref[...].astype(jnp.bfloat16)          # (B, s1)
    x2 = x2_ref[...].astype(jnp.bfloat16)          # (B, s2)

    # ---- layer 1 (split-K, shared x2 contribution across branches) ----------
    a = jnp.dot(x1, w1_ref[:s1, :], preferred_element_type=jnp.float32)   # (B, H)
    c = jnp.dot(x2, w1_ref[s1:, :], preferred_element_type=jnp.float32)   # (B, H)
    # roll(x1, 1, 0) @ w1_top == roll(x1 @ w1_top, 1, 0): cheap XLU sublane roll
    a_roll = pltpu.roll(a, shift=1, axis=0)                                # (B, H)

    shared = c + b1_ref[...]                                               # (B, H)
    h_pos = jnp.maximum(a + shared, 0.0)
    h_neg = jnp.maximum(a_roll + shared, 0.0)
    h = jnp.concatenate([h_pos, h_neg], axis=0).astype(jnp.bfloat16)       # (2B, H)

    # ---- layer 2 (single stacked pass for both branches) --------------------
    h2 = jnp.dot(h, w2_ref[...], preferred_element_type=jnp.float32) + b2_ref[...]
    h2 = jnp.maximum(h2, 0.0)                                              # (2B, H)

    # ---- layer 3 (N=1): VPU multiply + lane reduce instead of a 1-lane matmul
    w3 = w3_ref[...].astype(jnp.float32)                                   # (1, H)
    o = jnp.sum(h2 * w3, axis=1, keepdims=True) + b3_ref[...]              # (2B, 1)

    pos = o[:B]                                                            # (B, 1)
    neg = o[B:]                                                            # (B, 1)

    out_jsd_ref[...] = (-jnp.mean(_softplus(-pos), axis=0, keepdims=True)
                        - jnp.mean(_softplus(neg), axis=0, keepdims=True))
    out_nwj_ref[...] = (jnp.mean(pos, axis=0, keepdims=True)
                        - jnp.mean(jnp.exp(neg), axis=0, keepdims=True) + 1.0)


def mi_estimator_forward(x1, x2, params):
    """Pallas-backed equivalent of MIEstimator.forward(x1, x2)."""
    w1, b1, w2, b2, w3, b3 = params
    B, s1 = x1.shape
    s2 = x2.shape[1]
    H = w2.shape[1]

    args = (x1, x2, w1, b1, w2, b2, w3, b3)
    bytes_accessed = sum(int(a.size) * a.dtype.itemsize for a in args) + 2 * 4
    flops = 2 * B * ((s1 + s2) * H) + 2 * (2 * B) * (H * H + H)
    cost = pl.CostEstimate(flops=int(flops),
                           transcendentals=int(5 * B),
                           bytes_accessed=int(bytes_accessed))

    out_jsd, out_nwj = pl.pallas_call(
        _mi_kernel,
        out_shape=(jax.ShapeDtypeStruct((1, 1), jnp.float32),
                   jax.ShapeDtypeStruct((1, 1), jnp.float32)),
        in_specs=[pl.BlockSpec(memory_space=pltpu.MemorySpace.VMEM)] * 8,
        out_specs=(pl.BlockSpec(memory_space=pltpu.MemorySpace.VMEM),
                   pl.BlockSpec(memory_space=pltpu.MemorySpace.VMEM)),
        cost_estimate=cost,
    )(*args)

    return out_jsd[0, 0], out_nwj[0, 0]


def init_params(key, size1, size2, hidden=1024):
    d_in = size1 + size2
    k1, k2, k3, k4, k5, k6 = jax.random.split(key, 6)
    s1 = 1.0 / jnp.sqrt(d_in)
    s2 = 1.0 / jnp.sqrt(hidden)
    # bf16 weights (halves HBM traffic); f32 biases; f32 accumulation in-kernel.
    w1 = (jax.random.normal(k1, (d_in, hidden), jnp.float32) * s1).astype(jnp.bfloat16)
    b1 = jax.random.uniform(k4, (1, hidden), jnp.float32, -s1, s1)
    w2 = (jax.random.normal(k2, (hidden, hidden), jnp.float32) * s2).astype(jnp.bfloat16)
    b2 = jax.random.uniform(k5, (1, hidden), jnp.float32, -s2, s2)
    # w3 kept in PyTorch (out, in) = (1, hidden) layout -> no transpose needed.
    w3 = (jax.random.normal(k3, (1, hidden), jnp.float32) * s2).astype(jnp.bfloat16)
    b3 = jax.random.uniform(k6, (1, 1), jnp.float32, -s2, s2)
    return (w1, b1, w2, b2, w3, b3)


def _reference_forward(x1, x2, params):
    """Pure-JAX reference mirroring the PyTorch forward (same bf16 weights)."""
    w1, b1, w2, b2, w3, b3 = params
    w3f = w3.astype(jnp.float32)

    def net(x):
        h = jnp.maximum(
            jnp.dot(x.astype(jnp.bfloat16), w1, preferred_element_type=jnp.float32) + b1,
            0.0)
        h = jnp.maximum(
            jnp.dot(h.astype(jnp.bfloat16), w2, preferred_element_type=jnp.float32) + b2,
            0.0)
        return jnp.sum(h * w3f, axis=1, keepdims=True) + b3

    pos = net(jnp.concatenate([x1, x2], axis=1))
    neg = net(jnp.concatenate([jnp.roll(x1, 1, axis=0), x2], axis=1))
    t1 = -jnp.mean(jax.nn.softplus(-pos)) - jnp.mean(jax.nn.softplus(neg))
    t2 = jnp.mean(pos) - jnp.mean(jnp.exp(neg)) + 1.0
    return t1, t2


if __name__ == "__main__":
    key = jax.random.PRNGKey(0)
    k_x1, k_x2, k_p = jax.random.split(key, 3)

    batch, size1, size2 = 8, 32, 32
    x1 = jax.random.normal(k_x1, (batch, size1), jnp.float32)
    x2 = jax.random.normal(k_x2, (batch, size2), jnp.float32)
    params = init_params(k_p, size1, size2)

    mi_jsd, mi_nwj = mi_estimator_forward(x1, x2, params)
    mi_jsd, mi_nwj = jax.block_until_ready((mi_jsd, mi_nwj))

    ref_jsd, ref_nwj = _reference_forward(x1, x2, params)
    assert jnp.allclose(mi_jsd, ref_jsd, rtol=5e-3, atol=5e-3), (mi_jsd, ref_jsd)
    assert jnp.allclose(mi_nwj, ref_nwj, rtol=5e-3, atol=5e-3), (mi_nwj, ref_nwj)

    print("KERNEL_OK")
</pallas_src>

<mosaic_0001>
module attributes {stable_mosaic.version = 11 : i64} {
  func.func @_mi_kernel(%arg0: memref<8x32xf32, #tpu.memory_space<vmem>>, %arg1: memref<8x32xf32, #tpu.memory_space<vmem>>, %arg2: memref<64x1024xbf16, #tpu.memory_space<vmem>>, %arg3: memref<1x1024xf32, #tpu.memory_space<vmem>>, %arg4: memref<1024x1024xbf16, #tpu.memory_space<vmem>>, %arg5: memref<1x1024xf32, #tpu.memory_space<vmem>>, %arg6: memref<1x1024xbf16, #tpu.memory_space<vmem>>, %arg7: memref<1x1xf32, #tpu.memory_space<vmem>>, %arg8: memref<1x1xf32, #tpu.memory_space<vmem>>, %arg9: memref<1x1xf32, #tpu.memory_space<vmem>>) attributes {dimension_semantics = [], scalar_prefetch = 0 : i64, scratch_operands = 0 : i64, tpu.core_type = #tpu.core_type<tc>} {
    %c0 = arith.constant 0 : index
    %c0_0 = arith.constant 0 : index
    %0 = vector.load %arg0[%c0, %c0_0] : memref<8x32xf32, #tpu.memory_space<vmem>>, vector<8x32xf32>
    %1 = arith.truncf %0 : vector<8x32xf32> to vector<8x32xbf16>
    %c0_1 = arith.constant 0 : index
    %c0_2 = arith.constant 0 : index
    %2 = vector.load %arg1[%c0_1, %c0_2] : memref<8x32xf32, #tpu.memory_space<vmem>>, vector<8x32xf32>
    %3 = arith.truncf %2 : vector<8x32xf32> to vector<8x32xbf16>
    %c0_3 = arith.constant 0 : index
    %c0_4 = arith.constant 0 : index
    %4 = vector.load %arg2[%c0_3, %c0_4] : memref<64x1024xbf16, #tpu.memory_space<vmem>>, vector<32x1024xbf16>
    %cst = arith.constant dense<0.000000e+00> : vector<8x1024xf32>
    %5 = tpu.matmul %1, %4, %cst {dimension_numbers = #tpu.dot_dimension_numbers<[1], [0], [0], [1], [0, 0, 1, 1], [], []>} : vector<8x32xbf16>, vector<32x1024xbf16>, vector<8x1024xf32> -> vector<8x1024xf32>
    %c32 = arith.constant 32 : index
    %c0_5 = arith.constant 0 : index
    %6 = vector.load %arg2[%c32, %c0_5] : memref<64x1024xbf16, #tpu.memory_space<vmem>>, vector<32x1024xbf16>
    %cst_6 = arith.constant dense<0.000000e+00> : vector<8x1024xf32>
    %7 = tpu.matmul %3, %6, %cst_6 {dimension_numbers = #tpu.dot_dimension_numbers<[1], [0], [0], [1], [0, 0, 1, 1], [], []>} : vector<8x32xbf16>, vector<32x1024xbf16>, vector<8x1024xf32> -> vector<8x1024xf32>
    %c1_i32 = arith.constant 1 : i32
    %8 = tpu.dynamic_rotate %5 by %c1_i32 dim 0 : vector<8x1024xf32>, i32 -> vector<8x1024xf32>
    %c0_7 = arith.constant 0 : index
    %c0_8 = arith.constant 0 : index
    %9 = vector.load %arg3[%c0_7, %c0_8] : memref<1x1024xf32, #tpu.memory_space<vmem>>, vector<1x1024xf32>
    %10 = vector.broadcast %9 : vector<1x1024xf32> to vector<8x1024xf32>
    %11 = arith.addf %7, %10 : vector<8x1024xf32>
    %12 = arith.addf %5, %11 : vector<8x1024xf32>
    %cst_9 = arith.constant 0.000000e+00 : f32
    %13 = vector.broadcast %cst_9 : f32 to vector<8x1024xf32>
    %14 = arith.maximumf %12, %13 : vector<8x1024xf32>
    %15 = arith.addf %8, %11 : vector<8x1024xf32>
    %cst_10 = arith.constant 0.000000e+00 : f32
    %16 = vector.broadcast %cst_10 : f32 to vector<8x1024xf32>
    %17 = arith.maximumf %15, %16 : vector<8x1024xf32>
    %18 = tpu.concatenate %14, %17 in 0 : vector<8x1024xf32>, vector<8x1024xf32> -> vector<16x1024xf32>
    %19 = arith.truncf %18 : vector<16x1024xf32> to vector<16x1024xbf16>
    %c0_11 = arith.constant 0 : index
    %c0_12 = arith.constant 0 : index
    %20 = vector.load %arg4[%c0_11, %c0_12] : memref<1024x1024xbf16, #tpu.memory_space<vmem>>, vector<1024x1024xbf16>
    %cst_13 = arith.constant dense<0.000000e+00> : vector<16x1024xf32>
    %21 = tpu.matmul %19, %20, %cst_13 {dimension_numbers = #tpu.dot_dimension_numbers<[1], [0], [0], [1], [0, 0, 1, 1], [], []>} : vector<16x1024xbf16>, vector<1024x1024xbf16>, vector<16x1024xf32> -> vector<16x1024xf32>
    %c0_14 = arith.constant 0 : index
    %c0_15 = arith.constant 0 : index
    %22 = vector.load %arg5[%c0_14, %c0_15] : memref<1x1024xf32, #tpu.memory_space<vmem>>, vector<1x1024xf32>
    %23 = vector.broadcast %22 : vector<1x1024xf32> to vector<16x1024xf32>
    %24 = arith.addf %21, %23 : vector<16x1024xf32>
    %cst_16 = arith.constant 0.000000e+00 : f32
    %25 = vector.broadcast %cst_16 : f32 to vector<16x1024xf32>
    %26 = arith.maximumf %24, %25 : vector<16x1024xf32>
    %c0_17 = arith.constant 0 : index
    %c0_18 = arith.constant 0 : index
    %27 = vector.load %arg6[%c0_17, %c0_18] : memref<1x1024xbf16, #tpu.memory_space<vmem>>, vector<1x1024xbf16>
    %28 = arith.extf %27 : vector<1x1024xbf16> to vector<1x1024xf32>
    %29 = vector.broadcast %28 : vector<1x1024xf32> to vector<16x1024xf32>
    %30 = arith.mulf %26, %29 : vector<16x1024xf32>
    %cst_19 = arith.constant dense<0.000000e+00> : vector<16xf32>
    %31 = vector.multi_reduction <add>, %30, %cst_19 [1] : vector<16x1024xf32> to vector<16xf32>
    %32 = vector.shape_cast %31 : vector<16xf32> to vector<16x1xf32>
    %c0_20 = arith.constant 0 : index
    %c0_21 = arith.constant 0 : index
    %33 = vector.load %arg7[%c0_20, %c0_21] : memref<1x1xf32, #tpu.memory_space<vmem>>, vector<1x1xf32>
    %34 = vector.broadcast %33 : vector<1x1xf32> to vector<16x1xf32>
    %35 = arith.addf %32, %34 : vector<16x1xf32>
    %36 = vector.extract_strided_slice %35 {offsets = [0, 0], sizes = [8, 1], strides = [1, 1]} : vector<16x1xf32> to vector<8x1xf32>
    %37 = vector.extract_strided_slice %35 {offsets = [8, 0], sizes = [8, 1], strides = [1, 1]} : vector<16x1xf32> to vector<8x1xf32>
    %cst_22 = arith.constant 0.000000e+00 : f32
    %38 = vector.broadcast %cst_22 : f32 to vector<8x1xf32>
    %39 = arith.subf %38, %36 : vector<8x1xf32>
    %cst_23 = arith.constant 0.000000e+00 : f32
    %40 = vector.broadcast %cst_23 : f32 to vector<8x1xf32>
    %41 = arith.maximumf %39, %40 : vector<8x1xf32>
    %42 = math.absf %39 : vector<8x1xf32>
    %cst_24 = arith.constant 0.000000e+00 : f32
    %43 = vector.broadcast %cst_24 : f32 to vector<8x1xf32>
    %44 = arith.subf %43, %42 : vector<8x1xf32>
    %45 = math.exp %44 : vector<8x1xf32>
    %46 = math.log1p %45 : vector<8x1xf32>
    %47 = arith.addf %41, %46 : vector<8x1xf32>
    %cst_25 = arith.constant dense<0.000000e+00> : vector<1xf32>
    %48 = vector.multi_reduction <add>, %47, %cst_25 [0] : vector<8x1xf32> to vector<1xf32>
    %49 = vector.shape_cast %48 : vector<1xf32> to vector<1x1xf32>
    %cst_26 = arith.constant 8.000000e+00 : f32
    %50 = vector.broadcast %cst_26 : f32 to vector<1x1xf32>
    %51 = arith.divf %49, %50 : vector<1x1xf32>
    %cst_27 = arith.constant 0.000000e+00 : f32
    %52 = vector.broadcast %cst_27 : f32 to vector<1x1xf32>
    %53 = arith.subf %52, %51 : vector<1x1xf32>
    %cst_28 = arith.constant 0.000000e+00 : f32
    %54 = vector.broadcast %cst_28 : f32 to vector<8x1xf32>
    %55 = arith.maximumf %37, %54 : vector<8x1xf32>
    %56 = math.absf %37 : vector<8x1xf32>
    %cst_29 = arith.constant 0.000000e+00 : f32
    %57 = vector.broadcast %cst_29 : f32 to vector<8x1xf32>
    %58 = arith.subf %57, %56 : vector<8x1xf32>
    %59 = math.exp %58 : vector<8x1xf32>
    %60 = math.log1p %59 : vector<8x1xf32>
    %61 = arith.addf %55, %60 : vector<8x1xf32>
    %cst_30 = arith.constant dense<0.000000e+00> : vector<1xf32>
    %62 = vector.multi_reduction <add>, %61, %cst_30 [0] : vector<8x1xf32> to vector<1xf32>
    %63 = vector.shape_cast %62 : vector<1xf32> to vector<1x1xf32>
    %cst_31 = arith.constant 8.000000e+00 : f32
    %64 = vector.broadcast %cst_31 : f32 to vector<1x1xf32>
    %65 = arith.divf %63, %64 : vector<1x1xf32>
    %66 = arith.subf %53, %65 : vector<1x1xf32>
    %c0_32 = arith.constant 0 : index
    %c0_33 = arith.constant 0 : index
    %67 = vector.load %arg8[%c0_32, %c0_33] : memref<1x1xf32, #tpu.memory_space<vmem>>, vector<1x1xf32>
    tpu.vector_store %arg8[%c0_32, %c0_33], %66 {strides = array<i32>} : memref<1x1xf32, #tpu.memory_space<vmem>>, vector<1x1xf32>,
    %cst_34 = arith.constant dense<0.000000e+00> : vector<1xf32>
    %68 = vector.multi_reduction <add>, %36, %cst_34 [0] : vector<8x1xf32> to vector<1xf32>
    %69 = vector.shape_cast %68 : vector<1xf32> to vector<1x1xf32>
    %cst_35 = arith.constant 8.000000e+00 : f32
    %70 = vector.broadcast %cst_35 : f32 to vector<1x1xf32>
    %71 = arith.divf %69, %70 : vector<1x1xf32>
    %72 = math.exp %37 : vector<8x1xf32>
    %cst_36 = arith.constant dense<0.000000e+00> : vector<1xf32>
    %73 = vector.multi_reduction <add>, %72, %cst_36 [0] : vector<8x1xf32> to vector<1xf32>
    %74 = vector.shape_cast %73 : vector<1xf32> to vector<1x1xf32>
    %cst_37 = arith.constant 8.000000e+00 : f32
    %75 = vector.broadcast %cst_37 : f32 to vector<1x1xf32>
    %76 = arith.divf %74, %75 : vector<1x1xf32>
    %77 = arith.subf %71, %76 : vector<1x1xf32>
    %cst_38 = arith.constant 1.000000e+00 : f32
    %78 = vector.broadcast %cst_38 : f32 to vector<1x1xf32>
    %79 = arith.addf %77, %78 : vector<1x1xf32>
    %c0_39 = arith.constant 0 : index
    %c0_40 = arith.constant 0 : index
    %80 = vector.load %arg9[%c0_39, %c0_40] : memref<1x1xf32, #tpu.memory_space<vmem>>, vector<1x1xf32>
    tpu.vector_store %arg9[%c0_39, %c0_40], %79 {strides = array<i32>} : memref<1x1xf32, #tpu.memory_space<vmem>>, vector<1x1xf32>,
    return
  }
}

</mosaic_0001>

<bundles_post_ra>
// kernel: tpu_custom_call.1
= control target key start
LH: loop header
LB: loop body
LE: loop exit
PB: predicated region body
PF: predicated region fallthrough
CT: control target
= control target key end

     0   :  { %s6079_s0 = inlined_call_operand.hbm [shape: f32[8,32], index: 0, kind: input, shape index: {}]   ;;  %s6080_s1 = inlined_call_operand.hbm [shape: f32[8,32], index: 1, kind: input, shape index: {}]   ;;  %s6081_s2 = inlined_call_operand.hbm [shape: bf16[64,1024], index: 2, kind: input, shape index: {}]   ;;  %s6082_s3 = inlined_call_operand.hbm [shape: f32[1,1024], index: 3, kind: input, shape index: {}]   ;;  %s6083_s4 = inlined_call_operand.hbm [shape: bf16[1024,1024], index: 4, kind: input, shape index: {}]   ;;  %s6084_s5 = inlined_call_operand.hbm [shape: f32[1,1024], index: 5, kind: input, shape index: {}]   ;;  %s6085_s6 = inlined_call_operand.hbm [shape: bf16[1,1024], index: 6, kind: input, shape index: {}]   ;;  %s6086_s7 = inlined_call_operand.<no memory space> [shape: f32[1,1], index: 7, kind: input, shape index: {}]   ;;  %s6087_s8 = inlined_call_operand.hbm [shape: f32[1,1], index: 8, kind: output, shape index: {0}]   ;;  %s6088_s9 = inlined_call_operand.hbm [shape: f32[1,1], index: 9, kind: output, shape index: {1}]  }
   0x1   :  { %v15_v0 = vstv %s6086_s7 }
   0x2   :  { %16 = vst [vmem:[#allocation2] sm:$0x1] %v15_v0 }
   0x3   :  { %17 = vsyncpa [#allocation4], 0 }
   0x4   :  { %18 = vsyncpa [#allocation7], 0 }
   0x5   :  { %19 = vsyncpa [#allocation10], 0 }
   0x6   :  { %20 = vsyncpa [#allocation13], 0 }
   0x7   :  { %21 = vsyncpa [#allocation5], 0 }
   0x8   :  { %22 = vsyncpa [#allocation17], 0  ;;  %s5635_s11 = smov [#allocation6]   ;;  %s5636_s13 = smov [#allocation9]  }
   0x9   :  { %s39_s12 = sshll.u32 %s5635_s11, 4  ;;  %s61_s14 = sshll.u32 %s5636_s13, 4  ;;  %s40_s12 = int_to_ptr.vmem [resolvable:$true] %s39_s12  ;;  %s62_s14 = int_to_ptr.vmem [resolvable:$true] %s61_s14 }
   0xa   :  { %s5425_s17 = scalar_lea.hbm %s6080_s1, 128 }
   0xb   :  { %p5426_p0 = scmp.ne.s32.totalorder %s6080_s1, %s5425_s17  ;;  %p5429_p1 = scmp.lt.u32.totalorder %s5425_s17, %s6080_s1 }
   0xd   :  { %p5431_p2 = pnand %p5429_p1, %p5426_p0 }
   0xf   :  { %5434 = shalt.err (!%p5431_p2)
}
  0x10   :  { %s5435_s21 = scalar_lea.vmem %s40_s12, 128  ;;  %p5440_p4 = scmp.lt.s32.totalorder %s40_s12, %s40_s12 }
  0x11   :  { %p5436_p3 = scmp.ne.s32.totalorder %s40_s12, %s5435_s21  ;;  %p5441_p5 = scmp.lt.s32.totalorder %s5435_s21, %s5435_s21 }
  0x13   :  { %p5442_p6 = por %p5441_p5, %p5440_p4 }
  0x15   :  { %p5443_p7 = pnand %p5442_p6, %p5436_p3 }
  0x17   :  { %5446 = shalt.err (!%p5443_p7)
}
  0x18   :  { %42 = dma.hbm_to_vmem [thread:$0]  %s6080_s1, 128, %s40_s12, [#allocation7]  }
  0x19   :  { %s5447_s26 = scalar_lea.hbm %s6082_s3, 128 }
  0x1a   :  { %p5448_p8 = scmp.ne.s32.totalorder %s6082_s3, %s5447_s26  ;;  %p5451_p9 = scmp.lt.u32.totalorder %s5447_s26, %s6082_s3 }
  0x1c   :  { %p5453_p10 = pnand %p5451_p9, %p5448_p8 }
  0x1e   :  { %5456 = shalt.err (!%p5453_p10)
}
  0x1f   :  { %s5457_s10 = scalar_lea.vmem %s62_s14, 128  ;;  %p5462_p12 = scmp.lt.s32.totalorder %s62_s14, %s62_s14 }
  0x20   :  { %p5458_p11 = scmp.ne.s32.totalorder %s62_s14, %s5457_s10  ;;  %p5463_p13 = scmp.lt.s32.totalorder %s5457_s10, %s5457_s10 }
  0x22   :  { %p5464_p0 = por %p5463_p13, %p5462_p12 }
  0x24   :  { %p5465_p1 = pnand %p5464_p0, %p5458_p11 }
  0x26   :  { %5468 = shalt.err (!%p5465_p1)
}
  0x27   :  { %64 = dma.hbm_to_vmem [thread:$0]  %s6082_s3, 128, %s62_s14, [#allocation10]  }
  0x28   :  { %s5637_s12 = smov [#allocation12]   ;;  %s5638_s15 = smov [#allocation3]  }
  0x29   :  { %s83_s13 = sshll.u32 %s5637_s12, 4  ;;  %s29_s16 = sshll.u32 %s5638_s15, 4  ;;  %s84_s13 = int_to_ptr.vmem [resolvable:$true] %s83_s13  ;;  %s30_s16 = int_to_ptr.vmem [resolvable:$true] %s29_s16 }
  0x2a   :  { %s5469_s19 = scalar_lea.hbm %s6084_s5, 128 }
  0x2b   :  { %p5470_p2 = scmp.ne.s32.totalorder %s6084_s5, %s5469_s19  ;;  %p5473_p3 = scmp.lt.u32.totalorder %s5469_s19, %s6084_s5 }
  0x2d   :  { %p5475_p4 = pnand %p5473_p3, %p5470_p2 }
  0x2f   :  { %5478 = shalt.err (!%p5475_p4)
}
  0x30   :  { %s5479_s3 = scalar_lea.vmem %s84_s13, 128  ;;  %p5484_p6 = scmp.lt.s32.totalorder %s84_s13, %s84_s13 }
  0x31   :  { %p5480_p5 = scmp.ne.s32.totalorder %s84_s13, %s5479_s3  ;;  %p5485_p7 = scmp.lt.s32.totalorder %s5479_s3, %s5479_s3 }
  0x33   :  { %p5486_p8 = por %p5485_p7, %p5484_p6 }
  0x35   :  { %p5487_p9 = pnand %p5486_p8, %p5480_p5 }
  0x37   :  { %5490 = shalt.err (!%p5487_p9)
}
  0x38   :  { %86 = dma.hbm_to_vmem [thread:$0]  %s6084_s5, 128, %s84_s13, [#allocation13]  }
  0x39   :  { %s5491_s26 = scalar_lea.hbm %s6079_s0, 128 }
  0x3a   :  { %p5492_p10 = scmp.ne.s32.totalorder %s6079_s0, %s5491_s26  ;;  %p5495_p11 = scmp.lt.u32.totalorder %s5491_s26, %s6079_s0 }
  0x3c   :  { %p5497_p12 = pnand %p5495_p11, %p5492_p10 }
  0x3e   :  { %5500 = shalt.err (!%p5497_p12)
}
  0x3f   :  { %s5501_s10 = scalar_lea.vmem %s30_s16, 128  ;;  %p5506_p0 = scmp.lt.s32.totalorder %s30_s16, %s30_s16 }
  0x40   :  { %p5502_p13 = scmp.ne.s32.totalorder %s30_s16, %s5501_s10  ;;  %p5507_p1 = scmp.lt.s32.totalorder %s5501_s10, %s5501_s10 }
  0x42   :  { %p5508_p2 = por %p5507_p1, %p5506_p0 }
  0x44   :  { %p5509_p3 = pnand %p5508_p2, %p5502_p13 }
  0x46   :  { %5512 = shalt.err (!%p5509_p3)
}
  0x47   :  { %32 = dma.hbm_to_vmem [thread:$0]  %s6079_s0, 128, %s30_s16, [#allocation4]  }
  0x48   :  { %s5639_s11 = smov [#allocation8]   ;;  %s5513_s17 = scalar_lea.hbm %s6081_s2, 4096 }
  0x49   :  { %s48_s12 = sshll.u32 %s5639_s11, 4  ;;  %p5514_p4 = scmp.ne.s32.totalorder %s6081_s2, %s5513_s17  ;;  %s49_s12 = int_to_ptr.vmem [resolvable:$true] %s48_s12 }
  0x4a   :  { %p5517_p5 = scmp.lt.u32.totalorder %s5513_s17, %s6081_s2 }
  0x4c   :  { %p5519_p6 = pnand %p5517_p5, %p5514_p4 }
  0x4e   :  { %5522 = shalt.err (!%p5519_p6)
}
  0x4f   :  { %s5523_s21 = scalar_lea.vmem %s49_s12, 4096  ;;  %p5528_p8 = scmp.lt.s32.totalorder %s49_s12, %s49_s12 }
  0x50   :  { %p5524_p7 = scmp.ne.s32.totalorder %s49_s12, %s5523_s21  ;;  %p5529_p9 = scmp.lt.s32.totalorder %s5523_s21, %s5523_s21 }
  0x52   :  { %p5530_p10 = por %p5529_p9, %p5528_p8 }
  0x54   :  { %p5531_p11 = pnand %p5530_p10, %p5524_p7 }
  0x56   :  { %5534 = shalt.err (!%p5531_p11)
}
  0x57   :  { %s5640_s0 = smov 512   ;;  %s5641_s16 = smov 32  }
  0x58   :  { %54 = dma.hbm_to_vmem [thread:$0]  %s6081_s2, 4096, %s49_s12, [#allocation7], %s5640_s0, %s5640_s0, %s5641_s16  }
  0x59   :  { %s5642_s14 = smov [#allocation11]   ;;  %s5643_s24 = smov [#allocation14]  }
  0x5a   :  { %s70_s23 = sshll.u32 %s5642_s14, 4  ;;  %s93_s25 = sshll.u32 %s5643_s24, 4  ;;  %s71_s23 = int_to_ptr.vmem [resolvable:$true] %s70_s23  ;;  %s94_s25 = int_to_ptr.vmem [resolvable:$true] %s93_s25 }
  0x5b   :  { %s5535_s28 = scalar_lea.hbm %s6083_s4, 65536 }
  0x5c   :  { %p5536_p12 = scmp.ne.s32.totalorder %s6083_s4, %s5535_s28  ;;  %p5539_p13 = scmp.lt.u32.totalorder %s5535_s28, %s6083_s4 }
  0x5e   :  { %p5541_p0 = pnand %p5539_p13, %p5536_p12 }
  0x60   :  { %5544 = shalt.err (!%p5541_p0)
}
  0x61   :  { %s5545_s2 = scalar_lea.vmem %s71_s23, 65536  ;;  %p5550_p2 = scmp.lt.s32.totalorder %s71_s23, %s71_s23 }
  0x62   :  { %p5546_p1 = scmp.ne.s32.totalorder %s71_s23, %s5545_s2  ;;  %p5551_p3 = scmp.lt.s32.totalorder %s5545_s2, %s5545_s2 }
  0x64   :  { %p5552_p4 = por %p5551_p3, %p5550_p2 }
  0x66   :  { %p5553_p5 = pnand %p5552_p4, %p5546_p1 }
  0x68   :  { %5556 = shalt.err (!%p5553_p5)
}
  0x69   :  { %76 = dma.hbm_to_vmem [thread:$0]  %s6083_s4, 65536, %s71_s23, [#allocation10], %s5640_s0, %s5640_s0, %s5641_s16  }
  0x6a   :  { %s5557_s15 = scalar_lea.hbm %s6085_s6, 128 }
  0x6b   :  { %p5558_p6 = scmp.ne.s32.totalorder %s6085_s6, %s5557_s15  ;;  %p5561_p7 = scmp.lt.u32.totalorder %s5557_s15, %s6085_s6 }
  0x6d   :  { %p5563_p8 = pnand %p5561_p7, %p5558_p6 }
  0x6f   :  { %5566 = shalt.err (!%p5563_p8)
}
  0x70   :  { %s5567_s20 = scalar_lea.vmem %s94_s25, 128  ;;  %p5572_p10 = scmp.lt.s32.totalorder %s94_s25, %s94_s25 }
  0x71   :  { %p5568_p9 = scmp.ne.s32.totalorder %s94_s25, %s5567_s20  ;;  %p5573_p11 = scmp.lt.s32.totalorder %s5567_s20, %s5567_s20 }
  0x73   :  { %p5574_p12 = por %p5573_p11, %p5572_p10 }
  0x75   :  { %p5575_p13 = pnand %p5574_p12, %p5568_p9 }
  0x77   :  { %5578 = shalt.err (!%p5575_p13)
}
  0x78   :  { %96 = dma.hbm_to_vmem [thread:$0]  %s6085_s6, 128, %s94_s25, [#allocation13]  }
  0x79   :  { %5623 = dma.done.wait [#allocation4], 128  }
  0x7a   :  { %5624 = vsyncadd [#allocation4], 4294967168 }
  0x7b   :  { %5625 = dma.done.wait [#allocation7], 4224  }
  0x7c   :  { %5626 = vsyncadd [#allocation7], 4294963072 }
  0x7d   :  { %5627 = dma.done.wait [#allocation10], 65664  }
  0x7e   :  { %5628 = vsyncadd [#allocation10], 4294901632 }
  0x7f   :  { %5629 = dma.done.wait [#allocation13], 256  }
  0x80   :  { %5630 = vsyncadd [#allocation13], 4294967040  ;;  %v5644_v1 = vmov 0   ;;  %v125_v2 = vld [vmem:[#allocation8] sm:$0xff]  ;;  %v127_v9 = vld [vmem:[#allocation8 + $0x10] sm:$0xff]  ;;  %vm221_vm0 = vcmask 261120  }
  0x81   :  { %257 = vmatprep.mubr.bf16.mxu0 %v5644_v1  ;;  %298 = vmatprep.mubr.bf16.mxu1 %v5644_v1  ;;  %v129_v3 = vld [vmem:[#allocation8 + $0x20] sm:$0xff]  ;;  %v131_v10 = vld [vmem:[#allocation8 + $0x30] sm:$0xff]  ;;  %v126_v16 = vld [vmem:[#allocation8 + $0x8] sm:$0xff]  ;;  %vm4696_vm1 = vcmask 7168   ;;  %s5645_s6 = smov [#allocation16]   ;;  %vm4731_vm3 = vcmask 0  }
  0x82   :  { %v133_v4 = vld [vmem:[#allocation8 + $0x40] sm:$0xff]  ;;  %v4787_v5 = vcombine.high %v125_v2, %v129_v3  ;;  %v4786_v6 = vcombine.low %v125_v2, %v129_v3  ;;  %v121_v12 = vld [vmem:[#allocation3] sm:$0xff]  ;;  %v4791_v13 = vcombine.high %v127_v9, %v131_v10  ;;  %v130_v17 = vld [vmem:[#allocation8 + $0x28] sm:$0xff]  ;;  %v4790_v23 = vcombine.low %v127_v9, %v131_v10  ;;  %s4770_s0 = sshll.u32 %s5645_s6, 4  ;;  %s4771_s0 = int_to_ptr.vmem [resolvable:$true] %s4770_s0 }
  0x83   :  { %v137_v7 = vld [vmem:[#allocation8 + $0x60] sm:$0xff]  ;;  %v135_v14 = vld [vmem:[#allocation8 + $0x50] sm:$0xff]  ;;  %v134_v18 = vld [vmem:[#allocation8 + $0x48] sm:$0xff]  ;;  %v5786_v19 = vpack.c.bf16 %v121_v12, %v121_v12  ;;  %v4789_v20 = vcombine.high %v126_v16, %v130_v17  ;;  %v4788_v21 = vcombine.low %v126_v16, %v130_v17  ;;  %s5579_s16 = scalar_lea.vmem %s4771_s0, 16  ;;  %s5583_s22 = scalar_lea.vmem %s4771_s0, 32 }
  0x84   :  { %v4795_v8 = vcombine.high %v133_v4, %v137_v7  ;;  %225 = vmatprep.subr.bf16.mxu0 %v4787_v5  ;;  %v4794_v11 = vcombine.low %v133_v4, %v137_v7  ;;  %v139_v15 = vld [vmem:[#allocation8 + $0x70] sm:$0xff]  ;;  %v138_v22 = vld [vmem:[#allocation8 + $0x68] sm:$0xff]  ;;  %v128_v25 = vld [vmem:[#allocation8 + $0x18] sm:$0xff]  ;;  %p5580_p0 = scmp.ne.s32.totalorder %s4771_s0, %s5579_s16  ;;  %p5584_p1 = scmp.lt.s32.totalorder %s4771_s0, %s4771_s0 }
  0x85   :  { %226 = vmatpush1.bf16.msra.mxu0 %v4786_v6  ;;  %v4797_v24 = vcombine.high %v134_v18, %v138_v22  ;;  %v132_v26 = vld [vmem:[#allocation8 + $0x38] sm:$0xff]  ;;  %v4799_v27 = vcombine.high %v135_v14, %v139_v15  ;;  %266 = vmatprep.subr.bf16.mxu1 %v4789_v20  ;;  %v389_v28 = vld [vmem:[#allocation8 + $0x80] sm:$0xff]  ;;  %v4796_v30 = vcombine.low %v134_v18, %v138_v22  ;;  %v390_v41 = vld [vmem:[#allocation8 + $0x88] sm:$0xff]  ;;  %p5585_p2 = scmp.lt.s32.totalorder %s5583_s22, %s5579_s16 }
  0x86   :  { %227 = vmatprep.subr.bf16.mxu0 %v4795_v8  ;;  %v393_v29 = vld [vmem:[#allocation8 + $0xa0] sm:$0xff]  ;;  %267 = vmatpush1.bf16.msra.mxu1 %v4788_v21  ;;  %v4793_v31 = vcombine.high %v128_v25, %v132_v26  ;;  %v4798_v32 = vcombine.low %v135_v14, %v139_v15  ;;  %v136_v33 = vld [vmem:[#allocation8 + $0x58] sm:$0xff]  ;;  %v4792_v38 = vcombine.low %v128_v25, %v132_v26  ;;  %v394_v42 = vld [vmem:[#allocation8 + $0xa8] sm:$0xff] }
  0x87   :  { %268 = vmatprep.subr.bf16.mxu1 %v4797_v24  ;;  %v140_v34 = vld [vmem:[#allocation8 + $0x78] sm:$0xff]  ;;  %v4807_v35 = vcombine.high %v389_v28, %v393_v29  ;;  %v397_v36 = vld [vmem:[#allocation8 + $0xc0] sm:$0xff]  ;;  %v4806_v40 = vcombine.low %v389_v28, %v393_v29  ;;  %v391_v44 = vld [vmem:[#allocation8 + $0x90] sm:$0xff]  ;;  %v4809_v47 = vcombine.high %v390_v41, %v394_v42  ;;  %v4808_v55 = vcombine.low %v390_v41, %v394_v42  ;;  %p5586_p3 = por %p5585_p2, %p5584_p1 }
  0x88   :  { %v401_v37 = vld [vmem:[#allocation8 + $0xe0] sm:$0xff]  ;;  %v4801_v39 = vcombine.high %v136_v33, %v140_v34  ;;  %v395_v45 = vld [vmem:[#allocation8 + $0xb0] sm:$0xff]  ;;  %v4800_v46 = vcombine.low %v136_v33, %v140_v34  ;;  %v123_v49 = vld [vmem:[#allocation6] sm:$0xff] }
  0x89   :  { %228 = vmatpush1.bf16.msra.mxu0 %v4794_v11  ;;  %v4815_v43 = vcombine.high %v397_v36, %v401_v37  ;;  %v4814_v48 = vcombine.low %v397_v36, %v401_v37  ;;  %v398_v50 = vld [vmem:[#allocation8 + $0xc8] sm:$0xff]  ;;  %v4811_v52 = vcombine.high %v391_v44, %v395_v45  ;;  %v399_v53 = vld [vmem:[#allocation8 + $0xd0] sm:$0xff]  ;;  %v124_v56 = vpack.c.bf16 %v123_v49, %v123_v49  ;;  %v392_v59 = vld [vmem:[#allocation8 + $0x98] sm:$0xff]  ;;  %p5587_p4 = pnand %p5586_p3, %p5580_p0 }
  0x8a   :  { %307 = vmatprep.subr.bf16.mxu0 %v4791_v13  ;;  %269 = vmatpush1.bf16.msra.mxu1 %v4796_v30  ;;  %v402_v51 = vld [vmem:[#allocation8 + $0xe8] sm:$0xff]  ;;  %v403_v54 = vld [vmem:[#allocation8 + $0xf0] sm:$0xff]  ;;  %v4810_v58 = vcombine.low %v391_v44, %v395_v45  ;;  %v396_v60 = vld [vmem:[#allocation8 + $0xb8] sm:$0xff] }
  0x8b   :  { %348 = vmatprep.subr.bf16.mxu1 %v4793_v31  ;;  %v4817_v57 = vcombine.high %v398_v50, %v402_v51  ;;  %v4819_v61 = vcombine.high %v399_v53, %v403_v54  ;;  %v4816_v62 = vcombine.low %v398_v50, %v402_v51  ;;  %v742_v63 = vld [vmem:[#allocation11] sm:$0xff]  ;;  %v4813_v2 = vcombine.high %v392_v59, %v396_v60  ;;  %v400_v4 = vld [vmem:[#allocation8 + $0xd8] sm:$0xff]  ;;  %v743_v12 = vld [vmem:[#allocation11 + $0x8] sm:$0xff] }
  0x8c   :  { %4802 = vmatmul.mubr.msk.bf16.vlgmr.msra.gmra.mrb[0].mxu0 %vm221_vm0, %v5786_v19  ;;  %v746_v0 = vld [vmem:[#allocation11 + $0x20] sm:$0xff]  ;;  %v4818_v3 = vcombine.low %v399_v53, %v403_v54  ;;  %v404_v5 = vld [vmem:[#allocation8 + $0xf8] sm:$0xff]  ;;  %v4812_v7 = vcombine.low %v392_v59, %v396_v60  ;;  %v747_v13 = vld [vmem:[#allocation11 + $0x28] sm:$0xff] }
  0x8d   :  { %308 = vmatpush1.bf16.msra.mxu0 %v4790_v23  ;;  %339 = vmatprep.mubr.bf16.mxu0 %v5644_v1  ;;  %v4827_v6 = vcombine.high %v742_v63, %v746_v0  ;;  %v750_v8 = vld [vmem:[#allocation11 + $0x40] sm:$0xff]  ;;  %v4821_v10 = vcombine.high %v400_v4, %v404_v5  ;;  %v4826_v11 = vcombine.low %v742_v63, %v746_v0  ;;  %v751_v20 = vld [vmem:[#allocation11 + $0x48] sm:$0xff] }
  0x8e   :  { %309 = vmatprep.subr.bf16.mxu0 %v4799_v27  ;;  %4803 = vmatmul.mubr.msk.bf16.vlgmr.msra.gmra.mrb[0].mxu1 %vm221_vm0, %v5786_v19  ;;  %v754_v9 = vld [vmem:[#allocation11 + $0x60] sm:$0xff]  ;;  %v4820_v15 = vcombine.low %v400_v4, %v404_v5  ;;  %v4829_v18 = vcombine.high %v743_v12, %v747_v13  ;;  %v755_v21 = vld [vmem:[#allocation11 + $0x68] sm:$0xff]  ;;  %v4828_v23 = vcombine.low %v743_v12, %v747_v13 }
  0x8f   :  { %349 = vmatpush1.bf16.msra.mxu1 %v4792_v38  ;;  %380 = vmatprep.mubr.bf16.mxu1 %v5644_v1  ;;  %v4835_v14 = vcombine.high %v750_v8, %v754_v9  ;;  %v758_v16 = vld [vmem:[#allocation11 + $0x80] sm:$0xff]  ;;  %v4837_v26 = vcombine.high %v751_v20, %v755_v21  ;;  %v759_v27 = vld [vmem:[#allocation11 + $0x88] sm:$0xff]  ;;  %v4836_v30 = vcombine.low %v751_v20, %v755_v21 }
  0x90   :  { %350 = vmatprep.subr.bf16.mxu1 %v4801_v39  ;;  %v762_v17 = vld [vmem:[#allocation11 + $0xa0] sm:$0xff]  ;;  %v763_v28 = vld [vmem:[#allocation11 + $0xa8] sm:$0xff] }
  0x91   :  { %310 = vmatpush1.bf16.msra.mxu0 %v4798_v32  ;;  %v4843_v22 = vcombine.high %v758_v16, %v762_v17  ;;  %v766_v24 = vld [vmem:[#allocation11 + $0xc0] sm:$0xff]  ;;  %v4845_v33 = vcombine.high %v759_v27, %v763_v28  ;;  %v771_v36 = vld [vmem:[#allocation11 + $0xe8] sm:$0xff]  ;;  %v4844_v38 = vcombine.low %v759_v27, %v763_v28 }
  0x92   :  { %538 = vmatprep.subr.bf16.mxu0 %v4807_v35  ;;  %v770_v25 = vld [vmem:[#allocation11 + $0xe0] sm:$0xff]  ;;  %v767_v35 = vld [vmem:[#allocation11 + $0xc8] sm:$0xff] }
  0x93   :  { %351 = vmatpush1.bf16.msra.mxu1 %v4800_v46  ;;  %v4851_v29 = vcombine.high %v766_v24, %v770_v25  ;;  %v774_v31 = vld [vmem:[#allocation11 + $0x100] sm:$0xff]  ;;  %v4850_v34 = vcombine.low %v766_v24, %v770_v25  ;;  %v4853_v41 = vcombine.high %v767_v35, %v771_v36  ;;  %v779_v44 = vld [vmem:[#allocation11 + $0x128] sm:$0xff]  ;;  %v4852_v46 = vcombine.low %v767_v35, %v771_v36 }
  0x94   :  { %4804 = vmatmul.mubr.msk.bf16.vlgmr.msra.gmra.mrb[4].mxu0 %vm221_vm0, %v5786_v19  ;;  %579 = vmatprep.subr.bf16.mxu1 %v4809_v47  ;;  %v778_v32 = vld [vmem:[#allocation11 + $0x120] sm:$0xff]  ;;  %v783_v51 = vld [vmem:[#allocation11 + $0x148] sm:$0xff] }
  0x95   :  { %539 = vmatpush1.bf16.msra.mxu0 %v4806_v40  ;;  %570 = vmatprep.mubr.bf16.mxu0 %v5644_v1  ;;  %v4859_v37 = vcombine.high %v774_v31, %v778_v32  ;;  %v782_v39 = vld [vmem:[#allocation11 + $0x140] sm:$0xff]  ;;  %v4858_v42 = vcombine.low %v774_v31, %v778_v32  ;;  %v791_v59 = vld [vmem:[#allocation11 + $0x188] sm:$0xff] }
  0x96   :  { %540 = vmatprep.subr.bf16.mxu0 %v4815_v43  ;;  %4805 = vmatmul.mubr.msk.bf16.vlgmr.msra.gmra.mrb[4].mxu1 %vm221_vm0, %v5786_v19  ;;  %v4834_v19 = vcombine.low %v750_v8, %v754_v9  ;;  %v786_v40 = vld [vmem:[#allocation11 + $0x160] sm:$0xff]  ;;  %v775_v43 = vld [vmem:[#allocation11 + $0x108] sm:$0xff] }
  0x97   :  { %580 = vmatpush1.bf16.msra.mxu1 %v4808_v55  ;;  %611 = vmatprep.mubr.bf16.mxu1 %v5644_v1  ;;  %v4867_v45 = vcombine.high %v782_v39, %v786_v40  ;;  %v790_v47 = vld [vmem:[#allocation11 + $0x180] sm:$0xff]  ;;  %v4861_v49 = vcombine.high %v775_v43, %v779_v44  ;;  %v4866_v50 = vcombine.low %v782_v39, %v786_v40  ;;  %v795_v60 = vld [vmem:[#allocation11 + $0x1a8] sm:$0xff] }
  0x98   :  { %581 = vmatprep.subr.bf16.mxu1 %v4817_v57  ;;  %v4860_v54 = vcombine.low %v775_v43, %v779_v44  ;;  %v798_v55 = vld [vmem:[#allocation11 + $0x1c0] sm:$0xff]  ;;  %v799_v4 = vld [vmem:[#allocation11 + $0x1c8] sm:$0xff] }
  0x99   :  { %541 = vmatpush1.bf16.msra.mxu0 %v4814_v48  ;;  %v794_v48 = vld [vmem:[#allocation11 + $0x1a0] sm:$0xff]  ;;  %v803_v5 = vld [vmem:[#allocation11 + $0x1e8] sm:$0xff] }
  0x9a   :  { %620 = vmatprep.subr.bf16.mxu0 %v4811_v52  ;;  %v787_v52 = vld [vmem:[#allocation11 + $0x168] sm:$0xff]  ;;  %v4875_v53 = vcombine.high %v790_v47, %v794_v48  ;;  %v806_v63 = vld [vmem:[#allocation11 + $0x200] sm:$0xff] }
  0x9b   :  { %582 = vmatpush1.bf16.msra.mxu1 %v4816_v62  ;;  %v4869_v57 = vcombine.high %v783_v51, %v787_v52  ;;  %v4868_v62 = vcombine.low %v783_v51, %v787_v52  ;;  %v810_v0 = vld [vmem:[#allocation11 + $0x220] sm:$0xff]  ;;  %v807_v12 = vld [vmem:[#allocation11 + $0x208] sm:$0xff] }
  0x9c   :  { %4822 = vmatmul.mubr.msk.bf16.vlgmr.msra.gmra.mrb[8].mxu0 %vm221_vm0, %v124_v56  ;;  %661 = vmatprep.subr.bf16.mxu1 %v4813_v2  ;;  %v4877_v2 = vcombine.high %v791_v59, %v795_v60  ;;  %v814_v8 = vld [vmem:[#allocation11 + $0x240] sm:$0xff]  ;;  %v811_v13 = vld [vmem:[#allocation11 + $0x228] sm:$0xff] }
  0x9d   :  { %621 = vmatpush1.bf16.msra.mxu0 %v4810_v58  ;;  %652 = vmatprep.mubr.bf16.mxu0 %v5644_v1  ;;  %v4874_v58 = vcombine.low %v790_v47, %v794_v48  ;;  %v818_v9 = vld [vmem:[#allocation11 + $0x260] sm:$0xff]  ;;  %v4892_v20 = vcombine.low %v807_v12, %v811_v13  ;;  %v823_v25 = vld [vmem:[#allocation11 + $0x288] sm:$0xff] }
  0x9e   :  { %622 = vmatprep.subr.bf16.mxu0 %v4819_v61  ;;  %4823 = vmatmul.mubr.msk.bf16.vlgmr.msra.gmra.mrb[8].mxu1 %vm221_vm0, %v124_v56  ;;  %v826_v24 = vld [vmem:[#allocation11 + $0x2a0] sm:$0xff]  ;;  %v831_v32 = vld [vmem:[#allocation11 + $0x2c8] sm:$0xff] }
  0x9f   :  { %662 = vmatpush1.bf16.msra.mxu1 %v4812_v7  ;;  %693 = vmatprep.mubr.bf16.mxu1 %v5644_v1  ;;  %v4842_v1 = vcombine.low %v758_v16, %v762_v17  ;;  %v4876_v7 = vcombine.low %v791_v59, %v795_v60  ;;  %v4893_v16 = vcombine.high %v807_v12, %v811_v13  ;;  %v834_v31 = vld [vmem:[#allocation11 + $0x2e0] sm:$0xff]  ;;  %v835_v35 = vld [vmem:[#allocation11 + $0x2e8] sm:$0xff] }
  0xa0   :  { %663 = vmatprep.subr.bf16.mxu1 %v4821_v10  ;;  %v4885_v10 = vcombine.high %v799_v4, %v803_v5  ;;  %v4898_v17 = vcombine.low %v814_v8, %v818_v9  ;;  %v4916_v36 = vcombine.low %v831_v32, %v835_v35  ;;  %v842_v39 = vld [vmem:[#allocation11 + $0x320] sm:$0xff]  ;;  %v839_v40 = vld [vmem:[#allocation11 + $0x308] sm:$0xff] }
  0xa1   :  { %623 = vmatpush1.bf16.msra.mxu0 %v4818_v3  ;;  %v850_v47 = vld [vmem:[#allocation11 + $0x360] sm:$0xff]  ;;  %v847_v48 = vld [vmem:[#allocation11 + $0x348] sm:$0xff] }
  0xa2   :  { %3856 = vmatprep.subr.bf16.mxu0 %v4827_v6  ;;  %v4891_v6 = vcombine.high %v806_v63, %v810_v0  ;;  %v851_v51 = vld [vmem:[#allocation11 + $0x368] sm:$0xff] }
  0xa3   :  { %664 = vmatpush1.bf16.msra.mxu1 %v4820_v15  ;;  %v4884_v15 = vcombine.low %v799_v4, %v803_v5  ;;  %v4932_v52 = vcombine.low %v847_v48, %v851_v51 }
  0xa4   :  { %4824 = vmatmul.mubr.msk.bf16.vlgmr.msra.gmra.mrb[12].mxu0 %vm221_vm0, %v124_v56  ;;  %4028 = vmatprep.subr.bf16.mxu1 %v4829_v18  ;;  %v815_v18 = vld [vmem:[#allocation11 + $0x248] sm:$0xff] }
  0xa5   :  { %3857 = vmatpush1.bf16.msra.mxu0 %v4826_v11  ;;  %v4890_v11 = vcombine.low %v806_v63, %v810_v0  ;;  %v866_v63 = vld [vmem:[#allocation11 + $0x3e0] sm:$0xff]  ;;  %v863_v0 = vld [vmem:[#allocation11 + $0x3c8] sm:$0xff] }
  0xa6   :  { %3858 = vmatprep.subr.bf16.mxu0 %v4835_v14  ;;  %4825 = vmatmul.mubr.msk.bf16.vlgmr.msra.gmra.mrb[12].mxu1 %vm221_vm0, %v124_v56  ;;  %v802_v56 = vld [vmem:[#allocation11 + $0x1e0] sm:$0xff]  ;;  %v4899_v14 = vcombine.high %v814_v8, %v818_v9  ;;  %v5810_v9 = vld [vmem:[#allocation11 + $0x408] sm:$0xff] }
  0xa7   :  { %4029 = vmatpush1.bf16.msra.mxu1 %v4828_v23  ;;  %v4883_v61 = vcombine.high %v798_v55, %v802_v56  ;;  %v4882_v3 = vcombine.low %v798_v55, %v802_v56  ;;  %v822_v23 = vld [vmem:[#allocation11 + $0x280] sm:$0xff]  ;;  %v855_v56 = vld [vmem:[#allocation11 + $0x388] sm:$0xff] }
  0xa8   :  { %4030 = vmatprep.subr.bf16.mxu1 %v4837_v26  ;;  %v4907_v26 = vcombine.high %v822_v23, %v826_v24  ;;  %v4906_v27 = vcombine.low %v822_v23, %v826_v24  ;;  %v858_v55 = vld [vmem:[#allocation11 + $0x3a0] sm:$0xff] }
  0xa9   :  { %3859 = vmatpush1.bf16.msra.mxu0 %v4834_v19  ;;  %v819_v19 = vld [vmem:[#allocation11 + $0x268] sm:$0xff]  ;;  %v5808_v8 = vld [vmem:[#allocation11 + $0x420] sm:$0xff] }
  0xaa   :  { %3860 = vmatprep.subr.bf16.mxu0 %v4843_v22  ;;  %v4901_v21 = vcombine.high %v815_v18, %v819_v19  ;;  %v4900_v22 = vcombine.low %v815_v18, %v819_v19 }
  0xab   :  { %4031 = vmatpush1.bf16.msra.mxu1 %v4836_v30  ;;  %v830_v30 = vld [vmem:[#allocation11 + $0x2c0] sm:$0xff] }
  0xac   :  { %4032 = vmatprep.subr.bf16.mxu1 %v4845_v33  ;;  %v4914_v33 = vcombine.low %v830_v30, %v834_v31 }
  0xad   :  { %3861 = vmatpush1.bf16.msra.mxu0 %v4842_v1  ;;  %v827_v1 = vld [vmem:[#allocation11 + $0x2a8] sm:$0xff] }
  0xae   :  { %3862 = vmatprep.subr.bf16.mxu0 %v4851_v29  ;;  %v4908_v28 = vcombine.low %v823_v25, %v827_v1  ;;  %v4909_v29 = vcombine.high %v823_v25, %v827_v1 }
  0xaf   :  { %4033 = vmatpush1.bf16.msra.mxu1 %v4844_v38  ;;  %v838_v38 = vld [vmem:[#allocation11 + $0x300] sm:$0xff] }
  0xb0   :  { %4034 = vmatprep.subr.bf16.mxu1 %v4853_v41  ;;  %v4923_v41 = vcombine.high %v838_v38, %v842_v39  ;;  %v4922_v43 = vcombine.low %v838_v38, %v842_v39 }
  0xb1   :  { %3863 = vmatpush1.bf16.msra.mxu0 %v4850_v34  ;;  %v4915_v34 = vcombine.high %v830_v30, %v834_v31 }
  0xb2   :  { %3864 = vmatprep.subr.bf16.mxu0 %v4859_v37  ;;  %v4917_v37 = vcombine.high %v831_v32, %v835_v35 }
  0xb3   :  { %4035 = vmatpush1.bf16.msra.mxu1 %v4852_v46  ;;  %v846_v46 = vld [vmem:[#allocation11 + $0x340] sm:$0xff] }
  0xb4   :  { %4036 = vmatprep.subr.bf16.mxu1 %v4861_v49  ;;  %v4930_v49 = vcombine.low %v846_v46, %v850_v47 }
  0xb5   :  { %3865 = vmatpush1.bf16.msra.mxu0 %v4858_v42  ;;  %v843_v42 = vld [vmem:[#allocation11 + $0x328] sm:$0xff] }
  0xb6   :  { %3866 = vmatprep.subr.bf16.mxu0 %v4867_v45  ;;  %v4924_v44 = vcombine.low %v839_v40, %v843_v42  ;;  %v4925_v45 = vcombine.high %v839_v40, %v843_v42 }
  0xb7   :  { %4037 = vmatpush1.bf16.msra.mxu1 %v4860_v54  ;;  %v854_v54 = vld [vmem:[#allocation11 + $0x380] sm:$0xff] }
  0xb8   :  { %4038 = vmatprep.subr.bf16.mxu1 %v4869_v57  ;;  %v4939_v57 = vcombine.high %v854_v54, %v858_v55  ;;  %v4938_v59 = vcombine.low %v854_v54, %v858_v55  ;;  %v5868_v54 = vld [vmem:[#allocation11 + $0x448] sm:$0xff] }
  0xb9   :  { %3867 = vmatpush1.bf16.msra.mxu0 %v4866_v50  ;;  %v4931_v50 = vcombine.high %v846_v46, %v850_v47  ;;  %v5870_v55 = vld [vmem:[#allocation11 + $0x468] sm:$0xff] }
  0xba   :  { %3868 = vmatprep.subr.bf16.mxu0 %v4875_v53  ;;  %v4933_v53 = vcombine.high %v847_v48, %v851_v51 }
  0xbb   :  { %4039 = vmatpush1.bf16.msra.mxu1 %v4868_v62  ;;  %v862_v62 = vld [vmem:[#allocation11 + $0x3c0] sm:$0xff] }
  0xbc   :  { %4040 = vmatprep.subr.bf16.mxu1 %v4877_v2  ;;  %v4947_v2 = vcombine.high %v862_v62, %v866_v63  ;;  %v4946_v4 = vcombine.low %v862_v62, %v866_v63 }
  0xbd   :  { %3869 = vmatpush1.bf16.msra.mxu0 %v4874_v58  ;;  %v859_v58 = vld [vmem:[#allocation11 + $0x3a8] sm:$0xff] }
  0xbe   :  { %3870 = vmatprep.subr.bf16.mxu0 %v4883_v61  ;;  %v4940_v60 = vcombine.low %v855_v56, %v859_v58  ;;  %v4941_v61 = vcombine.high %v855_v56, %v859_v58 }
  0xbf   :  { %4041 = vmatpush1.bf16.msra.mxu1 %v4876_v7  ;;  %v5806_v7 = vld [vmem:[#allocation11 + $0x400] sm:$0xff] }
  0xc0   :  { %4042 = vmatprep.subr.bf16.mxu1 %v4885_v10  ;;  %v4955_v10 = vcombine.high %v5806_v7, %v5808_v8  ;;  %v4954_v12 = vcombine.low %v5806_v7, %v5808_v8 }
  0xc1   :  { %3871 = vmatpush1.bf16.msra.mxu0 %v4882_v3  ;;  %v867_v3 = vld [vmem:[#allocation11 + $0x3e8] sm:$0xff] }
  0xc2   :  { %3872 = vmatprep.subr.bf16.mxu0 %v4891_v6  ;;  %v4948_v5 = vcombine.low %v863_v0, %v867_v3  ;;  %v4949_v6 = vcombine.high %v863_v0, %v867_v3  ;;  %v5879_v0 = vld [vmem:[#allocation11 + $0x4a0] sm:$0xff]  ;;  %v5883_v3 = vld [vmem:[#allocation11 + $0x4a8] sm:$0xff] }
  0xc3   :  { %4043 = vmatpush1.bf16.msra.mxu1 %v4884_v15 }
  0xc4   :  { %4044 = vmatprep.subr.bf16.mxu1 %v4893_v16 }
  0xc5   :  { %3873 = vmatpush1.bf16.msra.mxu0 %v4890_v11  ;;  %v5814_v11 = vld [vmem:[#allocation11 + $0x428] sm:$0xff] }
  0xc6   :  { %3874 = vmatprep.subr.bf16.mxu0 %v4899_v14  ;;  %v4956_v13 = vcombine.low %v5810_v9, %v5814_v11  ;;  %v4957_v14 = vcombine.high %v5810_v9, %v5814_v11  ;;  %v899_v9 = vld [vmem:[#allocation11 + $0x4e8] sm:$0xff] }
  0xc7   :  { %4045 = vmatpush1.bf16.msra.mxu1 %v4892_v20 }
  0xc8   :  { %4046 = vmatprep.subr.bf16.mxu1 %v4901_v21 }
  0xc9   :  { %3875 = vmatpush1.bf16.msra.mxu0 %v4898_v17  ;;  %v415_v17 = vlaneseq }
  0xca   :  { %3876 = vmatprep.subr.bf16.mxu0 %v4907_v26 }
  0xcb   :  { %4047 = vmatpush1.bf16.msra.mxu1 %v4900_v22  ;;  %v5822_v20 = vshrl.u32 %v415_v17, 7 }
  0xcc   :  { %4048 = vmatprep.subr.bf16.mxu1 %v4909_v29 }
  0xcd   :  { %3877 = vmatpush1.bf16.msra.mxu0 %v4906_v27  ;;  %v5833_v26 = vsub.s32 0, %v5822_v20  ;;  %v421_v29 = vsub.s32 1, %v5822_v20  ;;  %v5841_v32 = vsub.s32 4, %v5822_v20  ;;  %v5856_v39 = vsub.s32 2, %v5822_v20 }
  0xce   :  { %3878 = vmatprep.subr.bf16.mxu0 %v4915_v34  ;;  %v429_v40 = vsub.s32 3, %v5822_v20 }
  0xcf   :  { %4049 = vmatpush1.bf16.msra.mxu1 %v4908_v28  ;;  %v5835_v28 = vld [vmem:[#allocation9] sm:$0xff] }
  0xd0   :  { %4050 = vmatprep.subr.bf16.mxu1 %v4917_v37  ;;  %v418_v31 = vrot.slane %v5835_v28, %v5833_v26  ;;  %v422_v34 = vrot.slane %v5835_v28, %v421_v29  ;;  %v5851_v37 = vld [vmem:[#allocation11 + $0x460] sm:$0xff]  ;;  %v434_v46 = vrot.slane %v5835_v28, %v5841_v32 }
  0xd1   :  { %3879 = vmatpush1.bf16.msra.mxu0 %v4914_v33  ;;  %v437_v33 = vsub.s32 5, %v5822_v20 }
  0xd2   :  { %3880 = vmatprep.subr.bf16.mxu0 %v4923_v41 }
  0xd3   :  { %4051 = vmatpush1.bf16.msra.mxu1 %v4916_v36  ;;  %v5849_v36 = vld [vmem:[#allocation11 + $0x440] sm:$0xff]  ;;  %v438_v47 = vrot.slane %v5835_v28, %v437_v33 }
  0xd4   :  { %4052 = vmatprep.subr.bf16.mxu1 %v4925_v45 }
  0xd5   :  { %3881 = vmatpush1.bf16.msra.mxu0 %v4922_v43 }
  0xd6   :  { %3882 = vmatprep.subr.bf16.mxu0 %v4931_v50 }
  0xd7   :  { %4053 = vmatpush1.bf16.msra.mxu1 %v4924_v44 }
  0xd8   :  { %4054 = vmatprep.subr.bf16.mxu1 %v4933_v53  ;;  %v4963_v53 = vcombine.high %v5849_v36, %v5851_v37 }
  0xd9   :  { %3883 = vmatpush1.bf16.msra.mxu0 %v4930_v49 }
  0xda   :  { %3884 = vmatprep.subr.bf16.mxu0 %v4939_v57 }
  0xdb   :  { %4055 = vmatpush1.bf16.msra.mxu1 %v4932_v52  ;;  %v4962_v52 = vcombine.low %v5849_v36, %v5851_v37 }
  0xdc   :  { %4056 = vmatprep.subr.bf16.mxu1 %v4941_v61  ;;  %v430_v61 = vrot.slane %v5835_v28, %v429_v40 }
  0xdd   :  { %3885 = vmatpush1.bf16.msra.mxu0 %v4938_v59  ;;  %v5872_v59 = vld [vmem:[#allocation11 + $0x480] sm:$0xff] }
  0xde   :  { %3886 = vmatprep.subr.bf16.mxu0 %v4947_v2  ;;  %v5881_v2 = vld [vmem:[#allocation11 + $0x488] sm:$0xff] }
  0xdf   :  { %4057 = vmatpush1.bf16.msra.mxu1 %v4940_v60  ;;  %v426_v60 = vrot.slane %v5835_v28, %v5856_v39 }
  0xe0   :  { %4058 = vmatprep.subr.bf16.mxu1 %v4949_v6 }
  0xe1   :  { %3887 = vmatpush1.bf16.msra.mxu0 %v4946_v4  ;;  %v5886_v4 = vsub.s32 6, %v5822_v20 }
  0xe2   :  { %3899 = vmatprep.subr.bf16.mxu0 %v4955_v10 }
  0xe3   :  { %4059 = vmatpush1.bf16.msra.mxu1 %v4948_v5  ;;  %v445_v5 = vsub.s32 7, %v5822_v20 }
  0xe4   :  { %4071 = vmatprep.subr.bf16.mxu1 %v4957_v14  ;;  %v4964_v14 = vcombine.low %v5868_v54, %v5870_v55 }
 0x15f   :  { %v259_v15 = vpop.f32.mrb[0].mxu0 }
 0x160   :  { %v261_v16 = vpop.f32.mrb[1].mxu0  ;;  %v405_v43 = vrot.slane %v259_v15, 7 }
 0x161   :  { %v263_v18 = vpop.f32.mrb[2].mxu0  ;;  %v5824_v21 = vpop.f32.mrb[0].mxu1  ;;  %v406_v49 = vrot.slane %v261_v16, 7 }
 0x162   :  { %v264_v19 = vpop.f32.mrb[3].mxu0  ;;  %v5826_v22 = vpop.f32.mrb[1].mxu1  ;;  %v4965_v18 = vcombine.high %v5868_v54, %v5870_v55 }
 0x163   :  { %v304_v24 = vpop.f32.mrb[2].mxu1  ;;  %v408_v19 = vrot.slane %v5826_v22, 7 }
 0x164   :  { %v305_v1 = vpop.f32.mrb[3].mxu1 }
 0x167   :  { %v5828_v23 = vpop.f32.mrb[4].mxu0 }
 0x168   :  { %v5830_v25 = vpop.f32.mrb[5].mxu0 }
 0x169   :  { %v345_v27 = vpop.f32.mrb[6].mxu0  ;;  %v5847_v35 = vpop.f32.mrb[4].mxu1 }
 0x16a   :  { %v346_v30 = vpop.f32.mrb[7].mxu0  ;;  %v5853_v38 = vpop.f32.mrb[5].mxu1  ;;  %v4971_v27 = vcombine.high %v5872_v59, %v5879_v0 }
 0x16b   :  { %v386_v42 = vpop.f32.mrb[6].mxu1  ;;  %v4973_v30 = vcombine.high %v5881_v2, %v5883_v3  ;;  %v412_v11 = vrot.slane %v5853_v38, 7 }
 0x16c   :  { %v387_v48 = vpop.f32.mrb[7].mxu1 }
 0x16d   :  { %v446_v48 = vrot.slane %v5835_v28, %v445_v5 }
 0x16f   :  { %v572_v41 = vpop.f32.mrb[8].mxu0 }
 0x170   :  { %v573_v44 = vadd.f32 %v572_v41, %v418_v31  ;;  %v574_v45 = vpop.f32.mrb[9].mxu0 }
 0x171   :  { %v575_v50 = vadd.f32 %v574_v45, %v422_v34  ;;  %v576_v51 = vpop.f32.mrb[10].mxu0  ;;  %v613_v24 = vpop.f32.mrb[8].mxu1  ;;  %v442_v45 = vrot.slane %v5835_v28, %v5886_v4 }
 0x172   :  { %v702_v56 = vadd.f32 %v573_v44, %v259_v15  ;;  %v718_v57 = vadd.f32 %v573_v44, %v405_v43  ;;  %v577_v58 = vpop.f32.mrb[11].mxu0  ;;  %v407_v15 = vrot.slane %v5824_v21, 7  ;;  %v614_v31 = vadd.f32 %v613_v24, %v426_v60  ;;  %v615_v34 = vpop.f32.mrb[9].mxu1  ;;  %v894_v24 = vld [vmem:[#allocation11 + $0x4c0] sm:$0xff] }
 0x173   :  { %v703_v62 = vadd.f32 %v575_v50, %v261_v16  ;;  %v719_v63 = vadd.f32 %v575_v50, %v406_v49  ;;  %v616_v43 = vadd.f32 %v615_v34, %v430_v61  ;;  %v617_v44 = vpop.f32.mrb[10].mxu1  ;;  %v409_v49 = vrot.slane %v5828_v23, 7 }
 0x174   :  { %v710_v6 = vmax.f32 %v702_v56, 0.0  ;;  %v726_v10 = vmax.f32 %v718_v57, 0.0  ;;  %v704_v56 = vadd.f32 %v614_v31, %v5824_v21  ;;  %v720_v57 = vadd.f32 %v614_v31, %v407_v15  ;;  %v618_v58 = vpop.f32.mrb[11].mxu1 }
 0x175   :  { %v711_v16 = vmax.f32 %v703_v62, 0.0  ;;  %v727_v17 = vmax.f32 %v719_v63, 0.0  ;;  %v410_v60 = vrot.slane %v5830_v25, 7  ;;  %v705_v61 = vadd.f32 %v616_v43, %v5826_v22  ;;  %v906_v58 = vld [vmem:[#allocation11 + $0x520] sm:$0xff] }
 0x176   :  { %v5895_v1 = vpack.c.bf16 %v726_v10, %v710_v6  ;;  %v721_v63 = vadd.f32 %v616_v43, %v408_v19  ;;  %v712_v21 = vmax.f32 %v704_v56, 0.0  ;;  %v411_v31 = vrot.slane %v5847_v35, 7 }
 0x177   :  { %v5901_v41 = vpack.c.bf16 %v727_v17, %v711_v16  ;;  %v654_v42 = vpop.f32.mrb[12].mxu0  ;;  %v713_v22 = vmax.f32 %v705_v61, 0.0  ;;  %v910_v61 = vld [vmem:[#allocation11 + $0x540] sm:$0xff] }
 0x178   :  { %v655_v50 = vadd.f32 %v654_v42, %v434_v46  ;;  %v656_v51 = vpop.f32.mrb[13].mxu0  ;;  %v728_v46 = vmax.f32 %v720_v57, 0.0 }
 0x179   :  { %v657_v62 = vadd.f32 %v656_v51, %v438_v47  ;;  %3888 = vmatprep.mubr.bf16.mxu0 %v5901_v41  ;;  %4060 = vmatprep.mubr.bf16.mxu1 %v5901_v41  ;;  %v658_v6 = vpop.f32.mrb[14].mxu0  ;;  %v695_v42 = vpop.f32.mrb[12].mxu1 }
 0x17a   :  { %v706_v28 = vadd.f32 %v655_v50, %v5828_v23  ;;  %v722_v10 = vadd.f32 %v655_v50, %v409_v49  ;;  %3889 = vmatmul.mubr.bf16.vlgmr.msra.gmra.mrb[16].mxu0 %v5895_v1  ;;  %4061 = vmatmul.mubr.bf16.vlgmr.msra.gmra.mrb[16].mxu1 %v5895_v1  ;;  %v659_v15 = vpop.f32.mrb[15].mxu0  ;;  %v729_v23 = vmax.f32 %v721_v63, 0.0  ;;  %v5928_v34 = vpack.c.bf16 %v728_v46, %v712_v21  ;;  %v697_v49 = vpop.f32.mrb[13].mxu1  ;;  %v911_v6 = vld [vmem:[#allocation11 + $0x548] sm:$0xff] }
 0x17b   :  { %v707_v47 = vadd.f32 %v657_v62, %v5830_v25  ;;  %v723_v16 = vadd.f32 %v657_v62, %v410_v60  ;;  %3900 = vmatpush1.bf16.msra.mxu0 %v4954_v12  ;;  %4072 = vmatpush1.bf16.msra.mxu1 %v4956_v13  ;;  %v898_v25 = vld [vmem:[#allocation11 + $0x4e0] sm:$0xff]  ;;  %v895_v12 = vld [vmem:[#allocation11 + $0x4c8] sm:$0xff]  ;;  %v696_v44 = vadd.f32 %v695_v42, %v442_v45  ;;  %v699_v57 = vpop.f32.mrb[14].mxu1 }
 0x17c   :  { %v714_v17 = vmax.f32 %v706_v28, 0.0  ;;  %v730_v19 = vmax.f32 %v722_v10, 0.0  ;;  %3901 = vmatprep.subr.bf16.mxu0 %v4963_v53  ;;  %4073 = vmatprep.subr.bf16.mxu1 %v4965_v18  ;;  %v5931_v13 = vpack.c.bf16 %v729_v23, %v713_v22  ;;  %v4970_v53 = vcombine.low %v5872_v59, %v5879_v0  ;;  %v902_v0 = vld [vmem:[#allocation11 + $0x500] sm:$0xff]  ;;  %v700_v45 = vpop.f32.mrb[15].mxu1  ;;  %v903_v60 = vld [vmem:[#allocation11 + $0x508] sm:$0xff] }
 0x17d   :  { %v715_v7 = vmax.f32 %v707_v47, 0.0  ;;  %v731_v8 = vmax.f32 %v723_v16, 0.0  ;;  %v4972_v18 = vcombine.low %v5881_v2, %v5883_v3  ;;  %v4979_v51 = vcombine.high %v894_v24, %v898_v25  ;;  %v907_v62 = vld [vmem:[#allocation11 + $0x528] sm:$0xff]  ;;  %v918_v16 = vld [vmem:[#allocation11 + $0x580] sm:$0xff] }
 0x17e   :  { %v5933_v43 = vpack.c.bf16 %v730_v19, %v714_v17  ;;  %v698_v56 = vadd.f32 %v697_v49, %v446_v48  ;;  %v4981_v59 = vcombine.high %v895_v12, %v899_v9  ;;  %v708_v2 = vadd.f32 %v696_v44, %v5847_v35  ;;  %3931 = vmatprep.mubr.bf16.mxu0 %v5931_v13  ;;  %v915_v28 = vld [vmem:[#allocation11 + $0x568] sm:$0xff]  ;;  %v922_v22 = vld [vmem:[#allocation11 + $0x5a0] sm:$0xff] }
 0x17f   :  { %v5939_v50 = vpack.c.bf16 %v731_v8, %v715_v7  ;;  %3902 = vmatpush1.bf16.msra.mxu0 %v4962_v52  ;;  %4074 = vmatpush1.bf16.msra.mxu1 %v4964_v14  ;;  %v724_v3 = vadd.f32 %v696_v44, %v411_v31  ;;  %v4978_v55 = vcombine.low %v894_v24, %v898_v25  ;;  %v919_v23 = vld [vmem:[#allocation11 + $0x588] sm:$0xff]  ;;  %v926_v7 = vld [vmem:[#allocation11 + $0x5c0] sm:$0xff] }
 0x180   :  { %3903 = vmatprep.subr.bf16.mxu0 %v4971_v27  ;;  %4075 = vmatprep.subr.bf16.mxu1 %v4973_v30  ;;  %v709_v36 = vadd.f32 %v698_v56, %v5853_v38  ;;  %v725_v37 = vadd.f32 %v698_v56, %v412_v11  ;;  %v716_v52 = vmax.f32 %v708_v2, 0.0  ;;  %v4980_v14 = vcombine.low %v895_v12, %v899_v9  ;;  %v914_v38 = vld [vmem:[#allocation11 + $0x560] sm:$0xff]  ;;  %v923_v17 = vld [vmem:[#allocation11 + $0x5a8] sm:$0xff] }
 0x181   :  { %4103 = vmatprep.mubr.bf16.mxu1 %v5931_v13  ;;  %v732_v54 = vmax.f32 %v724_v3, 0.0  ;;  %v4987_v30 = vcombine.high %v902_v0, %v906_v58  ;;  %v4989_v48 = vcombine.high %v903_v60, %v907_v62  ;;  %v4986_v21 = vcombine.low %v902_v0, %v906_v58  ;;  %v930_v8 = vld [vmem:[#allocation11 + $0x5e0] sm:$0xff]  ;;  %v927_v12 = vld [vmem:[#allocation11 + $0x5c8] sm:$0xff] }
 0x182   :  { %v717_v27 = vmax.f32 %v709_v36, 0.0  ;;  %v733_v35 = vmax.f32 %v725_v37, 0.0  ;;  %v4988_v46 = vcombine.low %v903_v60, %v907_v62  ;;  %v4995_v15 = vcombine.high %v910_v61, %v914_v38  ;;  %v931_v9 = vld [vmem:[#allocation11 + $0x5e8] sm:$0xff]  ;;  %v934_v44 = vld [vmem:[#allocation11 + $0x600] sm:$0xff] }
 0x183   :  { %3904 = vmatpush1.bf16.msra.mxu0 %v4970_v53  ;;  %4076 = vmatpush1.bf16.msra.mxu1 %v4972_v18  ;;  %v5951_v63 = vpack.c.bf16 %v732_v54, %v716_v52  ;;  %v4997_v47 = vcombine.high %v911_v6, %v915_v28  ;;  %v4994_v19 = vcombine.low %v910_v61, %v914_v38  ;;  %v938_v49 = vld [vmem:[#allocation11 + $0x620] sm:$0xff]  ;;  %v939_v56 = vld [vmem:[#allocation11 + $0x628] sm:$0xff] }
 0x184   :  { %3905 = vmatprep.subr.bf16.mxu0 %v4979_v51  ;;  %4077 = vmatprep.subr.bf16.mxu1 %v4981_v59  ;;  %v5953_v10 = vpack.c.bf16 %v733_v35, %v717_v27  ;;  %v4996_v24 = vcombine.low %v911_v6, %v915_v28  ;;  %v5003_v25 = vcombine.high %v918_v16, %v922_v22  ;;  %v935_v51 = vld [vmem:[#allocation11 + $0x608] sm:$0xff]  ;;  %v942_v3 = vld [vmem:[#allocation11 + $0x640] sm:$0xff] }
 0x185   :  { %v5005_v31 = vcombine.high %v919_v23, %v923_v17  ;;  %v5002_v11 = vcombine.low %v918_v16, %v922_v22  ;;  %v5004_v42 = vcombine.low %v919_v23, %v923_v17  ;;  %v5011_v53 = vcombine.high %v926_v7, %v930_v8  ;;  %v946_v45 = vld [vmem:[#allocation11 + $0x660] sm:$0xff]  ;;  %v943_v58 = vld [vmem:[#allocation11 + $0x648] sm:$0xff] }
 0x186   :  { %v5013_v18 = vcombine.high %v927_v12, %v931_v9  ;;  %v5010_v57 = vcombine.low %v926_v7, %v930_v8  ;;  %v5012_v59 = vcombine.low %v927_v12, %v931_v9  ;;  %v5019_v0 = vcombine.high %v934_v44, %v938_v49  ;;  %v947_v60 = vld [vmem:[#allocation11 + $0x668] sm:$0xff]  ;;  %v950_v54 = vld [vmem:[#allocation11 + $0x680] sm:$0xff] }
 0x187   :  { %3906 = vmatpush1.bf16.msra.mxu0 %v4978_v55  ;;  %4078 = vmatpush1.bf16.msra.mxu1 %v4980_v14  ;;  %v5021_v2 = vcombine.high %v935_v51, %v939_v56  ;;  %v5018_v62 = vcombine.low %v934_v44, %v938_v49  ;;  %v5020_v36 = vcombine.low %v935_v51, %v939_v56  ;;  %v954_v55 = vld [vmem:[#allocation11 + $0x6a0] sm:$0xff]  ;;  %v951_v14 = vld [vmem:[#allocation11 + $0x688] sm:$0xff] }
 0x188   :  { %3907 = vmatprep.subr.bf16.mxu0 %v4987_v30  ;;  %4079 = vmatprep.subr.bf16.mxu1 %v4989_v48  ;;  %v5027_v37 = vcombine.high %v942_v3, %v946_v45  ;;  %v5029_v52 = vcombine.high %v943_v58, %v947_v60  ;;  %v955_v27 = vld [vmem:[#allocation11 + $0x6a8] sm:$0xff]  ;;  %v5026_v35 = vcombine.low %v942_v3, %v946_v45  ;;  %v958_v38 = vld [vmem:[#allocation11 + $0x6c0] sm:$0xff] }
 0x189   :  { %v5028_v30 = vcombine.low %v943_v58, %v947_v60  ;;  %v5035_v48 = vcombine.high %v950_v54, %v954_v55  ;;  %v5037_v61 = vcombine.high %v951_v14, %v955_v27  ;;  %v962_v6 = vld [vmem:[#allocation11 + $0x6e0] sm:$0xff]  ;;  %v959_v28 = vld [vmem:[#allocation11 + $0x6c8] sm:$0xff] }
 0x18a   :  { %v966_v22 = vld [vmem:[#allocation11 + $0x700] sm:$0xff]  ;;  %v967_v17 = vld [vmem:[#allocation11 + $0x708] sm:$0xff] }
 0x18b   :  { %3908 = vmatpush1.bf16.msra.mxu0 %v4986_v21  ;;  %4080 = vmatpush1.bf16.msra.mxu1 %v4988_v46  ;;  %v963_v21 = vld [vmem:[#allocation11 + $0x6e8] sm:$0xff]  ;;  %v5034_v46 = vcombine.low %v950_v54, %v954_v55  ;;  %v970_v23 = vld [vmem:[#allocation11 + $0x720] sm:$0xff] }
 0x18c   :  { %3909 = vmatprep.subr.bf16.mxu0 %v4995_v15  ;;  %4081 = vmatprep.subr.bf16.mxu1 %v4997_v47  ;;  %v5036_v15 = vcombine.low %v951_v14, %v955_v27  ;;  %v5043_v47 = vcombine.high %v958_v38, %v962_v6  ;;  %v5045_v16 = vcombine.high %v959_v28, %v963_v21  ;;  %v974_v8 = vld [vmem:[#allocation11 + $0x740] sm:$0xff]  ;;  %v975_v9 = vld [vmem:[#allocation11 + $0x748] sm:$0xff] }
 0x18d   :  { %v978_v12 = vld [vmem:[#allocation11 + $0x760] sm:$0xff]  ;;  %v983_v56 = vld [vmem:[#allocation11 + $0x788] sm:$0xff] }
 0x18e   :  { %v982_v49 = vld [vmem:[#allocation11 + $0x780] sm:$0xff]  ;;  %v991_v60 = vld [vmem:[#allocation11 + $0x7c8] sm:$0xff] }
 0x18f   :  { %3910 = vmatpush1.bf16.msra.mxu0 %v4994_v19  ;;  %4082 = vmatpush1.bf16.msra.mxu1 %v4996_v24  ;;  %v971_v19 = vld [vmem:[#allocation11 + $0x728] sm:$0xff]  ;;  %v5042_v24 = vcombine.low %v958_v38, %v962_v6  ;;  %v986_v51 = vld [vmem:[#allocation11 + $0x7a0] sm:$0xff] }
 0x190   :  { %3911 = vmatprep.subr.bf16.mxu0 %v5003_v25  ;;  %4083 = vmatprep.subr.bf16.mxu1 %v5005_v31  ;;  %v5044_v25 = vcombine.low %v959_v28, %v963_v21  ;;  %v5051_v31 = vcombine.high %v966_v22, %v970_v23  ;;  %v5053_v7 = vcombine.high %v967_v17, %v971_v19  ;;  %v990_v45 = vld [vmem:[#allocation11 + $0x7c0] sm:$0xff]  ;;  %v999_v27 = vld [vmem:[#allocation11 + $0x808] sm:$0xff] }
 0x191   :  { %v994_v58 = vld [vmem:[#allocation11 + $0x7e0] sm:$0xff]  ;;  %v1007_v21 = vld [vmem:[#allocation11 + $0x848] sm:$0xff] }
 0x192   :  { %v998_v55 = vld [vmem:[#allocation11 + $0x800] sm:$0xff] }
 0x193   :  { %3912 = vmatpush1.bf16.msra.mxu0 %v5002_v11  ;;  %4084 = vmatpush1.bf16.msra.mxu1 %v5004_v42  ;;  %v979_v11 = vld [vmem:[#allocation11 + $0x768] sm:$0xff]  ;;  %v5050_v42 = vcombine.low %v966_v22, %v970_v23  ;;  %v1002_v14 = vld [vmem:[#allocation11 + $0x820] sm:$0xff] }
 0x194   :  { %3913 = vmatprep.subr.bf16.mxu0 %v5011_v53  ;;  %4085 = vmatprep.subr.bf16.mxu1 %v5013_v18  ;;  %v5052_v53 = vcombine.low %v967_v17, %v971_v19  ;;  %v5059_v18 = vcombine.high %v974_v8, %v978_v12  ;;  %v5061_v44 = vcombine.high %v975_v9, %v979_v11  ;;  %v1006_v6 = vld [vmem:[#allocation11 + $0x840] sm:$0xff]  ;;  %v1015_v19 = vld [vmem:[#allocation11 + $0x888] sm:$0xff] }
 0x195   :  { %v1010_v28 = vld [vmem:[#allocation11 + $0x860] sm:$0xff] }
 0x196   :  { %v1014_v23 = vld [vmem:[#allocation11 + $0x880] sm:$0xff] }
 0x197   :  { %3914 = vmatpush1.bf16.msra.mxu0 %v5010_v57  ;;  %4086 = vmatpush1.bf16.msra.mxu1 %v5012_v59  ;;  %v987_v57 = vld [vmem:[#allocation11 + $0x7a8] sm:$0xff]  ;;  %v5058_v59 = vcombine.low %v974_v8, %v978_v12  ;;  %v1018_v17 = vld [vmem:[#allocation11 + $0x8a0] sm:$0xff] }
 0x198   :  { %3915 = vmatprep.subr.bf16.mxu0 %v5019_v0  ;;  %4087 = vmatprep.subr.bf16.mxu1 %v5021_v2  ;;  %v5060_v0 = vcombine.low %v975_v9, %v979_v11  ;;  %v5067_v2 = vcombine.high %v982_v49, %v986_v51  ;;  %v5069_v3 = vcombine.high %v983_v56, %v987_v57  ;;  %v1022_v12 = vld [vmem:[#allocation11 + $0x8c0] sm:$0xff]  ;;  %v1023_v11 = vld [vmem:[#allocation11 + $0x8c8] sm:$0xff] }
 0x199   :  { %v1026_v9 = vld [vmem:[#allocation11 + $0x8e0] sm:$0xff] }
 0x19b   :  { %3916 = vmatpush1.bf16.msra.mxu0 %v5018_v62  ;;  %4088 = vmatpush1.bf16.msra.mxu1 %v5020_v36  ;;  %v995_v62 = vld [vmem:[#allocation11 + $0x7e8] sm:$0xff]  ;;  %v5066_v36 = vcombine.low %v982_v49, %v986_v51  ;;  %v1030_v51 = vld [vmem:[#allocation11 + $0x900] sm:$0xff] }
 0x19c   :  { %3917 = vmatprep.subr.bf16.mxu0 %v5027_v37  ;;  %4089 = vmatprep.subr.bf16.mxu1 %v5029_v52  ;;  %v5068_v37 = vcombine.low %v983_v56, %v987_v57  ;;  %v5075_v52 = vcombine.high %v990_v45, %v994_v58  ;;  %v5077_v54 = vcombine.high %v991_v60, %v995_v62  ;;  %v1034_v56 = vld [vmem:[#allocation11 + $0x920] sm:$0xff]  ;;  %v1031_v57 = vld [vmem:[#allocation11 + $0x908] sm:$0xff] }
 0x19f   :  { %3918 = vmatpush1.bf16.msra.mxu0 %v5026_v35  ;;  %4090 = vmatpush1.bf16.msra.mxu1 %v5028_v30  ;;  %v1003_v35 = vld [vmem:[#allocation11 + $0x828] sm:$0xff]  ;;  %v5074_v30 = vcombine.low %v990_v45, %v994_v58  ;;  %v1038_v58 = vld [vmem:[#allocation11 + $0x940] sm:$0xff] }
 0x1a0   :  { %3919 = vmatprep.subr.bf16.mxu0 %v5035_v48  ;;  %4091 = vmatprep.subr.bf16.mxu1 %v5037_v61  ;;  %v5076_v48 = vcombine.low %v991_v60, %v995_v62  ;;  %v5083_v61 = vcombine.high %v998_v55, %v1002_v14  ;;  %v5085_v38 = vcombine.high %v999_v27, %v1003_v35  ;;  %v1042_v60 = vld [vmem:[#allocation11 + $0x960] sm:$0xff]  ;;  %v1039_v62 = vld [vmem:[#allocation11 + $0x948] sm:$0xff] }
 0x1a3   :  { %3920 = vmatpush1.bf16.msra.mxu0 %v5034_v46  ;;  %4092 = vmatpush1.bf16.msra.mxu1 %v5036_v15  ;;  %v1011_v46 = vld [vmem:[#allocation11 + $0x868] sm:$0xff]  ;;  %v5082_v15 = vcombine.low %v998_v55, %v1002_v14  ;;  %v1046_v14 = vld [vmem:[#allocation11 + $0x980] sm:$0xff] }
 0x1a4   :  { %3921 = vmatprep.subr.bf16.mxu0 %v5043_v47  ;;  %4093 = vmatprep.subr.bf16.mxu1 %v5045_v16  ;;  %v5084_v47 = vcombine.low %v999_v27, %v1003_v35  ;;  %v5091_v16 = vcombine.high %v1006_v6, %v1010_v28  ;;  %v5093_v22 = vcombine.high %v1007_v21, %v1011_v46  ;;  %v1050_v27 = vld [vmem:[#allocation11 + $0x9a0] sm:$0xff]  ;;  %v1047_v35 = vld [vmem:[#allocation11 + $0x988] sm:$0xff] }
 0x1a7   :  { %3922 = vmatpush1.bf16.msra.mxu0 %v5042_v24  ;;  %4094 = vmatpush1.bf16.msra.mxu1 %v5044_v25  ;;  %v1019_v24 = vld [vmem:[#allocation11 + $0x8a8] sm:$0xff]  ;;  %v5090_v25 = vcombine.low %v1006_v6, %v1010_v28  ;;  %v1054_v28 = vld [vmem:[#allocation11 + $0x9c0] sm:$0xff] }
 0x1a8   :  { %3923 = vmatprep.subr.bf16.mxu0 %v5051_v31  ;;  %4095 = vmatprep.subr.bf16.mxu1 %v5053_v7  ;;  %v5092_v31 = vcombine.low %v1007_v21, %v1011_v46  ;;  %v5099_v7 = vcombine.high %v1014_v23, %v1018_v17  ;;  %v5101_v8 = vcombine.high %v1015_v19, %v1019_v24  ;;  %v1058_v21 = vld [vmem:[#allocation11 + $0x9e0] sm:$0xff]  ;;  %v1055_v46 = vld [vmem:[#allocation11 + $0x9c8] sm:$0xff] }
 0x1ab   :  { %3924 = vmatpush1.bf16.msra.mxu0 %v5050_v42  ;;  %4096 = vmatpush1.bf16.msra.mxu1 %v5052_v53  ;;  %v1027_v42 = vld [vmem:[#allocation11 + $0x8e8] sm:$0xff]  ;;  %v5098_v53 = vcombine.low %v1014_v23, %v1018_v17  ;;  %v1062_v17 = vld [vmem:[#allocation11 + $0xa00] sm:$0xff] }
 0x1ac   :  { %3925 = vmatprep.subr.bf16.mxu0 %v5059_v18  ;;  %4097 = vmatprep.subr.bf16.mxu1 %v5061_v44  ;;  %v5100_v18 = vcombine.low %v1015_v19, %v1019_v24  ;;  %v5107_v44 = vcombine.high %v1022_v12, %v1026_v9  ;;  %v5109_v49 = vcombine.high %v1023_v11, %v1027_v42  ;;  %v1066_v19 = vld [vmem:[#allocation11 + $0xa20] sm:$0xff]  ;;  %v1063_v24 = vld [vmem:[#allocation11 + $0xa08] sm:$0xff] }
 0x1af   :  { %3926 = vmatpush1.bf16.msra.mxu0 %v5058_v59  ;;  %4098 = vmatpush1.bf16.msra.mxu1 %v5060_v0  ;;  %v1035_v59 = vld [vmem:[#allocation11 + $0x928] sm:$0xff]  ;;  %v5106_v0 = vcombine.low %v1022_v12, %v1026_v9  ;;  %v1070_v9 = vld [vmem:[#allocation11 + $0xa40] sm:$0xff] }
 0x1b0   :  { %3927 = vmatprep.subr.bf16.mxu0 %v5067_v2  ;;  %4099 = vmatprep.subr.bf16.mxu1 %v5069_v3  ;;  %v5108_v2 = vcombine.low %v1023_v11, %v1027_v42  ;;  %v5115_v3 = vcombine.high %v1030_v51, %v1034_v56  ;;  %v5117_v45 = vcombine.high %v1031_v57, %v1035_v59  ;;  %v1074_v11 = vld [vmem:[#allocation11 + $0xa60] sm:$0xff]  ;;  %v1071_v42 = vld [vmem:[#allocation11 + $0xa48] sm:$0xff] }
 0x1b3   :  { %3928 = vmatpush1.bf16.msra.mxu0 %v5066_v36  ;;  %4100 = vmatpush1.bf16.msra.mxu1 %v5068_v37  ;;  %v1043_v36 = vld [vmem:[#allocation11 + $0x968] sm:$0xff]  ;;  %v5114_v37 = vcombine.low %v1030_v51, %v1034_v56  ;;  %v1078_v56 = vld [vmem:[#allocation11 + $0xa80] sm:$0xff] }
 0x1b4   :  { %3929 = vmatprep.subr.bf16.mxu0 %v5075_v52  ;;  %4101 = vmatprep.subr.bf16.mxu1 %v5077_v54  ;;  %v5116_v52 = vcombine.low %v1031_v57, %v1035_v59  ;;  %v5123_v54 = vcombine.high %v1038_v58, %v1042_v60  ;;  %v5125_v55 = vcombine.high %v1039_v62, %v1043_v36  ;;  %v1082_v57 = vld [vmem:[#allocation11 + $0xaa0] sm:$0xff]  ;;  %v1079_v59 = vld [vmem:[#allocation11 + $0xa88] sm:$0xff] }
 0x1b7   :  { %3930 = vmatpush1.bf16.msra.mxu0 %v5074_v30  ;;  %4102 = vmatpush1.bf16.msra.mxu1 %v5076_v48  ;;  %v1051_v30 = vld [vmem:[#allocation11 + $0x9a8] sm:$0xff]  ;;  %v5122_v48 = vcombine.low %v1038_v58, %v1042_v60  ;;  %v1086_v60 = vld [vmem:[#allocation11 + $0xac0] sm:$0xff] }
 0x1b8   :  { %3942 = vmatprep.subr.bf16.mxu0 %v5083_v61  ;;  %4114 = vmatprep.subr.bf16.mxu1 %v5085_v38  ;;  %v5124_v61 = vcombine.low %v1039_v62, %v1043_v36  ;;  %v5131_v38 = vcombine.high %v1046_v14, %v1050_v27  ;;  %v5133_v6 = vcombine.high %v1047_v35, %v1051_v30  ;;  %v1090_v62 = vld [vmem:[#allocation11 + $0xae0] sm:$0xff]  ;;  %v1087_v36 = vld [vmem:[#allocation11 + $0xac8] sm:$0xff] }
 0x1ba   :  { %3932 = vmatmul.mubr.bf16.vlgmr.msra.gmra.mrb[16].mxu0 %v5928_v34  ;;  %4104 = vmatmul.mubr.bf16.vlgmr.msra.gmra.mrb[16].mxu1 %v5928_v34 }
 0x1bb   :  { %3943 = vmatpush1.bf16.msra.mxu0 %v5082_v15  ;;  %3974 = vmatprep.mubr.bf16.mxu0 %v5939_v50  ;;  %v1059_v15 = vld [vmem:[#allocation11 + $0x9e8] sm:$0xff] }
 0x1bc   :  { %4115 = vmatpush1.bf16.msra.mxu1 %v5084_v47  ;;  %4146 = vmatprep.mubr.bf16.mxu1 %v5939_v50  ;;  %v5130_v47 = vcombine.low %v1046_v14, %v1050_v27  ;;  %v5141_v23 = vcombine.high %v1055_v46, %v1059_v15  ;;  %v1094_v27 = vld [vmem:[#allocation11 + $0xb00] sm:$0xff] }
 0x1bd   :  { %3944 = vmatprep.subr.bf16.mxu0 %v5091_v16  ;;  %4116 = vmatprep.subr.bf16.mxu1 %v5093_v22  ;;  %v5132_v16 = vcombine.low %v1047_v35, %v1051_v30  ;;  %v5139_v22 = vcombine.high %v1054_v28, %v1058_v21  ;;  %v1098_v35 = vld [vmem:[#allocation11 + $0xb20] sm:$0xff]  ;;  %v1095_v30 = vld [vmem:[#allocation11 + $0xb08] sm:$0xff] }
 0x1bf   :  { %3945 = vmatpush1.bf16.msra.mxu0 %v5090_v25  ;;  %v1067_v25 = vld [vmem:[#allocation11 + $0xa28] sm:$0xff] }
 0x1c0   :  { %4117 = vmatpush1.bf16.msra.mxu1 %v5092_v31  ;;  %3946 = vmatprep.subr.bf16.mxu0 %v5099_v7  ;;  %v5138_v31 = vcombine.low %v1054_v28, %v1058_v21  ;;  %v5140_v7 = vcombine.low %v1055_v46, %v1059_v15  ;;  %v5149_v12 = vcombine.high %v1063_v24, %v1067_v25  ;;  %v1102_v21 = vld [vmem:[#allocation11 + $0xb40] sm:$0xff]  ;;  %v1103_v15 = vld [vmem:[#allocation11 + $0xb48] sm:$0xff] }
 0x1c1   :  { %4118 = vmatprep.subr.bf16.mxu1 %v5101_v8  ;;  %v5147_v8 = vcombine.high %v1062_v17, %v1066_v19  ;;  %v1106_v46 = vld [vmem:[#allocation11 + $0xb60] sm:$0xff] }
 0x1c3   :  { %3947 = vmatpush1.bf16.msra.mxu0 %v5098_v53  ;;  %v1075_v53 = vld [vmem:[#allocation11 + $0xa68] sm:$0xff] }
 0x1c4   :  { %4119 = vmatpush1.bf16.msra.mxu1 %v5100_v18  ;;  %3948 = vmatprep.subr.bf16.mxu0 %v5107_v44  ;;  %v5146_v18 = vcombine.low %v1062_v17, %v1066_v19  ;;  %v5148_v44 = vcombine.low %v1063_v24, %v1067_v25  ;;  %v5157_v51 = vcombine.high %v1071_v42, %v1075_v53  ;;  %v1110_v19 = vld [vmem:[#allocation11 + $0xb80] sm:$0xff]  ;;  %v1111_v25 = vld [vmem:[#allocation11 + $0xb88] sm:$0xff] }
 0x1c5   :  { %4120 = vmatprep.subr.bf16.mxu1 %v5109_v49  ;;  %v5155_v49 = vcombine.high %v1070_v9, %v1074_v11  ;;  %v1114_v24 = vld [vmem:[#allocation11 + $0xba0] sm:$0xff] }
 0x1c7   :  { %3949 = vmatpush1.bf16.msra.mxu0 %v5106_v0  ;;  %v1083_v0 = vld [vmem:[#allocation11 + $0xaa8] sm:$0xff] }
 0x1c8   :  { %4121 = vmatpush1.bf16.msra.mxu1 %v5108_v2  ;;  %3950 = vmatprep.subr.bf16.mxu0 %v5115_v3  ;;  %v5154_v2 = vcombine.low %v1070_v9, %v1074_v11  ;;  %v5156_v3 = vcombine.low %v1071_v42, %v1075_v53  ;;  %v5165_v58 = vcombine.high %v1079_v59, %v1083_v0  ;;  %v1118_v11 = vld [vmem:[#allocation11 + $0xbc0] sm:$0xff]  ;;  %v1119_v53 = vld [vmem:[#allocation11 + $0xbc8] sm:$0xff] }
 0x1c9   :  { %4122 = vmatprep.subr.bf16.mxu1 %v5117_v45  ;;  %v5163_v45 = vcombine.high %v1078_v56, %v1082_v57  ;;  %v1122_v42 = vld [vmem:[#allocation11 + $0xbe0] sm:$0xff] }
 0x1cb   :  { %3951 = vmatpush1.bf16.msra.mxu0 %v5114_v37  ;;  %v1091_v37 = vld [vmem:[#allocation11 + $0xae8] sm:$0xff] }
 0x1cc   :  { %4123 = vmatpush1.bf16.msra.mxu1 %v5116_v52  ;;  %3952 = vmatprep.subr.bf16.mxu0 %v5123_v54  ;;  %v5162_v52 = vcombine.low %v1078_v56, %v1082_v57  ;;  %v5164_v54 = vcombine.low %v1079_v59, %v1083_v0  ;;  %v5173_v14 = vcombine.high %v1087_v36, %v1091_v37  ;;  %v1126_v57 = vld [vmem:[#allocation11 + $0xc00] sm:$0xff]  ;;  %v1127_v0 = vld [vmem:[#allocation11 + $0xc08] sm:$0xff] }
 0x1cd   :  { %4124 = vmatprep.subr.bf16.mxu1 %v5125_v55  ;;  %v5171_v55 = vcombine.high %v1086_v60, %v1090_v62  ;;  %v1130_v59 = vld [vmem:[#allocation11 + $0xc20] sm:$0xff] }
 0x1cf   :  { %3953 = vmatpush1.bf16.msra.mxu0 %v5122_v48  ;;  %v1099_v48 = vld [vmem:[#allocation11 + $0xb28] sm:$0xff] }
 0x1d0   :  { %4125 = vmatpush1.bf16.msra.mxu1 %v5124_v61  ;;  %3954 = vmatprep.subr.bf16.mxu0 %v5131_v38  ;;  %v5170_v61 = vcombine.low %v1086_v60, %v1090_v62  ;;  %v5172_v38 = vcombine.low %v1087_v36, %v1091_v37  ;;  %v5181_v28 = vcombine.high %v1095_v30, %v1099_v48  ;;  %v1134_v62 = vld [vmem:[#allocation11 + $0xc40] sm:$0xff] }
 0x1d1   :  { %4126 = vmatprep.subr.bf16.mxu1 %v5133_v6  ;;  %v5179_v6 = vcombine.high %v1094_v27, %v1098_v35  ;;  %v1138_v36 = vld [vmem:[#allocation11 + $0xc60] sm:$0xff]  ;;  %v5210_v37 = vcombine.low %v1126_v57, %v1130_v59 }
 0x1d3   :  { %3955 = vmatpush1.bf16.msra.mxu0 %v5130_v47  ;;  %v1107_v47 = vld [vmem:[#allocation11 + $0xb68] sm:$0xff] }
 0x1d4   :  { %4127 = vmatpush1.bf16.msra.mxu1 %v5132_v16  ;;  %3956 = vmatprep.subr.bf16.mxu0 %v5139_v22  ;;  %v5178_v16 = vcombine.low %v1094_v27, %v1098_v35  ;;  %v5180_v22 = vcombine.low %v1095_v30, %v1099_v48  ;;  %v5189_v17 = vcombine.high %v1103_v15, %v1107_v47  ;;  %v1142_v27 = vld [vmem:[#allocation11 + $0xc80] sm:$0xff]  ;;  %v1143_v48 = vld [vmem:[#allocation11 + $0xc88] sm:$0xff] }
 0x1d5   :  { %4128 = vmatprep.subr.bf16.mxu1 %v5141_v23  ;;  %v5187_v23 = vcombine.high %v1102_v21, %v1106_v46  ;;  %v1146_v35 = vld [vmem:[#allocation11 + $0xca0] sm:$0xff] }
 0x1d7   :  { %3957 = vmatpush1.bf16.msra.mxu0 %v5138_v31  ;;  %v1115_v31 = vld [vmem:[#allocation11 + $0xba8] sm:$0xff] }
 0x1d8   :  { %4129 = vmatpush1.bf16.msra.mxu1 %v5140_v7  ;;  %3958 = vmatprep.subr.bf16.mxu0 %v5147_v8  ;;  %v5186_v7 = vcombine.low %v1102_v21, %v1106_v46  ;;  %v5188_v8 = vcombine.low %v1103_v15, %v1107_v47  ;;  %v5197_v9 = vcombine.high %v1111_v25, %v1115_v31  ;;  %v1150_v46 = vld [vmem:[#allocation11 + $0xcc0] sm:$0xff]  ;;  %v1151_v47 = vld [vmem:[#allocation11 + $0xcc8] sm:$0xff] }
 0x1d9   :  { %4130 = vmatprep.subr.bf16.mxu1 %v5149_v12  ;;  %v5195_v12 = vcombine.high %v1110_v19, %v1114_v24  ;;  %v1154_v15 = vld [vmem:[#allocation11 + $0xce0] sm:$0xff] }
 0x1db   :  { %3959 = vmatpush1.bf16.msra.mxu0 %v5146_v18  ;;  %v1123_v18 = vld [vmem:[#allocation11 + $0xbe8] sm:$0xff] }
 0x1dc   :  { %4131 = vmatpush1.bf16.msra.mxu1 %v5148_v44  ;;  %3960 = vmatprep.subr.bf16.mxu0 %v5155_v49  ;;  %v5194_v44 = vcombine.low %v1110_v19, %v1114_v24  ;;  %v5196_v49 = vcombine.low %v1111_v25, %v1115_v31  ;;  %v5205_v56 = vcombine.high %v1119_v53, %v1123_v18  ;;  %v1158_v24 = vld [vmem:[#allocation11 + $0xd00] sm:$0xff]  ;;  %v1159_v31 = vld [vmem:[#allocation11 + $0xd08] sm:$0xff] }
 0x1dd   :  { %4132 = vmatprep.subr.bf16.mxu1 %v5157_v51  ;;  %v5203_v51 = vcombine.high %v1118_v11, %v1122_v42  ;;  %v1162_v25 = vld [vmem:[#allocation11 + $0xd20] sm:$0xff] }
 0x1df   :  { %3961 = vmatpush1.bf16.msra.mxu0 %v5154_v2  ;;  %v1131_v2 = vld [vmem:[#allocation11 + $0xc28] sm:$0xff] }
 0x1e0   :  { %4133 = vmatpush1.bf16.msra.mxu1 %v5156_v3  ;;  %3962 = vmatprep.subr.bf16.mxu0 %v5163_v45  ;;  %v5202_v3 = vcombine.low %v1118_v11, %v1122_v42  ;;  %v5204_v45 = vcombine.low %v1119_v53, %v1123_v18  ;;  %v5213_v60 = vcombine.high %v1127_v0, %v1131_v2  ;;  %v1166_v42 = vld [vmem:[#allocation11 + $0xd40] sm:$0xff]  ;;  %v1167_v18 = vld [vmem:[#allocation11 + $0xd48] sm:$0xff] }
 0x1e1   :  { %4134 = vmatprep.subr.bf16.mxu1 %v5165_v58  ;;  %v5211_v58 = vcombine.high %v1126_v57, %v1130_v59  ;;  %v1170_v53 = vld [vmem:[#allocation11 + $0xd60] sm:$0xff] }
 0x1e2   :  { %v1174_v59 = vld [vmem:[#allocation11 + $0xd80] sm:$0xff] }
 0x1e3   :  { %3963 = vmatpush1.bf16.msra.mxu0 %v5162_v52  ;;  %v1135_v52 = vld [vmem:[#allocation11 + $0xc48] sm:$0xff] }
 0x1e4   :  { %4135 = vmatpush1.bf16.msra.mxu1 %v5164_v54  ;;  %3964 = vmatprep.subr.bf16.mxu0 %v5171_v55  ;;  %v1139_v54 = vld [vmem:[#allocation11 + $0xc68] sm:$0xff]  ;;  %v5212_v55 = vcombine.low %v1127_v0, %v1131_v2  ;;  %v1178_v0 = vld [vmem:[#allocation11 + $0xda0] sm:$0xff] }
 0x1e5   :  { %4136 = vmatprep.subr.bf16.mxu1 %v5173_v14  ;;  %v5219_v14 = vcombine.high %v1134_v62, %v1138_v36  ;;  %v5221_v30 = vcombine.high %v1135_v52, %v1139_v54  ;;  %v1175_v2 = vld [vmem:[#allocation11 + $0xd88] sm:$0xff] }
 0x1e7   :  { %3965 = vmatpush1.bf16.msra.mxu0 %v5170_v61  ;;  %v1147_v61 = vld [vmem:[#allocation11 + $0xca8] sm:$0xff] }
 0x1e8   :  { %4137 = vmatpush1.bf16.msra.mxu1 %v5172_v38  ;;  %3966 = vmatprep.subr.bf16.mxu0 %v5179_v6  ;;  %v5218_v38 = vcombine.low %v1134_v62, %v1138_v36  ;;  %v5220_v6 = vcombine.low %v1135_v52, %v1139_v54  ;;  %v5229_v21 = vcombine.high %v1143_v48, %v1147_v61  ;;  %v1182_v36 = vld [vmem:[#allocation11 + $0xdc0] sm:$0xff]  ;;  %v1183_v52 = vld [vmem:[#allocation11 + $0xdc8] sm:$0xff] }
 0x1e9   :  { %4138 = vmatprep.subr.bf16.mxu1 %v5181_v28  ;;  %v5227_v28 = vcombine.high %v1142_v27, %v1146_v35  ;;  %v1187_v54 = vld [vmem:[#allocation11 + $0xde8] sm:$0xff] }
 0x1eb   :  { %3967 = vmatpush1.bf16.msra.mxu0 %v5178_v16  ;;  %v1155_v16 = vld [vmem:[#allocation11 + $0xce8] sm:$0xff] }
 0x1ec   :  { %4139 = vmatpush1.bf16.msra.mxu1 %v5180_v22  ;;  %3968 = vmatprep.subr.bf16.mxu0 %v5187_v23  ;;  %v5226_v22 = vcombine.low %v1142_v27, %v1146_v35  ;;  %v5228_v23 = vcombine.low %v1143_v48, %v1147_v61  ;;  %v5237_v19 = vcombine.high %v1151_v47, %v1155_v16  ;;  %v1194_v48 = vld [vmem:[#allocation11 + $0xe20] sm:$0xff]  ;;  %v1191_v61 = vld [vmem:[#allocation11 + $0xe08] sm:$0xff] }
 0x1ed   :  { %4140 = vmatprep.subr.bf16.mxu1 %v5189_v17  ;;  %v5235_v17 = vcombine.high %v1150_v46, %v1154_v15  ;;  %v5269_v35 = vcombine.high %v1183_v52, %v1187_v54 }
 0x1ef   :  { %3969 = vmatpush1.bf16.msra.mxu0 %v5186_v7  ;;  %v1163_v7 = vld [vmem:[#allocation11 + $0xd28] sm:$0xff] }
 0x1f0   :  { %4141 = vmatpush1.bf16.msra.mxu1 %v5188_v8  ;;  %3970 = vmatprep.subr.bf16.mxu0 %v5195_v12  ;;  %v5234_v8 = vcombine.low %v1150_v46, %v1154_v15  ;;  %v5236_v12 = vcombine.low %v1151_v47, %v1155_v16  ;;  %v5245_v11 = vcombine.high %v1159_v31, %v1163_v7  ;;  %v1198_v15 = vld [vmem:[#allocation11 + $0xe40] sm:$0xff]  ;;  %v1199_v16 = vld [vmem:[#allocation11 + $0xe48] sm:$0xff] }
 0x1f1   :  { %4142 = vmatprep.subr.bf16.mxu1 %v5197_v9  ;;  %v5243_v9 = vcombine.high %v1158_v24, %v1162_v25  ;;  %v1202_v47 = vld [vmem:[#allocation11 + $0xe60] sm:$0xff] }
 0x1f3   :  { %3971 = vmatpush1.bf16.msra.mxu0 %v5194_v44  ;;  %v1171_v44 = vld [vmem:[#allocation11 + $0xd68] sm:$0xff] }
 0x1f4   :  { %4143 = vmatpush1.bf16.msra.mxu1 %v5196_v49  ;;  %3972 = vmatprep.subr.bf16.mxu0 %v5203_v51  ;;  %v5242_v49 = vcombine.low %v1158_v24, %v1162_v25  ;;  %v5244_v51 = vcombine.low %v1159_v31, %v1163_v7  ;;  %v5253_v57 = vcombine.high %v1167_v18, %v1171_v44  ;;  %v1206_v25 = vld [vmem:[#allocation11 + $0xe80] sm:$0xff]  ;;  %v1207_v7 = vld [vmem:[#allocation11 + $0xe88] sm:$0xff] }
 0x1f5   :  { %4144 = vmatprep.subr.bf16.mxu1 %v5205_v56  ;;  %v5251_v56 = vcombine.high %v1166_v42, %v1170_v53  ;;  %v1210_v31 = vld [vmem:[#allocation11 + $0xea0] sm:$0xff] }
 0x1f7   :  { %3973 = vmatpush1.bf16.msra.mxu0 %v5202_v3  ;;  %v1179_v3 = vld [vmem:[#allocation11 + $0xda8] sm:$0xff] }
 0x1f8   :  { %4145 = vmatpush1.bf16.msra.mxu1 %v5204_v45  ;;  %3985 = vmatprep.subr.bf16.mxu0 %v5211_v58  ;;  %v5250_v45 = vcombine.low %v1166_v42, %v1170_v53  ;;  %v5252_v58 = vcombine.low %v1167_v18, %v1171_v44  ;;  %v5261_v62 = vcombine.high %v1175_v2, %v1179_v3  ;;  %v1214_v53 = vld [vmem:[#allocation11 + $0xec0] sm:$0xff]  ;;  %v1215_v44 = vld [vmem:[#allocation11 + $0xec8] sm:$0xff] }
 0x1f9   :  { %4157 = vmatprep.subr.bf16.mxu1 %v5213_v60  ;;  %v5259_v60 = vcombine.high %v1174_v59, %v1178_v0  ;;  %v1218_v18 = vld [vmem:[#allocation11 + $0xee0] sm:$0xff] }
 0x1fa   :  { %3975 = vmatmul.mubr.bf16.vlgmr.msra.gmra.mrb[16].mxu0 %v5933_v43 }
 0x1fb   :  { %4147 = vmatmul.mubr.bf16.vlgmr.msra.gmra.mrb[16].mxu1 %v5933_v43  ;;  %3986 = vmatpush1.bf16.msra.mxu0 %v5210_v37  ;;  %v1186_v37 = vld [vmem:[#allocation11 + $0xde0] sm:$0xff] }
 0x1fc   :  { %4017 = vmatprep.mubr.bf16.mxu0 %v5953_v10  ;;  %4158 = vmatpush1.bf16.msra.mxu1 %v5212_v55  ;;  %v5258_v55 = vcombine.low %v1174_v59, %v1178_v0  ;;  %v5267_v27 = vcombine.high %v1182_v36, %v1186_v37  ;;  %v1222_v0 = vld [vmem:[#allocation11 + $0xf00] sm:$0xff] }
 0x1fd   :  { %4189 = vmatprep.mubr.bf16.mxu1 %v5953_v10  ;;  %3987 = vmatprep.subr.bf16.mxu0 %v5219_v14  ;;  %v5260_v14 = vcombine.low %v1175_v2, %v1179_v3  ;;  %v1226_v2 = vld [vmem:[#allocation11 + $0xf20] sm:$0xff]  ;;  %v1223_v3 = vld [vmem:[#allocation11 + $0xf08] sm:$0xff] }
 0x1fe   :  { %4159 = vmatprep.subr.bf16.mxu1 %v5221_v30  ;;  %v1190_v30 = vld [vmem:[#allocation11 + $0xe00] sm:$0xff] }
 0x1ff   :  { %3988 = vmatpush1.bf16.msra.mxu0 %v5218_v38  ;;  %v1195_v38 = vld [vmem:[#allocation11 + $0xe28] sm:$0xff] }
 0x200   :  { %4160 = vmatpush1.bf16.msra.mxu1 %v5220_v6  ;;  %3989 = vmatprep.subr.bf16.mxu0 %v5227_v28  ;;  %v5266_v6 = vcombine.low %v1182_v36, %v1186_v37  ;;  %v5268_v28 = vcombine.low %v1183_v52, %v1187_v54  ;;  %v5277_v46 = vcombine.high %v1191_v61, %v1195_v38  ;;  %v1230_v37 = vld [vmem:[#allocation11 + $0xf40] sm:$0xff]  ;;  %v1231_v54 = vld [vmem:[#allocation11 + $0xf48] sm:$0xff] }
 0x201   :  { %4161 = vmatprep.subr.bf16.mxu1 %v5229_v21  ;;  %v5275_v21 = vcombine.high %v1190_v30, %v1194_v48  ;;  %v1234_v52 = vld [vmem:[#allocation11 + $0xf60] sm:$0xff] }
 0x203   :  { %3990 = vmatpush1.bf16.msra.mxu0 %v5226_v22  ;;  %v1203_v22 = vld [vmem:[#allocation11 + $0xe68] sm:$0xff] }
 0x204   :  { %4162 = vmatpush1.bf16.msra.mxu1 %v5228_v23  ;;  %3991 = vmatprep.subr.bf16.mxu0 %v5235_v17  ;;  %v5274_v23 = vcombine.low %v1190_v30, %v1194_v48  ;;  %v5276_v17 = vcombine.low %v1191_v61, %v1195_v38  ;;  %v5285_v24 = vcombine.high %v1199_v16, %v1203_v22  ;;  %v1238_v48 = vld [vmem:[#allocation11 + $0xf80] sm:$0xff]  ;;  %v1239_v38 = vld [vmem:[#allocation11 + $0xf88] sm:$0xff] }
 0x205   :  { %4163 = vmatprep.subr.bf16.mxu1 %v5237_v19  ;;  %v5283_v19 = vcombine.high %v1198_v15, %v1202_v47  ;;  %v1242_v61 = vld [vmem:[#allocation11 + $0xfa0] sm:$0xff] }
 0x207   :  { %3992 = vmatpush1.bf16.msra.mxu0 %v5234_v8  ;;  %v1211_v8 = vld [vmem:[#allocation11 + $0xea8] sm:$0xff] }
 0x208   :  { %4164 = vmatpush1.bf16.msra.mxu1 %v5236_v12  ;;  %3993 = vmatprep.subr.bf16.mxu0 %v5243_v9  ;;  %v5282_v12 = vcombine.low %v1198_v15, %v1202_v47  ;;  %v5284_v9 = vcombine.low %v1199_v16, %v1203_v22  ;;  %v5293_v42 = vcombine.high %v1207_v7, %v1211_v8  ;;  %v1246_v47 = vld [vmem:[#allocation11 + $0xfc0] sm:$0xff]  ;;  %v1247_v22 = vld [vmem:[#allocation11 + $0xfc8] sm:$0xff] }
 0x209   :  { %4165 = vmatprep.subr.bf16.mxu1 %v5245_v11  ;;  %v5291_v11 = vcombine.high %v1206_v25, %v1210_v31  ;;  %v1250_v16 = vld [vmem:[#allocation11 + $0xfe0] sm:$0xff] }
 0x20b   :  { %3994 = vmatpush1.bf16.msra.mxu0 %v5242_v49  ;;  %v1219_v49 = vld [vmem:[#allocation11 + $0xee8] sm:$0xff] }
 0x20c   :  { %4166 = vmatpush1.bf16.msra.mxu1 %v5244_v51  ;;  %3995 = vmatprep.subr.bf16.mxu0 %v5251_v56  ;;  %v5290_v51 = vcombine.low %v1206_v25, %v1210_v31  ;;  %v5292_v56 = vcombine.low %v1207_v7, %v1211_v8  ;;  %v5301_v59 = vcombine.high %v1215_v44, %v1219_v49  ;;  %v744_v31 = vld [vmem:[#allocation11 + $0x10] sm:$0xff]  ;;  %v745_v8 = vld [vmem:[#allocation11 + $0x18] sm:$0xff] }
 0x20d   :  { %4167 = vmatprep.subr.bf16.mxu1 %v5253_v57  ;;  %v5299_v57 = vcombine.high %v1214_v53, %v1218_v18  ;;  %v748_v7 = vld [vmem:[#allocation11 + $0x30] sm:$0xff] }
 0x20f   :  { %3996 = vmatpush1.bf16.msra.mxu0 %v5250_v45  ;;  %v1227_v45 = vld [vmem:[#allocation11 + $0xf28] sm:$0xff] }
 0x210   :  { %4168 = vmatpush1.bf16.msra.mxu1 %v5252_v58  ;;  %3997 = vmatprep.subr.bf16.mxu0 %v5259_v60  ;;  %v5298_v58 = vcombine.low %v1214_v53, %v1218_v18  ;;  %v5300_v60 = vcombine.low %v1215_v44, %v1219_v49  ;;  %v5309_v36 = vcombine.high %v1223_v3, %v1227_v45  ;;  %v752_v18 = vld [vmem:[#allocation11 + $0x50] sm:$0xff] }
 0x211   :  { %4169 = vmatprep.subr.bf16.mxu1 %v5261_v62  ;;  %v5307_v62 = vcombine.high %v1222_v0, %v1226_v2  ;;  %v756_v44 = vld [vmem:[#allocation11 + $0x70] sm:$0xff]  ;;  %v4830_v49 = vcombine.low %v744_v31, %v748_v7 }
 0x213   :  { %3998 = vmatpush1.bf16.msra.mxu0 %v5258_v55  ;;  %v1235_v55 = vld [vmem:[#allocation11 + $0xf68] sm:$0xff] }
 0x214   :  { %4170 = vmatpush1.bf16.msra.mxu1 %v5260_v14  ;;  %3999 = vmatprep.subr.bf16.mxu0 %v5267_v27  ;;  %v5306_v14 = vcombine.low %v1222_v0, %v1226_v2  ;;  %v5308_v27 = vcombine.low %v1223_v3, %v1227_v45  ;;  %v5317_v30 = vcombine.high %v1231_v54, %v1235_v55  ;;  %v760_v0 = vld [vmem:[#allocation11 + $0x90] sm:$0xff]  ;;  %v761_v45 = vld [vmem:[#allocation11 + $0x98] sm:$0xff] }
 0x215   :  { %4171 = vmatprep.subr.bf16.mxu1 %v5269_v35  ;;  %v5315_v35 = vcombine.high %v1230_v37, %v1234_v52  ;;  %v764_v2 = vld [vmem:[#allocation11 + $0xb0] sm:$0xff] }
 0x217   :  { %4000 = vmatpush1.bf16.msra.mxu0 %v5266_v6  ;;  %v1243_v6 = vld [vmem:[#allocation11 + $0xfa8] sm:$0xff] }
 0x218   :  { %4172 = vmatpush1.bf16.msra.mxu1 %v5268_v28  ;;  %4001 = vmatprep.subr.bf16.mxu0 %v5275_v21  ;;  %v5314_v28 = vcombine.low %v1230_v37, %v1234_v52  ;;  %v5316_v21 = vcombine.low %v1231_v54, %v1235_v55  ;;  %v5325_v15 = vcombine.high %v1239_v38, %v1243_v6  ;;  %v768_v52 = vld [vmem:[#allocation11 + $0xd0] sm:$0xff]  ;;  %v769_v55 = vld [vmem:[#allocation11 + $0xd8] sm:$0xff] }
 0x219   :  { %4173 = vmatprep.subr.bf16.mxu1 %v5277_v46  ;;  %v5323_v46 = vcombine.high %v1238_v48, %v1242_v61  ;;  %v772_v54 = vld [vmem:[#allocation11 + $0xf0] sm:$0xff] }
 0x21b   :  { %4002 = vmatpush1.bf16.msra.mxu0 %v5274_v23  ;;  %v1251_v23 = vld [vmem:[#allocation11 + $0xfe8] sm:$0xff] }
 0x21c   :  { %4174 = vmatpush1.bf16.msra.mxu1 %v5276_v17  ;;  %4003 = vmatprep.subr.bf16.mxu0 %v5283_v19  ;;  %v5322_v17 = vcombine.low %v1238_v48, %v1242_v61  ;;  %v5324_v19 = vcombine.low %v1239_v38, %v1243_v6  ;;  %v5333_v25 = vcombine.high %v1247_v22, %v1251_v23  ;;  %v776_v61 = vld [vmem:[#allocation11 + $0x110] sm:$0xff]  ;;  %v777_v6 = vld [vmem:[#allocation11 + $0x118] sm:$0xff] }
 0x21d   :  { %4175 = vmatprep.subr.bf16.mxu1 %v5285_v24  ;;  %v5331_v24 = vcombine.high %v1246_v47, %v1250_v16  ;;  %v780_v38 = vld [vmem:[#allocation11 + $0x130] sm:$0xff] }
 0x21f   :  { %4004 = vmatpush1.bf16.msra.mxu0 %v5282_v12  ;;  %v749_v12 = vld [vmem:[#allocation11 + $0x38] sm:$0xff] }
 0x220   :  { %4176 = vmatpush1.bf16.msra.mxu1 %v5284_v9  ;;  %4005 = vmatprep.subr.bf16.mxu0 %v5291_v11  ;;  %v5330_v9 = vcombine.low %v1246_v47, %v1250_v16  ;;  %v5332_v11 = vcombine.low %v1247_v22, %v1251_v23  ;;  %v4833_v53 = vcombine.high %v745_v8, %v749_v12  ;;  %v784_v47 = vld [vmem:[#allocation11 + $0x150] sm:$0xff]  ;;  %v785_v22 = vld [vmem:[#allocation11 + $0x158] sm:$0xff] }
 0x221   :  { %4177 = vmatprep.subr.bf16.mxu1 %v5293_v42  ;;  %v4831_v42 = vcombine.high %v744_v31, %v748_v7  ;;  %v788_v16 = vld [vmem:[#allocation11 + $0x170] sm:$0xff]  ;;  %v789_v23 = vld [vmem:[#allocation11 + $0x178] sm:$0xff] }
 0x222   :  { %v792_v31 = vld [vmem:[#allocation11 + $0x190] sm:$0xff] }
 0x223   :  { %4006 = vmatpush1.bf16.msra.mxu0 %v5290_v51  ;;  %v753_v51 = vld [vmem:[#allocation11 + $0x58] sm:$0xff]  ;;  %v796_v7 = vld [vmem:[#allocation11 + $0x1b0] sm:$0xff] }
 0x224   :  { %4178 = vmatpush1.bf16.msra.mxu1 %v5292_v56  ;;  %4007 = vmatprep.subr.bf16.mxu0 %v5299_v57  ;;  %v757_v56 = vld [vmem:[#allocation11 + $0x78] sm:$0xff]  ;;  %v4832_v57 = vcombine.low %v745_v8, %v749_v12 }
 0x225   :  { %4179 = vmatprep.subr.bf16.mxu1 %v5301_v59  ;;  %v4839_v59 = vcombine.high %v752_v18, %v756_v44  ;;  %v4841_v3 = vcombine.high %v753_v51, %v757_v56  ;;  %v793_v8 = vld [vmem:[#allocation11 + $0x198] sm:$0xff] }
 0x226   :  { %v797_v12 = vld [vmem:[#allocation11 + $0x1b8] sm:$0xff] }
 0x227   :  { %4008 = vmatpush1.bf16.msra.mxu0 %v5298_v58  ;;  %v765_v58 = vld [vmem:[#allocation11 + $0xb8] sm:$0xff] }
 0x228   :  { %4180 = vmatpush1.bf16.msra.mxu1 %v5300_v60  ;;  %4009 = vmatprep.subr.bf16.mxu0 %v5307_v62  ;;  %v4838_v60 = vcombine.low %v752_v18, %v756_v44  ;;  %v4840_v62 = vcombine.low %v753_v51, %v757_v56  ;;  %v4849_v37 = vcombine.high %v761_v45, %v765_v58  ;;  %v800_v18 = vld [vmem:[#allocation11 + $0x1d0] sm:$0xff]  ;;  %v805_v51 = vld [vmem:[#allocation11 + $0x1f8] sm:$0xff] }
 0x229   :  { %4181 = vmatprep.subr.bf16.mxu1 %v5309_v36  ;;  %v4847_v36 = vcombine.high %v760_v0, %v764_v2  ;;  %v804_v44 = vld [vmem:[#allocation11 + $0x1f0] sm:$0xff]  ;;  %v4878_v56 = vcombine.low %v792_v31, %v796_v7 }
 0x22b   :  { %4010 = vmatpush1.bf16.msra.mxu0 %v5306_v14  ;;  %v773_v14 = vld [vmem:[#allocation11 + $0xf8] sm:$0xff] }
 0x22c   :  { %4182 = vmatpush1.bf16.msra.mxu1 %v5308_v27  ;;  %4011 = vmatprep.subr.bf16.mxu0 %v5315_v35  ;;  %v4846_v27 = vcombine.low %v760_v0, %v764_v2  ;;  %v4848_v35 = vcombine.low %v761_v45, %v765_v58  ;;  %v4857_v48 = vcombine.high %v769_v55, %v773_v14  ;;  %v808_v2 = vld [vmem:[#allocation11 + $0x210] sm:$0xff]  ;;  %v809_v45 = vld [vmem:[#allocation11 + $0x218] sm:$0xff] }
 0x22d   :  { %4183 = vmatprep.subr.bf16.mxu1 %v5317_v30  ;;  %v4855_v30 = vcombine.high %v768_v52, %v772_v54  ;;  %v813_v58 = vld [vmem:[#allocation11 + $0x238] sm:$0xff] }
 0x22f   :  { %4012 = vmatpush1.bf16.msra.mxu0 %v5314_v28  ;;  %v781_v28 = vld [vmem:[#allocation11 + $0x138] sm:$0xff] }
 0x230   :  { %4184 = vmatpush1.bf16.msra.mxu1 %v5316_v21  ;;  %4013 = vmatprep.subr.bf16.mxu0 %v5323_v46  ;;  %v4856_v21 = vcombine.low %v769_v55, %v773_v14  ;;  %v4863_v46 = vcombine.high %v776_v61, %v780_v38  ;;  %v817_v55 = vld [vmem:[#allocation11 + $0x258] sm:$0xff] }
 0x231   :  { %4185 = vmatprep.subr.bf16.mxu1 %v5325_v15  ;;  %v4865_v15 = vcombine.high %v777_v6, %v781_v28  ;;  %v821_v14 = vld [vmem:[#allocation11 + $0x278] sm:$0xff] }
 0x233   :  { %4014 = vmatpush1.bf16.msra.mxu0 %v5322_v17  ;;  %v4862_v17 = vcombine.low %v776_v61, %v780_v38  ;;  %v824_v61 = vld [vmem:[#allocation11 + $0x290] sm:$0xff] }
 0x234   :  { %4186 = vmatpush1.bf16.msra.mxu1 %v5324_v19  ;;  %4015 = vmatprep.subr.bf16.mxu0 %v5331_v24  ;;  %v4864_v19 = vcombine.low %v777_v6, %v781_v28  ;;  %v4871_v24 = vcombine.high %v784_v47, %v788_v16  ;;  %v828_v38 = vld [vmem:[#allocation11 + $0x2b0] sm:$0xff]  ;;  %v825_v6 = vld [vmem:[#allocation11 + $0x298] sm:$0xff] }
 0x235   :  { %4187 = vmatprep.subr.bf16.mxu1 %v5333_v25  ;;  %v4873_v25 = vcombine.high %v785_v22, %v789_v23  ;;  %v829_v28 = vld [vmem:[#allocation11 + $0x2b8] sm:$0xff] }
 0x237   :  { %4016 = vmatpush1.bf16.msra.mxu0 %v5330_v9  ;;  %v4870_v9 = vcombine.low %v784_v47, %v788_v16  ;;  %v832_v47 = vld [vmem:[#allocation11 + $0x2d0] sm:$0xff] }
 0x238   :  { %4188 = vmatpush1.bf16.msra.mxu1 %v5332_v11  ;;  %4200 = vmatprep.subr.bf16.mxu0 %v4831_v42  ;;  %v4872_v11 = vcombine.low %v785_v22, %v789_v23  ;;  %v4879_v42 = vcombine.high %v792_v31, %v796_v7  ;;  %v836_v16 = vld [vmem:[#allocation11 + $0x2f0] sm:$0xff]  ;;  %v833_v22 = vld [vmem:[#allocation11 + $0x2d8] sm:$0xff] }
 0x239   :  { %4372 = vmatprep.subr.bf16.mxu1 %v4833_v53  ;;  %v4881_v53 = vcombine.high %v793_v8, %v797_v12  ;;  %v837_v23 = vld [vmem:[#allocation11 + $0x2f8] sm:$0xff]  ;;  %v840_v31 = vld [vmem:[#allocation11 + $0x310] sm:$0xff] }
 0x23a   :  { %4018 = vmatmul.mubr.bf16.vlgmr.msra.gmra.mrb[16].mxu0 %v5951_v63  ;;  %v844_v7 = vld [vmem:[#allocation11 + $0x330] sm:$0xff] }
 0x23b   :  { %4190 = vmatmul.mubr.bf16.vlgmr.msra.gmra.mrb[16].mxu1 %v5951_v63  ;;  %4201 = vmatpush1.bf16.msra.mxu0 %v4830_v49  ;;  %v801_v49 = vld [vmem:[#allocation11 + $0x1d8] sm:$0xff] }
 0x23c   :  { %4232 = vmatprep.mubr.bf16.mxu0 %v5901_v41  ;;  %4373 = vmatpush1.bf16.msra.mxu1 %v4832_v57  ;;  %v4880_v57 = vcombine.low %v793_v8, %v797_v12  ;;  %v4889_v0 = vcombine.high %v801_v49, %v805_v51  ;;  %v841_v8 = vld [vmem:[#allocation11 + $0x318] sm:$0xff] }
 0x23d   :  { %4404 = vmatprep.mubr.bf16.mxu1 %v5901_v41  ;;  %4202 = vmatprep.subr.bf16.mxu0 %v4839_v59  ;;  %v4854_v41 = vcombine.low %v768_v52, %v772_v54  ;;  %v4887_v59 = vcombine.high %v800_v18, %v804_v44  ;;  %v816_v52 = vld [vmem:[#allocation11 + $0x250] sm:$0xff]  ;;  %v845_v12 = vld [vmem:[#allocation11 + $0x338] sm:$0xff] }
 0x23e   :  { %4374 = vmatprep.subr.bf16.mxu1 %v4841_v3  ;;  %v812_v3 = vld [vmem:[#allocation11 + $0x230] sm:$0xff] }
 0x23f   :  { %4203 = vmatpush1.bf16.msra.mxu0 %v4838_v60  ;;  %v4886_v60 = vcombine.low %v800_v18, %v804_v44  ;;  %v820_v54 = vld [vmem:[#allocation11 + $0x270] sm:$0xff] }
 0x240   :  { %4375 = vmatpush1.bf16.msra.mxu1 %v4840_v62  ;;  %4204 = vmatprep.subr.bf16.mxu0 %v4847_v36  ;;  %v4888_v62 = vcombine.low %v801_v49, %v805_v51  ;;  %v4895_v36 = vcombine.high %v808_v2, %v812_v3  ;;  %v848_v18 = vld [vmem:[#allocation11 + $0x350] sm:$0xff]  ;;  %v849_v49 = vld [vmem:[#allocation11 + $0x358] sm:$0xff] }
 0x241   :  { %4376 = vmatprep.subr.bf16.mxu1 %v4849_v37  ;;  %v4897_v37 = vcombine.high %v809_v45, %v813_v58  ;;  %v852_v44 = vld [vmem:[#allocation11 + $0x370] sm:$0xff]  ;;  %v853_v51 = vld [vmem:[#allocation11 + $0x378] sm:$0xff] }
 0x243   :  { %4205 = vmatpush1.bf16.msra.mxu0 %v4846_v27  ;;  %v4894_v27 = vcombine.low %v808_v2, %v812_v3  ;;  %v856_v2 = vld [vmem:[#allocation11 + $0x390] sm:$0xff] }
 0x244   :  { %4377 = vmatpush1.bf16.msra.mxu1 %v4848_v35  ;;  %4206 = vmatprep.subr.bf16.mxu0 %v4855_v30  ;;  %v4896_v35 = vcombine.low %v809_v45, %v813_v58  ;;  %v4903_v30 = vcombine.high %v816_v52, %v820_v54  ;;  %v860_v3 = vld [vmem:[#allocation11 + $0x3b0] sm:$0xff]  ;;  %v857_v45 = vld [vmem:[#allocation11 + $0x398] sm:$0xff] }
 0x245   :  { %4378 = vmatprep.subr.bf16.mxu1 %v4857_v48  ;;  %v4905_v48 = vcombine.high %v817_v55, %v821_v14  ;;  %v861_v58 = vld [vmem:[#allocation11 + $0x3b8] sm:$0xff] }
 0x247   :  { %4207 = vmatpush1.bf16.msra.mxu0 %v4854_v41  ;;  %v4902_v41 = vcombine.low %v816_v52, %v820_v54  ;;  %v864_v52 = vld [vmem:[#allocation11 + $0x3d0] sm:$0xff] }
 0x248   :  { %4379 = vmatpush1.bf16.msra.mxu1 %v4856_v21  ;;  %4208 = vmatprep.subr.bf16.mxu0 %v4863_v46  ;;  %v4904_v21 = vcombine.low %v817_v55, %v821_v14  ;;  %v4911_v46 = vcombine.high %v824_v61, %v828_v38  ;;  %v868_v54 = vld [vmem:[#allocation11 + $0x3f0] sm:$0xff]  ;;  %v865_v55 = vld [vmem:[#allocation11 + $0x3d8] sm:$0xff] }
 0x249   :  { %4380 = vmatprep.subr.bf16.mxu1 %v4865_v15  ;;  %v4913_v15 = vcombine.high %v825_v6, %v829_v28  ;;  %v869_v14 = vld [vmem:[#allocation11 + $0x3f8] sm:$0xff] }
 0x24b   :  { %4209 = vmatpush1.bf16.msra.mxu0 %v4862_v17  ;;  %v4910_v17 = vcombine.low %v824_v61, %v828_v38  ;;  %v872_v61 = vld [vmem:[#allocation11 + $0x410] sm:$0xff] }
 0x24c   :  { %4381 = vmatpush1.bf16.msra.mxu1 %v4864_v19  ;;  %4210 = vmatprep.subr.bf16.mxu0 %v4871_v24  ;;  %v4912_v19 = vcombine.low %v825_v6, %v829_v28  ;;  %v4919_v24 = vcombine.high %v832_v47, %v836_v16  ;;  %v876_v38 = vld [vmem:[#allocation11 + $0x430] sm:$0xff]  ;;  %v873_v6 = vld [vmem:[#allocation11 + $0x418] sm:$0xff] }
 0x24d   :  { %4382 = vmatprep.subr.bf16.mxu1 %v4873_v25  ;;  %v4921_v25 = vcombine.high %v833_v22, %v837_v23  ;;  %v877_v28 = vld [vmem:[#allocation11 + $0x438] sm:$0xff] }
 0x24f   :  { %4211 = vmatpush1.bf16.msra.mxu0 %v4870_v9  ;;  %v4918_v9 = vcombine.low %v832_v47, %v836_v16  ;;  %v880_v47 = vld [vmem:[#allocation11 + $0x450] sm:$0xff] }
 0x250   :  { %4383 = vmatpush1.bf16.msra.mxu1 %v4872_v11  ;;  %4212 = vmatprep.subr.bf16.mxu0 %v4879_v42  ;;  %v4920_v11 = vcombine.low %v833_v22, %v837_v23  ;;  %v4927_v42 = vcombine.high %v840_v31, %v844_v7  ;;  %v884_v16 = vld [vmem:[#allocation11 + $0x470] sm:$0xff]  ;;  %v4958_v22 = vcombine.low %v872_v61, %v876_v38  ;;  %v881_v23 = vld [vmem:[#allocation11 + $0x458] sm:$0xff] }
 0x251   :  { %4384 = vmatprep.subr.bf16.mxu1 %v4881_v53  ;;  %v4929_v53 = vcombine.high %v841_v8, %v845_v12 }
 0x253   :  { %4213 = vmatpush1.bf16.msra.mxu0 %v4878_v56  ;;  %v4926_v56 = vcombine.low %v840_v31, %v844_v7  ;;  %v892_v31 = vld [vmem:[#allocation11 + $0x4b0] sm:$0xff] }
 0x254   :  { %4385 = vmatpush1.bf16.msra.mxu1 %v4880_v57  ;;  %4214 = vmatprep.subr.bf16.mxu0 %v4887_v59  ;;  %v4928_v57 = vcombine.low %v841_v8, %v845_v12  ;;  %v4935_v59 = vcombine.high %v848_v18, %v852_v44  ;;  %v889_v8 = vld [vmem:[#allocation11 + $0x498] sm:$0xff] }
 0x255   :  { %4386 = vmatprep.subr.bf16.mxu1 %v4889_v0  ;;  %v4937_v0 = vcombine.high %v849_v49, %v853_v51  ;;  %v893_v12 = vld [vmem:[#allocation11 + $0x4b8] sm:$0xff] }
 0x257   :  { %4215 = vmatpush1.bf16.msra.mxu0 %v4886_v60  ;;  %v4934_v60 = vcombine.low %v848_v18, %v852_v44  ;;  %v896_v18 = vld [vmem:[#allocation11 + $0x4d0] sm:$0xff] }
 0x258   :  { %4387 = vmatpush1.bf16.msra.mxu1 %v4888_v62  ;;  %4216 = vmatprep.subr.bf16.mxu0 %v4895_v36  ;;  %v4936_v62 = vcombine.low %v849_v49, %v853_v51  ;;  %v4943_v36 = vcombine.high %v856_v2, %v860_v3  ;;  %v900_v44 = vld [vmem:[#allocation11 + $0x4f0] sm:$0xff]  ;;  %v897_v49 = vld [vmem:[#allocation11 + $0x4d8] sm:$0xff] }
 0x259   :  { %4388 = vmatprep.subr.bf16.mxu1 %v4897_v37  ;;  %v4945_v37 = vcombine.high %v857_v45, %v861_v58  ;;  %v901_v51 = vld [vmem:[#allocation11 + $0x4f8] sm:$0xff] }
 0x25b   :  { %4217 = vmatpush1.bf16.msra.mxu0 %v4894_v27  ;;  %v4942_v27 = vcombine.low %v856_v2, %v860_v3  ;;  %v908_v2 = vld [vmem:[#allocation11 + $0x530] sm:$0xff]  ;;  %v905_v3 = vld [vmem:[#allocation11 + $0x518] sm:$0xff] }
 0x25c   :  { %4389 = vmatpush1.bf16.msra.mxu1 %v4896_v35  ;;  %4218 = vmatprep.subr.bf16.mxu0 %v4903_v30  ;;  %v4944_v35 = vcombine.low %v857_v45, %v861_v58  ;;  %v4951_v30 = vcombine.high %v864_v52, %v868_v54  ;;  %v909_v45 = vld [vmem:[#allocation11 + $0x538] sm:$0xff]  ;;  %v4984_v58 = vcombine.low %v897_v49, %v901_v51 }
 0x25d   :  { %4390 = vmatprep.subr.bf16.mxu1 %v4905_v48  ;;  %v4953_v48 = vcombine.high %v865_v55, %v869_v14 }
 0x25f   :  { %4219 = vmatpush1.bf16.msra.mxu0 %v4902_v41  ;;  %v4950_v41 = vcombine.low %v864_v52, %v868_v54  ;;  %v913_v52 = vld [vmem:[#allocation11 + $0x558] sm:$0xff] }
 0x260   :  { %4391 = vmatpush1.bf16.msra.mxu1 %v4904_v21  ;;  %4220 = vmatprep.subr.bf16.mxu0 %v4911_v46  ;;  %v4952_v21 = vcombine.low %v865_v55, %v869_v14  ;;  %v4959_v46 = vcombine.high %v872_v61, %v876_v38  ;;  %v917_v54 = vld [vmem:[#allocation11 + $0x578] sm:$0xff]  ;;  %v4992_v14 = vcombine.low %v905_v3, %v909_v45 }
 0x261   :  { %4392 = vmatprep.subr.bf16.mxu1 %v4913_v15  ;;  %v4961_v15 = vcombine.high %v873_v6, %v877_v28  ;;  %v921_v61 = vld [vmem:[#allocation11 + $0x598] sm:$0xff] }
 0x262   :  { %v925_v38 = vld [vmem:[#allocation11 + $0x5b8] sm:$0xff] }
 0x263   :  { %4221 = vmatpush1.bf16.msra.mxu0 %v4910_v17  ;;  %v885_v17 = vld [vmem:[#allocation11 + $0x478] sm:$0xff] }
 0x264   :  { %4393 = vmatpush1.bf16.msra.mxu1 %v4912_v19  ;;  %4222 = vmatprep.subr.bf16.mxu0 %v4919_v24  ;;  %v4960_v19 = vcombine.low %v873_v6, %v877_v28  ;;  %v4967_v24 = vcombine.high %v880_v47, %v884_v16  ;;  %v4969_v7 = vcombine.high %v881_v23, %v885_v17 }
 0x265   :  { %4394 = vmatprep.subr.bf16.mxu1 %v4921_v25  ;;  %v888_v25 = vld [vmem:[#allocation11 + $0x490] sm:$0xff]  ;;  %v5000_v28 = vcombine.low %v913_v52, %v917_v54 }
 0x267   :  { %4223 = vmatpush1.bf16.msra.mxu0 %v4918_v9  ;;  %v4966_v9 = vcombine.low %v880_v47, %v884_v16  ;;  %v929_v47 = vld [vmem:[#allocation11 + $0x5d8] sm:$0xff] }
 0x268   :  { %4395 = vmatpush1.bf16.msra.mxu1 %v4920_v11  ;;  %4224 = vmatprep.subr.bf16.mxu0 %v4927_v42  ;;  %v4968_v11 = vcombine.low %v881_v23, %v885_v17  ;;  %v4975_v42 = vcombine.high %v888_v25, %v892_v31  ;;  %v933_v16 = vld [vmem:[#allocation11 + $0x5f8] sm:$0xff]  ;;  %v5008_v23 = vcombine.low %v921_v61, %v925_v38 }
 0x269   :  { %4396 = vmatprep.subr.bf16.mxu1 %v4929_v53  ;;  %v4977_v53 = vcombine.high %v889_v8, %v893_v12 }
 0x26b   :  { %4225 = vmatpush1.bf16.msra.mxu0 %v4926_v56  ;;  %v4974_v56 = vcombine.low %v888_v25, %v892_v31  ;;  %v940_v25 = vld [vmem:[#allocation11 + $0x630] sm:$0xff]  ;;  %v937_v31 = vld [vmem:[#allocation11 + $0x618] sm:$0xff] }
 0x26c   :  { %4397 = vmatpush1.bf16.msra.mxu1 %v4928_v57  ;;  %4226 = vmatprep.subr.bf16.mxu0 %v4935_v59  ;;  %v4983_v57 = vcombine.high %v896_v18, %v900_v44  ;;  %v4985_v59 = vcombine.high %v897_v49, %v901_v51 }
 0x26d   :  { %4398 = vmatprep.subr.bf16.mxu1 %v4937_v0  ;;  %v904_v0 = vld [vmem:[#allocation11 + $0x510] sm:$0xff] }
 0x26e   :  { %v4990_v55 = vcombine.low %v904_v0, %v908_v2 }
 0x26f   :  { %4227 = vmatpush1.bf16.msra.mxu0 %v4934_v60  ;;  %v4991_v60 = vcombine.high %v904_v0, %v908_v2  ;;  %v953_v0 = vld [vmem:[#allocation11 + $0x698] sm:$0xff] }
 0x270   :  { %4399 = vmatpush1.bf16.msra.mxu1 %v4936_v62  ;;  %4228 = vmatprep.subr.bf16.mxu0 %v4943_v36  ;;  %v4993_v62 = vcombine.high %v905_v3, %v909_v45  ;;  %v912_v36 = vld [vmem:[#allocation11 + $0x550] sm:$0xff]  ;;  %v957_v2 = vld [vmem:[#allocation11 + $0x6b8] sm:$0xff] }
 0x271   :  { %4400 = vmatprep.subr.bf16.mxu1 %v4945_v37  ;;  %v916_v37 = vld [vmem:[#allocation11 + $0x570] sm:$0xff] }
 0x272   :  { %v4998_v6 = vcombine.low %v912_v36, %v916_v37 }
 0x273   :  { %4229 = vmatpush1.bf16.msra.mxu0 %v4942_v27  ;;  %v4999_v27 = vcombine.high %v912_v36, %v916_v37  ;;  %v961_v36 = vld [vmem:[#allocation11 + $0x6d8] sm:$0xff] }
 0x274   :  { %4401 = vmatpush1.bf16.msra.mxu1 %v4944_v35  ;;  %4230 = vmatprep.subr.bf16.mxu0 %v4951_v30  ;;  %v5001_v35 = vcombine.high %v913_v52, %v917_v54  ;;  %v920_v30 = vld [vmem:[#allocation11 + $0x590] sm:$0xff]  ;;  %v965_v37 = vld [vmem:[#allocation11 + $0x6f8] sm:$0xff]  ;;  %v5040_v54 = vcombine.low %v953_v0, %v957_v2 }
 0x275   :  { %4402 = vmatprep.subr.bf16.mxu1 %v4953_v48  ;;  %v924_v48 = vld [vmem:[#allocation11 + $0x5b0] sm:$0xff] }
 0x277   :  { %4231 = vmatpush1.bf16.msra.mxu0 %v4950_v41  ;;  %v5007_v41 = vcombine.high %v920_v30, %v924_v48 }
 0x278   :  { %4403 = vmatpush1.bf16.msra.mxu1 %v4952_v21  ;;  %4243 = vmatprep.subr.bf16.mxu0 %v4959_v46  ;;  %v5009_v21 = vcombine.high %v921_v61, %v925_v38  ;;  %v928_v46 = vld [vmem:[#allocation11 + $0x5d0] sm:$0xff]  ;;  %v5048_v38 = vcombine.low %v961_v36, %v965_v37 }
 0x279   :  { %4415 = vmatprep.subr.bf16.mxu1 %v4961_v15  ;;  %v932_v15 = vld [vmem:[#allocation11 + $0x5f0] sm:$0xff] }
 0x27a   :  { %4233 = vmatmul.mubr.bf16.vlgmr.msra.gmra.mrb[20].mxu0 %v5895_v1  ;;  %v5015_v17 = vcombine.high %v928_v46, %v932_v15 }
 0x27b   :  { %4405 = vmatmul.mubr.bf16.vlgmr.msra.gmra.mrb[20].mxu1 %v5895_v1  ;;  %4244 = vmatpush1.bf16.msra.mxu0 %v4958_v22  ;;  %v4976_v1 = vcombine.low %v889_v8, %v893_v12  ;;  %v5006_v22 = vcombine.low %v920_v30, %v924_v48  ;;  %v5014_v8 = vcombine.low %v928_v46, %v932_v15  ;;  %v969_v30 = vld [vmem:[#allocation11 + $0x718] sm:$0xff] }
 0x27c   :  { %4275 = vmatprep.mubr.bf16.mxu0 %v5931_v13  ;;  %4416 = vmatpush1.bf16.msra.mxu1 %v4960_v19  ;;  %v5017_v19 = vcombine.high %v929_v47, %v933_v16  ;;  %v5016_v12 = vcombine.low %v929_v47, %v933_v16  ;;  %v973_v48 = vld [vmem:[#allocation11 + $0x738] sm:$0xff] }
 0x27d   :  { %4447 = vmatprep.mubr.bf16.mxu1 %v5931_v13  ;;  %4245 = vmatprep.subr.bf16.mxu0 %v4967_v24  ;;  %v4982_v13 = vcombine.low %v896_v18, %v900_v44  ;;  %v936_v24 = vld [vmem:[#allocation11 + $0x610] sm:$0xff]  ;;  %v945_v18 = vld [vmem:[#allocation11 + $0x658] sm:$0xff]  ;;  %v5056_v16 = vcombine.low %v969_v30, %v973_v48 }
 0x27e   :  { %4417 = vmatprep.subr.bf16.mxu1 %v4969_v7  ;;  %v941_v7 = vld [vmem:[#allocation11 + $0x638] sm:$0xff]  ;;  %v5022_v49 = vcombine.low %v936_v24, %v940_v25 }
 0x27f   :  { %4246 = vmatpush1.bf16.msra.mxu0 %v4966_v9  ;;  %v5023_v9 = vcombine.high %v936_v24, %v940_v25  ;;  %v949_v44 = vld [vmem:[#allocation11 + $0x678] sm:$0xff]  ;;  %v5024_v51 = vcombine.low %v937_v31, %v941_v7 }
 0x280   :  { %4418 = vmatpush1.bf16.msra.mxu1 %v4968_v11  ;;  %4247 = vmatprep.subr.bf16.mxu0 %v4975_v42  ;;  %v5025_v11 = vcombine.high %v937_v31, %v941_v7  ;;  %v944_v42 = vld [vmem:[#allocation11 + $0x650] sm:$0xff]  ;;  %v5032_v45 = vcombine.low %v945_v18, %v949_v44  ;;  %v977_v46 = vld [vmem:[#allocation11 + $0x758] sm:$0xff] }
 0x281   :  { %4419 = vmatprep.subr.bf16.mxu1 %v4977_v53  ;;  %v948_v53 = vld [vmem:[#allocation11 + $0x670] sm:$0xff]  ;;  %v981_v15 = vld [vmem:[#allocation11 + $0x778] sm:$0xff] }
 0x282   :  { %v5030_v3 = vcombine.low %v944_v42, %v948_v53  ;;  %v985_v24 = vld [vmem:[#allocation11 + $0x798] sm:$0xff]  ;;  %v5064_v7 = vcombine.low %v977_v46, %v981_v15 }
 0x283   :  { %4248 = vmatpush1.bf16.msra.mxu0 %v4974_v56  ;;  %v5031_v56 = vcombine.high %v944_v42, %v948_v53  ;;  %v989_v25 = vld [vmem:[#allocation11 + $0x7b8] sm:$0xff] }
 0x284   :  { %4420 = vmatpush1.bf16.msra.mxu1 %v4976_v1  ;;  %4249 = vmatprep.subr.bf16.mxu0 %v4983_v57  ;;  %v5033_v1 = vcombine.high %v945_v18, %v949_v44  ;;  %v952_v57 = vld [vmem:[#allocation11 + $0x690] sm:$0xff]  ;;  %v993_v42 = vld [vmem:[#allocation11 + $0x7d8] sm:$0xff]  ;;  %v5072_v44 = vcombine.low %v985_v24, %v989_v25 }
 0x285   :  { %4421 = vmatprep.subr.bf16.mxu1 %v4985_v59  ;;  %v956_v59 = vld [vmem:[#allocation11 + $0x6b0] sm:$0xff]  ;;  %v997_v53 = vld [vmem:[#allocation11 + $0x7f8] sm:$0xff] }
 0x286   :  { %v5038_v52 = vcombine.low %v952_v57, %v956_v59 }
 0x287   :  { %4250 = vmatpush1.bf16.msra.mxu0 %v4982_v13  ;;  %v5039_v13 = vcombine.high %v952_v57, %v956_v59  ;;  %v1001_v57 = vld [vmem:[#allocation11 + $0x818] sm:$0xff] }
 0x288   :  { %4422 = vmatpush1.bf16.msra.mxu1 %v4984_v58  ;;  %4251 = vmatprep.subr.bf16.mxu0 %v4991_v60  ;;  %v5041_v58 = vcombine.high %v953_v0, %v957_v2  ;;  %v960_v60 = vld [vmem:[#allocation11 + $0x6d0] sm:$0xff]  ;;  %v1005_v59 = vld [vmem:[#allocation11 + $0x838] sm:$0xff]  ;;  %v5080_v2 = vcombine.low %v993_v42, %v997_v53 }
 0x289   :  { %4423 = vmatprep.subr.bf16.mxu1 %v4993_v62  ;;  %v964_v62 = vld [vmem:[#allocation11 + $0x6f0] sm:$0xff] }
 0x28a   :  { %v5046_v61 = vcombine.low %v960_v60, %v964_v62 }
 0x28b   :  { %4252 = vmatpush1.bf16.msra.mxu0 %v4990_v55  ;;  %v5047_v55 = vcombine.high %v960_v60, %v964_v62  ;;  %v1009_v62 = vld [vmem:[#allocation11 + $0x858] sm:$0xff] }
 0x28c   :  { %4424 = vmatpush1.bf16.msra.mxu1 %v4992_v14  ;;  %4253 = vmatprep.subr.bf16.mxu0 %v4999_v27  ;;  %v5049_v14 = vcombine.high %v961_v36, %v965_v37  ;;  %v968_v27 = vld [vmem:[#allocation11 + $0x710] sm:$0xff]  ;;  %v1013_v36 = vld [vmem:[#allocation11 + $0x878] sm:$0xff]  ;;  %v5088_v37 = vcombine.low %v1001_v57, %v1005_v59 }
 0x28d   :  { %4425 = vmatprep.subr.bf16.mxu1 %v5001_v35  ;;  %v972_v35 = vld [vmem:[#allocation11 + $0x730] sm:$0xff] }
 0x28e   :  { %v5054_v47 = vcombine.low %v968_v27, %v972_v35 }
 0x28f   :  { %4254 = vmatpush1.bf16.msra.mxu0 %v4998_v6  ;;  %v5055_v6 = vcombine.high %v968_v27, %v972_v35  ;;  %v1017_v27 = vld [vmem:[#allocation11 + $0x898] sm:$0xff] }
 0x290   :  { %4426 = vmatpush1.bf16.msra.mxu1 %v5000_v28  ;;  %4255 = vmatprep.subr.bf16.mxu0 %v5007_v41  ;;  %v5057_v28 = vcombine.high %v969_v30, %v973_v48  ;;  %v976_v41 = vld [vmem:[#allocation11 + $0x750] sm:$0xff]  ;;  %v1021_v35 = vld [vmem:[#allocation11 + $0x8b8] sm:$0xff]  ;;  %v5096_v48 = vcombine.low %v1009_v62, %v1013_v36 }
 0x291   :  { %4427 = vmatprep.subr.bf16.mxu1 %v5009_v21  ;;  %v980_v21 = vld [vmem:[#allocation11 + $0x770] sm:$0xff] }
 0x292   :  { %v5062_v31 = vcombine.low %v976_v41, %v980_v21 }
 0x293   :  { %4256 = vmatpush1.bf16.msra.mxu0 %v5006_v22  ;;  %v5063_v22 = vcombine.high %v976_v41, %v980_v21  ;;  %v1025_v41 = vld [vmem:[#allocation11 + $0x8d8] sm:$0xff] }
 0x294   :  { %4428 = vmatpush1.bf16.msra.mxu1 %v5008_v23  ;;  %4257 = vmatprep.subr.bf16.mxu0 %v5015_v17  ;;  %v5065_v23 = vcombine.high %v977_v46, %v981_v15  ;;  %v984_v17 = vld [vmem:[#allocation11 + $0x790] sm:$0xff]  ;;  %v1029_v21 = vld [vmem:[#allocation11 + $0x8f8] sm:$0xff] }
 0x295   :  { %4429 = vmatprep.subr.bf16.mxu1 %v5017_v19  ;;  %v988_v19 = vld [vmem:[#allocation11 + $0x7b0] sm:$0xff] }
 0x296   :  { %v5070_v18 = vcombine.low %v984_v17, %v988_v19 }
 0x297   :  { %4258 = vmatpush1.bf16.msra.mxu0 %v5014_v8  ;;  %v5071_v8 = vcombine.high %v984_v17, %v988_v19  ;;  %v1037_v17 = vld [vmem:[#allocation11 + $0x938] sm:$0xff]  ;;  %v5112_v19 = vcombine.low %v1025_v41, %v1029_v21 }
 0x298   :  { %4430 = vmatpush1.bf16.msra.mxu1 %v5016_v12  ;;  %4259 = vmatprep.subr.bf16.mxu0 %v5023_v9  ;;  %v5073_v12 = vcombine.high %v985_v24, %v989_v25  ;;  %v992_v9 = vld [vmem:[#allocation11 + $0x7d0] sm:$0xff] }
 0x299   :  { %4431 = vmatprep.subr.bf16.mxu1 %v5025_v11  ;;  %v996_v11 = vld [vmem:[#allocation11 + $0x7f0] sm:$0xff] }
 0x29a   :  { %v5078_v0 = vcombine.low %v992_v9, %v996_v11 }
 0x29b   :  { %4260 = vmatpush1.bf16.msra.mxu0 %v5022_v49  ;;  %v5079_v49 = vcombine.high %v992_v9, %v996_v11 }
 0x29c   :  { %4432 = vmatpush1.bf16.msra.mxu1 %v5024_v51  ;;  %4261 = vmatprep.subr.bf16.mxu0 %v5031_v56  ;;  %v5081_v51 = vcombine.high %v993_v42, %v997_v53  ;;  %v1000_v56 = vld [vmem:[#allocation11 + $0x810] sm:$0xff] }
 0x29d   :  { %4433 = vmatprep.subr.bf16.mxu1 %v5033_v1  ;;  %v1004_v1 = vld [vmem:[#allocation11 + $0x830] sm:$0xff] }
 0x29e   :  { %v5086_v60 = vcombine.low %v1000_v56, %v1004_v1 }
 0x29f   :  { %4262 = vmatpush1.bf16.msra.mxu0 %v5030_v3  ;;  %v5087_v3 = vcombine.high %v1000_v56, %v1004_v1 }
 0x2a0   :  { %4434 = vmatpush1.bf16.msra.mxu1 %v5032_v45  ;;  %4263 = vmatprep.subr.bf16.mxu0 %v5039_v13  ;;  %v5089_v45 = vcombine.high %v1001_v57, %v1005_v59  ;;  %v1008_v13 = vld [vmem:[#allocation11 + $0x850] sm:$0xff] }
 0x2a1   :  { %4435 = vmatprep.subr.bf16.mxu1 %v5041_v58  ;;  %v1012_v58 = vld [vmem:[#allocation11 + $0x870] sm:$0xff] }
 0x2a2   :  { %v5094_v30 = vcombine.low %v1008_v13, %v1012_v58 }
 0x2a3   :  { %4264 = vmatpush1.bf16.msra.mxu0 %v5038_v52  ;;  %v5095_v52 = vcombine.high %v1008_v13, %v1012_v58 }
 0x2a4   :  { %4436 = vmatpush1.bf16.msra.mxu1 %v5040_v54  ;;  %4265 = vmatprep.subr.bf16.mxu0 %v5047_v55  ;;  %v1016_v54 = vld [vmem:[#allocation11 + $0x890] sm:$0xff] }
 0x2a5   :  { %4437 = vmatprep.subr.bf16.mxu1 %v5049_v14  ;;  %v1020_v55 = vld [vmem:[#allocation11 + $0x8b0] sm:$0xff]  ;;  %v5097_v14 = vcombine.high %v1009_v62, %v1013_v36 }
 0x2a6   :  { %v5102_v46 = vcombine.low %v1016_v54, %v1020_v55  ;;  %v1064_v36 = vld [vmem:[#allocation11 + $0xa10] sm:$0xff] }
 0x2a7   :  { %4266 = vmatpush1.bf16.msra.mxu0 %v5046_v61  ;;  %v5103_v61 = vcombine.high %v1016_v54, %v1020_v55  ;;  %v1069_v54 = vld [vmem:[#allocation11 + $0xa38] sm:$0xff] }
 0x2a8   :  { %4438 = vmatpush1.bf16.msra.mxu1 %v5048_v38  ;;  %4267 = vmatprep.subr.bf16.mxu0 %v5055_v6  ;;  %v5105_v38 = vcombine.high %v1017_v27, %v1021_v35  ;;  %v1024_v6 = vld [vmem:[#allocation11 + $0x8d0] sm:$0xff] }
 0x2a9   :  { %4439 = vmatprep.subr.bf16.mxu1 %v5057_v28  ;;  %v1028_v28 = vld [vmem:[#allocation11 + $0x8f0] sm:$0xff] }
 0x2aa   :  { %v5111_v15 = vcombine.high %v1024_v6, %v1028_v28 }
 0x2ab   :  { %4268 = vmatpush1.bf16.msra.mxu0 %v5054_v47  ;;  %v5113_v47 = vcombine.high %v1025_v41, %v1029_v21 }
 0x2ac   :  { %4440 = vmatpush1.bf16.msra.mxu1 %v5056_v16  ;;  %4269 = vmatprep.subr.bf16.mxu0 %v5063_v22  ;;  %v1032_v16 = vld [vmem:[#allocation11 + $0x910] sm:$0xff] }
 0x2ad   :  { %4441 = vmatprep.subr.bf16.mxu1 %v5065_v23  ;;  %v1036_v22 = vld [vmem:[#allocation11 + $0x930] sm:$0xff]  ;;  %v1033_v23 = vld [vmem:[#allocation11 + $0x918] sm:$0xff] }
 0x2ae   :  { %v5119_v24 = vcombine.high %v1032_v16, %v1036_v22  ;;  %v5121_v25 = vcombine.high %v1033_v23, %v1037_v17  ;;  %v5118_v9 = vcombine.low %v1032_v16, %v1036_v22  ;;  %v5120_v11 = vcombine.low %v1033_v23, %v1037_v17 }
 0x2af   :  { %4270 = vmatpush1.bf16.msra.mxu0 %v5062_v31  ;;  %v1040_v31 = vld [vmem:[#allocation11 + $0x950] sm:$0xff] }
 0x2b0   :  { %4442 = vmatpush1.bf16.msra.mxu1 %v5064_v7  ;;  %4271 = vmatprep.subr.bf16.mxu0 %v5071_v8  ;;  %v1044_v7 = vld [vmem:[#allocation11 + $0x970] sm:$0xff]  ;;  %v1041_v8 = vld [vmem:[#allocation11 + $0x958] sm:$0xff] }
 0x2b1   :  { %4443 = vmatprep.subr.bf16.mxu1 %v5073_v12  ;;  %v1045_v12 = vld [vmem:[#allocation11 + $0x978] sm:$0xff]  ;;  %v5127_v42 = vcombine.high %v1040_v31, %v1044_v7  ;;  %v5126_v56 = vcombine.low %v1040_v31, %v1044_v7 }
 0x2b2   :  { %v5129_v53 = vcombine.high %v1041_v8, %v1045_v12  ;;  %v5128_v1 = vcombine.low %v1041_v8, %v1045_v12 }
 0x2b3   :  { %4272 = vmatpush1.bf16.msra.mxu0 %v5070_v18  ;;  %v1048_v18 = vld [vmem:[#allocation11 + $0x990] sm:$0xff] }
 0x2b4   :  { %4444 = vmatpush1.bf16.msra.mxu1 %v5072_v44  ;;  %4273 = vmatprep.subr.bf16.mxu0 %v5079_v49  ;;  %v1052_v44 = vld [vmem:[#allocation11 + $0x9b0] sm:$0xff]  ;;  %v1049_v49 = vld [vmem:[#allocation11 + $0x998] sm:$0xff] }
 0x2b5   :  { %4445 = vmatprep.subr.bf16.mxu1 %v5081_v51  ;;  %v1053_v51 = vld [vmem:[#allocation11 + $0x9b8] sm:$0xff]  ;;  %v5135_v57 = vcombine.high %v1048_v18, %v1052_v44  ;;  %v5134_v13 = vcombine.low %v1048_v18, %v1052_v44 }
 0x2b6   :  { %v5137_v59 = vcombine.high %v1049_v49, %v1053_v51  ;;  %v5136_v58 = vcombine.low %v1049_v49, %v1053_v51 }
 0x2b7   :  { %4274 = vmatpush1.bf16.msra.mxu0 %v5078_v0  ;;  %v1056_v0 = vld [vmem:[#allocation11 + $0x9d0] sm:$0xff] }
 0x2b8   :  { %4446 = vmatpush1.bf16.msra.mxu1 %v5080_v2  ;;  %4286 = vmatprep.subr.bf16.mxu0 %v5087_v3  ;;  %v1060_v2 = vld [vmem:[#allocation11 + $0x9f0] sm:$0xff]  ;;  %v1057_v3 = vld [vmem:[#allocation11 + $0x9d8] sm:$0xff] }
 0x2b9   :  { %4458 = vmatprep.subr.bf16.mxu1 %v5089_v45  ;;  %v1061_v45 = vld [vmem:[#allocation11 + $0x9f8] sm:$0xff]  ;;  %v5142_v55 = vcombine.low %v1056_v0, %v1060_v2 }
 0x2ba   :  { %4276 = vmatmul.mubr.bf16.vlgmr.msra.gmra.mrb[20].mxu0 %v5928_v34  ;;  %v5145_v62 = vcombine.high %v1057_v3, %v1061_v45 }
 0x2bb   :  { %4448 = vmatmul.mubr.bf16.vlgmr.msra.gmra.mrb[20].mxu1 %v5928_v34  ;;  %4287 = vmatpush1.bf16.msra.mxu0 %v5086_v60  ;;  %v5104_v34 = vcombine.low %v1017_v27, %v1021_v35  ;;  %v5143_v60 = vcombine.high %v1056_v0, %v1060_v2 }
 0x2bc   :  { %4318 = vmatprep.mubr.bf16.mxu0 %v5939_v50  ;;  %4459 = vmatpush1.bf16.msra.mxu1 %v5088_v37  ;;  %v1068_v37 = vld [vmem:[#allocation11 + $0xa30] sm:$0xff] }
 0x2bd   :  { %4490 = vmatprep.mubr.bf16.mxu1 %v5939_v50  ;;  %4288 = vmatprep.subr.bf16.mxu0 %v5095_v52  ;;  %v5110_v50 = vcombine.low %v1024_v6, %v1028_v28  ;;  %v1065_v52 = vld [vmem:[#allocation11 + $0xa18] sm:$0xff]  ;;  %v5151_v27 = vcombine.high %v1064_v36, %v1068_v37  ;;  %v5150_v6 = vcombine.low %v1064_v36, %v1068_v37 }
 0x2be   :  { %4460 = vmatprep.subr.bf16.mxu1 %v5097_v14  ;;  %v5144_v14 = vcombine.low %v1057_v3, %v1061_v45  ;;  %v5153_v35 = vcombine.high %v1065_v52, %v1069_v54  ;;  %v5152_v28 = vcombine.low %v1065_v52, %v1069_v54 }
 0x2bf   :  { %4289 = vmatpush1.bf16.msra.mxu0 %v5094_v30  ;;  %v1072_v30 = vld [vmem:[#allocation11 + $0xa50] sm:$0xff] }
 0x2c0   :  { %4461 = vmatpush1.bf16.msra.mxu1 %v5096_v48  ;;  %4290 = vmatprep.subr.bf16.mxu0 %v5103_v61  ;;  %v1076_v48 = vld [vmem:[#allocation11 + $0xa70] sm:$0xff]  ;;  %v1073_v61 = vld [vmem:[#allocation11 + $0xa58] sm:$0xff] }
 0x2c1   :  { %4462 = vmatprep.subr.bf16.mxu1 %v5105_v38  ;;  %v1077_v38 = vld [vmem:[#allocation11 + $0xa78] sm:$0xff]  ;;  %v5159_v41 = vcombine.high %v1072_v30, %v1076_v48  ;;  %v5158_v16 = vcombine.low %v1072_v30, %v1076_v48 }
 0x2c2   :  { %v5161_v21 = vcombine.high %v1073_v61, %v1077_v38  ;;  %v5160_v22 = vcombine.low %v1073_v61, %v1077_v38 }
 0x2c3   :  { %4291 = vmatpush1.bf16.msra.mxu0 %v5102_v46  ;;  %v1080_v46 = vld [vmem:[#allocation11 + $0xa90] sm:$0xff] }
 0x2c4   :  { %4463 = vmatpush1.bf16.msra.mxu1 %v5104_v34  ;;  %4292 = vmatprep.subr.bf16.mxu0 %v5111_v15  ;;  %v1084_v34 = vld [vmem:[#allocation11 + $0xab0] sm:$0xff]  ;;  %v1081_v15 = vld [vmem:[#allocation11 + $0xa98] sm:$0xff] }
 0x2c5   :  { %4464 = vmatprep.subr.bf16.mxu1 %v5113_v47  ;;  %v1085_v47 = vld [vmem:[#allocation11 + $0xab8] sm:$0xff]  ;;  %v5167_v23 = vcombine.high %v1080_v46, %v1084_v34  ;;  %v5166_v31 = vcombine.low %v1080_v46, %v1084_v34 }
 0x2c6   :  { %v5169_v17 = vcombine.high %v1081_v15, %v1085_v47  ;;  %v5168_v7 = vcombine.low %v1081_v15, %v1085_v47 }
 0x2c7   :  { %4293 = vmatpush1.bf16.msra.mxu0 %v5110_v50  ;;  %v1088_v50 = vld [vmem:[#allocation11 + $0xad0] sm:$0xff] }
 0x2c8   :  { %4465 = vmatpush1.bf16.msra.mxu1 %v5112_v19  ;;  %4294 = vmatprep.subr.bf16.mxu0 %v5119_v24  ;;  %v1092_v19 = vld [vmem:[#allocation11 + $0xaf0] sm:$0xff]  ;;  %v1089_v24 = vld [vmem:[#allocation11 + $0xad8] sm:$0xff] }
 0x2c9   :  { %4466 = vmatprep.subr.bf16.mxu1 %v5121_v25  ;;  %v1093_v25 = vld [vmem:[#allocation11 + $0xaf8] sm:$0xff]  ;;  %v5175_v8 = vcombine.high %v1088_v50, %v1092_v19  ;;  %v5174_v18 = vcombine.low %v1088_v50, %v1092_v19 }
 0x2ca   :  { %v5177_v12 = vcombine.high %v1089_v24, %v1093_v25  ;;  %v5176_v44 = vcombine.low %v1089_v24, %v1093_v25  ;;  %v1141_v50 = vld [vmem:[#allocation11 + $0xc78] sm:$0xff]  ;;  %v1144_v25 = vld [vmem:[#allocation11 + $0xc90] sm:$0xff] }
 0x2cb   :  { %4295 = vmatpush1.bf16.msra.mxu0 %v5118_v9  ;;  %v1096_v9 = vld [vmem:[#allocation11 + $0xb10] sm:$0xff] }
 0x2cc   :  { %4467 = vmatpush1.bf16.msra.mxu1 %v5120_v11  ;;  %4296 = vmatprep.subr.bf16.mxu0 %v5127_v42  ;;  %v1100_v11 = vld [vmem:[#allocation11 + $0xb30] sm:$0xff]  ;;  %v1097_v42 = vld [vmem:[#allocation11 + $0xb18] sm:$0xff] }
 0x2cd   :  { %4468 = vmatprep.subr.bf16.mxu1 %v5129_v53  ;;  %v1101_v53 = vld [vmem:[#allocation11 + $0xb38] sm:$0xff]  ;;  %v5183_v49 = vcombine.high %v1096_v9, %v1100_v11  ;;  %v5182_v0 = vcombine.low %v1096_v9, %v1100_v11 }
 0x2ce   :  { %v5185_v51 = vcombine.high %v1097_v42, %v1101_v53  ;;  %v5184_v2 = vcombine.low %v1097_v42, %v1101_v53 }
 0x2cf   :  { %4297 = vmatpush1.bf16.msra.mxu0 %v5126_v56  ;;  %v1104_v56 = vld [vmem:[#allocation11 + $0xb50] sm:$0xff] }
 0x2d0   :  { %4469 = vmatpush1.bf16.msra.mxu1 %v5128_v1  ;;  %4298 = vmatprep.subr.bf16.mxu0 %v5135_v57  ;;  %v1108_v1 = vld [vmem:[#allocation11 + $0xb70] sm:$0xff]  ;;  %v1105_v57 = vld [vmem:[#allocation11 + $0xb58] sm:$0xff] }
 0x2d1   :  { %4470 = vmatprep.subr.bf16.mxu1 %v5137_v59  ;;  %v1109_v59 = vld [vmem:[#allocation11 + $0xb78] sm:$0xff]  ;;  %v5191_v3 = vcombine.high %v1104_v56, %v1108_v1  ;;  %v5190_v36 = vcombine.low %v1104_v56, %v1108_v1 }
 0x2d2   :  { %v5193_v45 = vcombine.high %v1105_v57, %v1109_v59  ;;  %v5192_v37 = vcombine.low %v1105_v57, %v1109_v59  ;;  %v1160_v59 = vld [vmem:[#allocation11 + $0xd10] sm:$0xff] }
 0x2d3   :  { %4299 = vmatpush1.bf16.msra.mxu0 %v5134_v13  ;;  %v1112_v13 = vld [vmem:[#allocation11 + $0xb90] sm:$0xff] }
 0x2d4   :  { %4471 = vmatpush1.bf16.msra.mxu1 %v5136_v58  ;;  %4300 = vmatprep.subr.bf16.mxu0 %v5143_v60  ;;  %v1116_v58 = vld [vmem:[#allocation11 + $0xbb0] sm:$0xff]  ;;  %v1113_v60 = vld [vmem:[#allocation11 + $0xb98] sm:$0xff] }
 0x2d5   :  { %4472 = vmatprep.subr.bf16.mxu1 %v5145_v62  ;;  %v1117_v62 = vld [vmem:[#allocation11 + $0xbb8] sm:$0xff]  ;;  %v5199_v52 = vcombine.high %v1112_v13, %v1116_v58  ;;  %v5198_v30 = vcombine.low %v1112_v13, %v1116_v58 }
 0x2d6   :  { %v5201_v54 = vcombine.high %v1113_v60, %v1117_v62  ;;  %v5200_v48 = vcombine.low %v1113_v60, %v1117_v62 }
 0x2d7   :  { %4301 = vmatpush1.bf16.msra.mxu0 %v5142_v55  ;;  %v1120_v55 = vld [vmem:[#allocation11 + $0xbd0] sm:$0xff] }
 0x2d8   :  { %4473 = vmatpush1.bf16.msra.mxu1 %v5144_v14  ;;  %4302 = vmatprep.subr.bf16.mxu0 %v5151_v27  ;;  %v1124_v14 = vld [vmem:[#allocation11 + $0xbf0] sm:$0xff]  ;;  %v1121_v27 = vld [vmem:[#allocation11 + $0xbd8] sm:$0xff] }
 0x2d9   :  { %4474 = vmatprep.subr.bf16.mxu1 %v5153_v35  ;;  %v1125_v35 = vld [vmem:[#allocation11 + $0xbf8] sm:$0xff]  ;;  %v5207_v61 = vcombine.high %v1120_v55, %v1124_v14  ;;  %v5206_v46 = vcombine.low %v1120_v55, %v1124_v14  ;;  %v5982_v14 = vld [vmem:[#allocation12] sm:$0xff] }
 0x2da   :  { %v5209_v38 = vcombine.high %v1121_v27, %v1125_v35  ;;  %v5208_v34 = vcombine.low %v1121_v27, %v1125_v35 }
 0x2db   :  { %4303 = vmatpush1.bf16.msra.mxu0 %v5150_v6  ;;  %v1128_v6 = vld [vmem:[#allocation11 + $0xc10] sm:$0xff] }
 0x2dc   :  { %4475 = vmatpush1.bf16.msra.mxu1 %v5152_v28  ;;  %4304 = vmatprep.subr.bf16.mxu0 %v5159_v41  ;;  %v1132_v28 = vld [vmem:[#allocation11 + $0xc30] sm:$0xff]  ;;  %v1129_v41 = vld [vmem:[#allocation11 + $0xc18] sm:$0xff] }
 0x2dd   :  { %4476 = vmatprep.subr.bf16.mxu1 %v5161_v21  ;;  %v1133_v21 = vld [vmem:[#allocation11 + $0xc38] sm:$0xff]  ;;  %v5215_v15 = vcombine.high %v1128_v6, %v1132_v28 }
 0x2de   :  { %v5217_v47 = vcombine.high %v1129_v41, %v1133_v21  ;;  %v5216_v19 = vcombine.low %v1129_v41, %v1133_v21  ;;  %v1259_v41 = vrot.slane %v5982_v14, %v5833_v26 }
 0x2df   :  { %4305 = vmatpush1.bf16.msra.mxu0 %v5158_v16  ;;  %v1136_v16 = vld [vmem:[#allocation11 + $0xc50] sm:$0xff] }
 0x2e0   :  { %4477 = vmatpush1.bf16.msra.mxu1 %v5160_v22  ;;  %4306 = vmatprep.subr.bf16.mxu0 %v5167_v23  ;;  %v1140_v22 = vld [vmem:[#allocation11 + $0xc70] sm:$0xff]  ;;  %v5214_v23 = vcombine.low %v1128_v6, %v1132_v28 }
 0x2e1   :  { %4478 = vmatprep.subr.bf16.mxu1 %v5169_v17  ;;  %v1137_v17 = vld [vmem:[#allocation11 + $0xc58] sm:$0xff]  ;;  %v5223_v24 = vcombine.high %v1136_v16, %v1140_v22  ;;  %v5222_v9 = vcombine.low %v1136_v16, %v1140_v22  ;;  %v5987_v6 = vld [vmem:[#allocation11 + $0xd90] sm:$0xff]  ;;  %v1271_v22 = vrot.slane %v5982_v14, %v429_v40 }
 0x2e2   :  { %v5224_v11 = vcombine.low %v1137_v17, %v1141_v50  ;;  %v5989_v28 = vld [vmem:[#allocation11 + $0xdb0] sm:$0xff]  ;;  %v1185_v40 = vld [vmem:[#allocation11 + $0xdd8] sm:$0xff] }
 0x2e3   :  { %4307 = vmatpush1.bf16.msra.mxu0 %v5166_v31  ;;  %v1148_v31 = vld [vmem:[#allocation11 + $0xcb0] sm:$0xff] }
 0x2e4   :  { %4479 = vmatpush1.bf16.msra.mxu1 %v5168_v7  ;;  %4308 = vmatprep.subr.bf16.mxu0 %v5175_v8  ;;  %v5225_v7 = vcombine.high %v1137_v17, %v1141_v50  ;;  %v1145_v8 = vld [vmem:[#allocation11 + $0xc98] sm:$0xff]  ;;  %v5231_v42 = vcombine.high %v1144_v25, %v1148_v31  ;;  %v5230_v56 = vcombine.low %v1144_v25, %v1148_v31  ;;  %v6004_v50 = vld [vmem:[#allocation11 + $0xdd0] sm:$0xff] }
 0x2e5   :  { %4480 = vmatprep.subr.bf16.mxu1 %v5177_v12  ;;  %v1149_v12 = vld [vmem:[#allocation11 + $0xcb8] sm:$0xff]  ;;  %v5263_v17 = vcombine.high %v5987_v6, %v5989_v28 }
 0x2e6   :  { %v5233_v53 = vcombine.high %v1145_v8, %v1149_v12 }
 0x2e7   :  { %4309 = vmatpush1.bf16.msra.mxu0 %v5174_v18  ;;  %v1152_v18 = vld [vmem:[#allocation11 + $0xcd0] sm:$0xff] }
 0x2e8   :  { %4481 = vmatpush1.bf16.msra.mxu1 %v5176_v44  ;;  %4310 = vmatprep.subr.bf16.mxu0 %v5183_v49  ;;  %v1156_v44 = vld [vmem:[#allocation11 + $0xcf0] sm:$0xff]  ;;  %v1153_v49 = vld [vmem:[#allocation11 + $0xcd8] sm:$0xff] }
 0x2e9   :  { %4482 = vmatprep.subr.bf16.mxu1 %v5185_v51  ;;  %v1157_v51 = vld [vmem:[#allocation11 + $0xcf8] sm:$0xff]  ;;  %v5239_v1 = vcombine.high %v1152_v18, %v1156_v44 }
 0x2ea   :  { %v5241_v57 = vcombine.high %v1153_v49, %v1157_v51  ;;  %v5240_v13 = vcombine.low %v1153_v49, %v1157_v51 }
 0x2eb   :  { %4311 = vmatpush1.bf16.msra.mxu0 %v5182_v0  ;;  %v1164_v0 = vld [vmem:[#allocation11 + $0xd30] sm:$0xff] }
 0x2ec   :  { %4483 = vmatpush1.bf16.msra.mxu1 %v5184_v2  ;;  %4312 = vmatprep.subr.bf16.mxu0 %v5191_v3  ;;  %v1161_v2 = vld [vmem:[#allocation11 + $0xd18] sm:$0xff]  ;;  %v5247_v58 = vcombine.high %v1160_v59, %v1164_v0  ;;  %v5246_v55 = vcombine.low %v1160_v59, %v1164_v0 }
 0x2ed   :  { %4484 = vmatprep.subr.bf16.mxu1 %v5193_v45  ;;  %v1165_v3 = vld [vmem:[#allocation11 + $0xd38] sm:$0xff]  ;;  %v5238_v45 = vcombine.low %v1152_v18, %v1156_v44 }
 0x2ee   :  { %v5249_v60 = vcombine.high %v1161_v2, %v1165_v3  ;;  %v5248_v27 = vcombine.low %v1161_v2, %v1165_v3 }
 0x2ef   :  { %4313 = vmatpush1.bf16.msra.mxu0 %v5190_v36  ;;  %v1168_v36 = vld [vmem:[#allocation11 + $0xd50] sm:$0xff] }
 0x2f0   :  { %4485 = vmatpush1.bf16.msra.mxu1 %v5192_v37  ;;  %4314 = vmatprep.subr.bf16.mxu0 %v5199_v52  ;;  %v1172_v37 = vld [vmem:[#allocation11 + $0xd70] sm:$0xff]  ;;  %v1169_v52 = vld [vmem:[#allocation11 + $0xd58] sm:$0xff] }
 0x2f1   :  { %4486 = vmatprep.subr.bf16.mxu1 %v5201_v54  ;;  %v1173_v54 = vld [vmem:[#allocation11 + $0xd78] sm:$0xff]  ;;  %v5255_v35 = vcombine.high %v1168_v36, %v1172_v37  ;;  %v5254_v16 = vcombine.low %v1168_v36, %v1172_v37 }
 0x2f3   :  { %4315 = vmatpush1.bf16.msra.mxu0 %v5198_v30 }
 0x2f4   :  { %4487 = vmatpush1.bf16.msra.mxu1 %v5200_v48  ;;  %4316 = vmatprep.subr.bf16.mxu0 %v5207_v61 }
 0x2f5   :  { %4488 = vmatprep.subr.bf16.mxu1 %v5209_v38  ;;  %v5257_v38 = vcombine.high %v1169_v52, %v1173_v54 }
 0x2f7   :  { %4317 = vmatpush1.bf16.msra.mxu0 %v5206_v46  ;;  %v1177_v46 = vld [vmem:[#allocation11 + $0xd98] sm:$0xff] }
 0x2f8   :  { %4489 = vmatpush1.bf16.msra.mxu1 %v5208_v34  ;;  %4329 = vmatprep.subr.bf16.mxu0 %v5215_v15  ;;  %v1181_v34 = vld [vmem:[#allocation11 + $0xdb8] sm:$0xff]  ;;  %v1267_v15 = vrot.slane %v5982_v14, %v5856_v39 }
 0x2f9   :  { %4501 = vmatprep.subr.bf16.mxu1 %v5217_v47  ;;  %v1263_v47 = vrot.slane %v5982_v14, %v421_v29  ;;  %v5264_v18 = vcombine.low %v1177_v46, %v1181_v34 }
 0x2fa   :  { %4319 = vmatmul.mubr.bf16.vlgmr.msra.gmra.mrb[20].mxu0 %v5933_v43 }
 0x2fb   :  { %4491 = vmatmul.mubr.bf16.vlgmr.msra.gmra.mrb[20].mxu1 %v5933_v43  ;;  %4330 = vmatpush1.bf16.msra.mxu0 %v5214_v23  ;;  %v5232_v43 = vcombine.low %v1145_v8, %v1149_v12  ;;  %v5256_v23 = vcombine.low %v1169_v52, %v1173_v54  ;;  %v1189_v8 = vld [vmem:[#allocation11 + $0xdf8] sm:$0xff]  ;;  %v1196_v52 = vld [vmem:[#allocation11 + $0xe30] sm:$0xff] }
 0x2fc   :  { %4361 = vmatprep.mubr.bf16.mxu0 %v5953_v10  ;;  %4502 = vmatpush1.bf16.msra.mxu1 %v5216_v19  ;;  %v6006_v19 = vld [vmem:[#allocation11 + $0xdf0] sm:$0xff]  ;;  %v1193_v54 = vld [vmem:[#allocation11 + $0xe18] sm:$0xff] }
 0x2fd   :  { %4533 = vmatprep.mubr.bf16.mxu1 %v5953_v10  ;;  %4331 = vmatprep.subr.bf16.mxu0 %v5223_v24  ;;  %v5979_v10 = vld [vmem:[#allocation14] sm:$0xff] }
 0x2fe   :  { %4503 = vmatprep.subr.bf16.mxu1 %v5225_v7  ;;  %v4561_v62 = vunpack.c.l.bf16 %v5979_v10  ;;  %v5265_v7 = vcombine.high %v1177_v46, %v1181_v34 }
 0x2ff   :  { %4332 = vmatpush1.bf16.msra.mxu0 %v5222_v9 }
 0x300   :  { %4504 = vmatpush1.bf16.msra.mxu1 %v5224_v11  ;;  %4333 = vmatprep.subr.bf16.mxu0 %v5231_v42  ;;  %v4568_v30 = vrot.slane %v4561_v62, %v5833_v26  ;;  %v4576_v48 = vrot.slane %v4561_v62, %v5841_v32  ;;  %v4572_v61 = vrot.slane %v4561_v62, %v5856_v39 }
 0x301   :  { %4505 = vmatprep.subr.bf16.mxu1 %v5233_v53  ;;  %v4580_v21 = vrot.slane %v4561_v62, %v5886_v4  ;;  %v5262_v53 = vcombine.low %v5987_v6, %v5989_v28 }
 0x302   :  { %v4608_v25 = vrot.slane %v4568_v30, %v5833_v26  ;;  %v6010_v29 = vrot.slane %v4576_v48, %v5833_v26  ;;  %v4612_v31 = vrot.slane %v4572_v61, %v5833_v26  ;;  %v5272_v48 = vcombine.low %v1185_v40, %v1189_v8 }
 0x303   :  { %4334 = vmatpush1.bf16.msra.mxu0 %v5230_v56  ;;  %v4620_v42 = vrot.slane %v4580_v21, %v5833_v26 }
 0x304   :  { %4506 = vmatpush1.bf16.msra.mxu1 %v5232_v43  ;;  %4335 = vmatprep.subr.bf16.mxu0 %v5239_v1  ;;  %v5270_v43 = vcombine.low %v6004_v50, %v6006_v19  ;;  %v5271_v1 = vcombine.high %v6004_v50, %v6006_v19  ;;  %v1201_v50 = vld [vmem:[#allocation11 + $0xe58] sm:$0xff] }
 0x305   :  { %4507 = vmatprep.subr.bf16.mxu1 %v5241_v57  ;;  %v1205_v19 = vld [vmem:[#allocation11 + $0xe78] sm:$0xff] }
 0x307   :  { %4336 = vmatpush1.bf16.msra.mxu0 %v5238_v45  ;;  %v5273_v45 = vcombine.high %v1185_v40, %v1189_v8 }
 0x308   :  { %4508 = vmatpush1.bf16.msra.mxu1 %v5240_v13  ;;  %4337 = vmatprep.subr.bf16.mxu0 %v5247_v58  ;;  %v1192_v13 = vld [vmem:[#allocation11 + $0xe10] sm:$0xff] }
 0x309   :  { %4509 = vmatprep.subr.bf16.mxu1 %v5249_v60  ;;  %v5279_v21 = vcombine.high %v1192_v13, %v1196_v52 }
 0x30b   :  { %4338 = vmatpush1.bf16.msra.mxu0 %v5246_v55  ;;  %v1197_v55 = vld [vmem:[#allocation11 + $0xe38] sm:$0xff] }
 0x30c   :  { %4510 = vmatpush1.bf16.msra.mxu1 %v5248_v27  ;;  %4339 = vmatprep.subr.bf16.mxu0 %v5255_v35  ;;  %v5281_v46 = vcombine.high %v1193_v54, %v1197_v55  ;;  %v5280_v8 = vcombine.low %v1193_v54, %v1197_v55 }
 0x30d   :  { %v4019_v24 = vpop.f32.mrb[16].mxu0  ;;  %4511 = vmatprep.subr.bf16.mxu1 %v5257_v38 }
 0x30e   :  { %v5339_v12 = vadd.f32 %v4019_v24, %v1259_v41  ;;  %v4191_v9 = vpop.f32.mrb[16].mxu1  ;;  %v4021_v11 = vpop.f32.mrb[17].mxu0 }
 0x30f   :  { %v5343_v44 = vadd.f32 %v4191_v9, %v1267_v15  ;;  %v5340_v49 = vadd.f32 %v4021_v11, %v1263_v47  ;;  %v4193_v51 = vpop.f32.mrb[17].mxu1  ;;  %v4023_v56 = vpop.f32.mrb[18].mxu0  ;;  %4340 = vmatpush1.bf16.msra.mxu0 %v5254_v16 }
 0x310   :  { %v4544_v57 = vmax.f32 %v5339_v12, 0.0  ;;  %v5344_v59 = vadd.f32 %v4193_v51, %v1271_v22  ;;  %v5341_v0 = vadd.f32 %v4023_v56, %v1259_v41  ;;  %v4195_v2 = vpop.f32.mrb[18].mxu1  ;;  %4512 = vmatpush1.bf16.msra.mxu1 %v5256_v23  ;;  %v4025_v3 = vpop.f32.mrb[19].mxu0  ;;  %4341 = vmatprep.subr.bf16.mxu0 %v5263_v17  ;;  %v1200_v23 = vld [vmem:[#allocation11 + $0xe50] sm:$0xff]  ;;  %v1213_v51 = vld [vmem:[#allocation11 + $0xeb8] sm:$0xff] }
 0x311   :  { %v4546_v58 = vmax.f32 %v5343_v44, 0.0  ;;  %v4545_v60 = vmax.f32 %v5340_v49, 0.0  ;;  %v5345_v62 = vadd.f32 %v4195_v2, %v1267_v15  ;;  %v5342_v36 = vadd.f32 %v4025_v3, %v1263_v47  ;;  %v4197_v37 = vpop.f32.mrb[19].mxu1  ;;  %4513 = vmatprep.subr.bf16.mxu1 %v5265_v7  ;;  %v1204_v17 = vld [vmem:[#allocation11 + $0xe70] sm:$0xff]  ;;  %v1209_v49 = vld [vmem:[#allocation11 + $0xe98] sm:$0xff] }
 0x312   :  { %v4637_v27 = vmul.f32 %v4608_v25, %v4544_v57  ;;  %v4552_v35 = vmax.f32 %v5341_v0, 0.0  ;;  %v5346_v30 = vadd.f32 %v4197_v37, %v1271_v22  ;;  %v4547_v38 = vmax.f32 %v5344_v59, 0.0  ;;  %v1212_v44 = vld [vmem:[#allocation11 + $0xeb0] sm:$0xff]  ;;  %v1221_v2 = vld [vmem:[#allocation11 + $0xef8] sm:$0xff] }
 0x313   :  { %v4638_v61 = vmul.f32 %v4612_v31, %v4545_v60  ;;  %v4554_v6 = vmax.f32 %v5345_v62, 0.0  ;;  %v4553_v28 = vmax.f32 %v5342_v36, 0.0  ;;  %4342 = vmatpush1.bf16.msra.mxu0 %v5262_v53  ;;  %v4639_v34 = vmul.f32 %v6010_v29, %v4546_v58  ;;  %v1216_v59 = vld [vmem:[#allocation11 + $0xed0] sm:$0xff]  ;;  %v1225_v36 = vld [vmem:[#allocation11 + $0xf18] sm:$0xff] }
 0x314   :  { %v4645_v41 = vmul.f32 %v4608_v25, %v4552_v35  ;;  %4514 = vmatpush1.bf16.msra.mxu1 %v5264_v18  ;;  %4343 = vmatprep.subr.bf16.mxu0 %v5271_v1  ;;  %v4555_v16 = vmax.f32 %v5346_v30, 0.0  ;;  %v5278_v22 = vcombine.low %v1192_v13, %v1196_v52  ;;  %v4640_v24 = vmul.f32 %v4620_v42, %v4547_v38  ;;  %v1208_v18 = vld [vmem:[#allocation11 + $0xe90] sm:$0xff]  ;;  %v1229_v37 = vld [vmem:[#allocation11 + $0xf38] sm:$0xff] }
 0x315   :  { %v4653_v15 = vadd.f32 %v4638_v61, %v4637_v27  ;;  %v4646_v47 = vmul.f32 %v4612_v31, %v4553_v28  ;;  %4515 = vmatprep.subr.bf16.mxu1 %v5273_v45  ;;  %v4647_v40 = vmul.f32 %v6010_v29, %v4554_v6  ;;  %v5287_v12 = vcombine.high %v1200_v23, %v1204_v17  ;;  %v1220_v0 = vld [vmem:[#allocation11 + $0xef0] sm:$0xff]  ;;  %v1237_v61 = vld [vmem:[#allocation11 + $0xf78] sm:$0xff] }
 0x316   :  { %v4648_v31 = vmul.f32 %v4620_v42, %v4555_v16  ;;  %v5289_v53 = vcombine.high %v1201_v50, %v1205_v19  ;;  %v5286_v29 = vcombine.low %v1200_v23, %v1204_v17  ;;  %v5295_v1 = vcombine.high %v1208_v18, %v1212_v44  ;;  %v1217_v42 = vld [vmem:[#allocation11 + $0xed8] sm:$0xff]  ;;  %v1224_v60 = vld [vmem:[#allocation11 + $0xf10] sm:$0xff] }
 0x317   :  { %v4654_v7 = vadd.f32 %v4653_v15, %v4639_v34  ;;  %v4662_v25 = vadd.f32 %v4646_v47, %v4645_v41  ;;  %4344 = vmatpush1.bf16.msra.mxu0 %v5270_v43  ;;  %v5288_v43 = vcombine.low %v1201_v50, %v1205_v19  ;;  %v5297_v57 = vcombine.high %v1209_v49, %v1213_v51  ;;  %v1228_v62 = vld [vmem:[#allocation11 + $0xf30] sm:$0xff]  ;;  %v1241_v34 = vld [vmem:[#allocation11 + $0xf98] sm:$0xff] }
 0x318   :  { %4516 = vmatpush1.bf16.msra.mxu1 %v5272_v48  ;;  %4345 = vmatprep.subr.bf16.mxu0 %v5279_v21  ;;  %v5294_v3 = vcombine.low %v1208_v18, %v1212_v44  ;;  %v5296_v45 = vcombine.low %v1209_v49, %v1213_v51  ;;  %v5303_v13 = vcombine.high %v1216_v59, %v1220_v0  ;;  %v1232_v35 = vld [vmem:[#allocation11 + $0xf50] sm:$0xff]  ;;  %v1233_v48 = vld [vmem:[#allocation11 + $0xf58] sm:$0xff] }
 0x319   :  { %v6022_v9 = vadd.f32 %v4654_v7, %v4640_v24  ;;  %v4663_v11 = vadd.f32 %v4662_v25, %v4647_v40  ;;  %4517 = vmatprep.subr.bf16.mxu1 %v5281_v46  ;;  %v5305_v58 = vcombine.high %v1217_v42, %v1221_v2  ;;  %v5302_v52 = vcombine.low %v1216_v59, %v1220_v0  ;;  %v1236_v30 = vld [vmem:[#allocation11 + $0xf70] sm:$0xff]  ;;  %v1245_v15 = vld [vmem:[#allocation11 + $0xfb8] sm:$0xff] }
 0x31a   :  { %v5304_v54 = vcombine.low %v1217_v42, %v1221_v2  ;;  %v5311_v55 = vcombine.high %v1224_v60, %v1228_v62  ;;  %v5313_v27 = vcombine.high %v1225_v36, %v1229_v37  ;;  %v5310_v38 = vcombine.low %v1224_v60, %v1228_v62  ;;  %v1240_v21 = vld [vmem:[#allocation11 + $0xf90] sm:$0xff]  ;;  %v1249_v19 = vld [vmem:[#allocation11 + $0xfd8] sm:$0xff] }
 0x31b   :  { %v6024_v56 = vadd.f32 %v4663_v11, %v4648_v31  ;;  %4346 = vmatpush1.bf16.msra.mxu0 %v5278_v22  ;;  %v5312_v6 = vcombine.low %v1225_v36, %v1229_v37  ;;  %v5319_v28 = vcombine.high %v1232_v35, %v1236_v30  ;;  %v5321_v41 = vcombine.high %v1233_v48, %v1237_v61  ;;  %v1244_v46 = vld [vmem:[#allocation11 + $0xfb0] sm:$0xff]  ;;  %v1253_v24 = vld [vmem:[#allocation11 + $0xff8] sm:$0xff] }
 0x31c   :  { %4518 = vmatpush1.bf16.msra.mxu1 %v5280_v8  ;;  %4347 = vmatprep.subr.bf16.mxu0 %v5287_v12  ;;  %v5318_v47 = vcombine.low %v1232_v35, %v1236_v30  ;;  %v5320_v16 = vcombine.low %v1233_v48, %v1237_v61  ;;  %v5327_v23 = vcombine.high %v1240_v21, %v1244_v46  ;;  %v1248_v22 = vld [vmem:[#allocation11 + $0xfd0] sm:$0xff]  ;;  %v4562_v11 = vunpack.c.h.bf16 %v5979_v10 }
 0x31d   :  { %4519 = vmatprep.subr.bf16.mxu1 %v5289_v53  ;;  %v5329_v17 = vcombine.high %v1241_v34, %v1245_v15  ;;  %v1252_v50 = vld [vmem:[#allocation11 + $0xff0] sm:$0xff]  ;;  %v5326_v7 = vcombine.low %v1240_v21, %v1244_v46  ;;  %v5328_v40 = vcombine.low %v1241_v34, %v1245_v15  ;;  %v5337_v8 = vcombine.high %v1249_v19, %v1253_v24 }
 0x31e   :  { %v5335_v25 = vcombine.high %v1248_v22, %v1252_v50  ;;  %v5334_v12 = vcombine.low %v1248_v22, %v1252_v50  ;;  %v5336_v31 = vcombine.low %v1249_v19, %v1253_v24  ;;  %v1275_v53 = vrot.slane %v5982_v14, %v5841_v32 }
 0x31f   :  { %4348 = vmatpush1.bf16.msra.mxu0 %v5286_v29  ;;  %v4584_v18 = vrot.slane %v4562_v11, %v5833_v26  ;;  %v1283_v44 = vrot.slane %v5982_v14, %v5886_v4  ;;  %v1279_v49 = vrot.slane %v5982_v14, %v437_v33  ;;  %v4588_v51 = vrot.slane %v4562_v11, %v5856_v39 }
 0x320   :  { %4520 = vmatpush1.bf16.msra.mxu1 %v5288_v43  ;;  %4349 = vmatprep.subr.bf16.mxu0 %v5295_v1  ;;  %v4592_v10 = vrot.slane %v4562_v11, %v5841_v32  ;;  %v4596_v39 = vrot.slane %v4562_v11, %v5886_v4 }
 0x321   :  { %4521 = vmatprep.subr.bf16.mxu1 %v5297_v57  ;;  %v4624_v1 = vrot.slane %v4584_v18, %v5833_v26  ;;  %v4628_v2 = vrot.slane %v4588_v51, %v5833_v26 }
 0x322   :  { %v4632_v32 = vrot.slane %v4592_v10, %v5833_v26  ;;  %v4636_v30 = vrot.slane %v4596_v39, %v5833_v26 }
 0x323   :  { %4350 = vmatpush1.bf16.msra.mxu0 %v5294_v3 }
 0x324   :  { %4522 = vmatpush1.bf16.msra.mxu1 %v5296_v45  ;;  %4351 = vmatprep.subr.bf16.mxu0 %v5303_v13 }
 0x325   :  { %4523 = vmatprep.subr.bf16.mxu1 %v5305_v58 }
 0x327   :  { %4352 = vmatpush1.bf16.msra.mxu0 %v5302_v52 }
 0x328   :  { %4524 = vmatpush1.bf16.msra.mxu1 %v5304_v54  ;;  %4353 = vmatprep.subr.bf16.mxu0 %v5311_v55 }
 0x329   :  { %4525 = vmatprep.subr.bf16.mxu1 %v5313_v27 }
 0x32b   :  { %4354 = vmatpush1.bf16.msra.mxu0 %v5310_v38 }
 0x32c   :  { %4526 = vmatpush1.bf16.msra.mxu1 %v5312_v6  ;;  %4355 = vmatprep.subr.bf16.mxu0 %v5319_v28 }
 0x32d   :  { %4527 = vmatprep.subr.bf16.mxu1 %v5321_v41 }
 0x32f   :  { %4356 = vmatpush1.bf16.msra.mxu0 %v5318_v47 }
 0x330   :  { %4528 = vmatpush1.bf16.msra.mxu1 %v5320_v16  ;;  %4357 = vmatprep.subr.bf16.mxu0 %v5327_v23 }
 0x331   :  { %4529 = vmatprep.subr.bf16.mxu1 %v5329_v17 }
 0x333   :  { %4358 = vmatpush1.bf16.msra.mxu0 %v5326_v7 }
 0x334   :  { %4530 = vmatpush1.bf16.msra.mxu1 %v5328_v40  ;;  %4359 = vmatprep.subr.bf16.mxu0 %v5335_v25 }
 0x335   :  { %4531 = vmatprep.subr.bf16.mxu1 %v5337_v8 }
 0x337   :  { %4360 = vmatpush1.bf16.msra.mxu0 %v5334_v12 }
 0x338   :  { %4532 = vmatpush1.bf16.msra.mxu1 %v5336_v31 }
 0x33a   :  { %4362 = vmatmul.mubr.bf16.vlgmr.msra.gmra.mrb[20].mxu0 %v5951_v63 }
 0x33b   :  { %4534 = vmatmul.mubr.bf16.vlgmr.msra.gmra.mrb[20].mxu1 %v5951_v63  ;;  %v1287_v63 = vrot.slane %v5982_v14, %v445_v5 }
 0x40d   :  { %v4363_v29 = vpop.f32.mrb[20].mxu0 }
 0x40e   :  { %v5347_v43 = vadd.f32 %v4363_v29, %v1275_v53  ;;  %v4535_v57 = vpop.f32.mrb[20].mxu1  ;;  %v4365_v59 = vpop.f32.mrb[21].mxu0 }
 0x40f   :  { %v5351_v0 = vadd.f32 %v4535_v57, %v1283_v44  ;;  %v5348_v42 = vadd.f32 %v4365_v59, %v1279_v49  ;;  %v4537_v3 = vpop.f32.mrb[21].mxu1  ;;  %v4367_v33 = vpop.f32.mrb[22].mxu0 }
 0x410   :  { %v4548_v45 = vmax.f32 %v5347_v43, 0.0  ;;  %v5352_v20 = vadd.f32 %v4537_v3, %v1287_v63  ;;  %v5349_v13 = vadd.f32 %v4367_v33, %v1275_v53  ;;  %v4539_v5 = vpop.f32.mrb[22].mxu1  ;;  %v4369_v14 = vpop.f32.mrb[23].mxu0 }
 0x411   :  { %v4549_v58 = vmax.f32 %v5348_v42, 0.0  ;;  %v5353_v60 = vadd.f32 %v4539_v5, %v1283_v44  ;;  %v5350_v62 = vadd.f32 %v4369_v14, %v1279_v49  ;;  %v4541_v36 = vpop.f32.mrb[23].mxu1  ;;  %v4550_v52 = vmax.f32 %v5351_v0, 0.0 }
 0x412   :  { %v4641_v37 = vmul.f32 %v4624_v1, %v4548_v45  ;;  %v4556_v54 = vmax.f32 %v5349_v13, 0.0  ;;  %v5354_v55 = vadd.f32 %v4541_v36, %v1287_v63  ;;  %v4551_v48 = vmax.f32 %v5352_v20, 0.0 }
 0x413   :  { %v4642_v27 = vmul.f32 %v4628_v2, %v4549_v58  ;;  %v4557_v35 = vmax.f32 %v5350_v62, 0.0  ;;  %v4558_v38 = vmax.f32 %v5353_v60, 0.0  ;;  %v4643_v28 = vmul.f32 %v4632_v32, %v4550_v52 }
 0x414   :  { %v4656_v4 = vadd.f32 %v6022_v9, %v4641_v37  ;;  %v4649_v61 = vmul.f32 %v4624_v1, %v4556_v54  ;;  %v4559_v21 = vmax.f32 %v5354_v55, 0.0  ;;  %v4644_v47 = vmul.f32 %v4636_v30, %v4551_v48  ;;  %v5338_v9 = vld [vmem:[#allocation2] ss:$0 sm:$0xff] }
 0x415   :  { %v4650_v6 = vmul.f32 %v4628_v2, %v4557_v35  ;;  %v4651_v34 = vmul.f32 %v4632_v32, %v4558_v38 }
 0x416   :  { %v4665_v41 = vadd.f32 %v6024_v56, %v4649_v61  ;;  %v4657_v46 = vadd.f32 %v4656_v4, %v4642_v27  ;;  %v4652_v23 = vmul.f32 %v4636_v30, %v4559_v21 }
 0x418   :  { %v4666_v15 = vadd.f32 %v4665_v41, %v4650_v6  ;;  %v4658_v16 = vadd.f32 %v4657_v46, %v4643_v28 }
 0x41a   :  { %v4659_v17 = vadd.f32 %v4658_v16, %v4644_v47  ;;  %v4667_v22 = vadd.f32 %v4666_v15, %v4651_v34 }
 0x41c   :  { %4660 = vadd.xlane.f32.xlu0 %v4659_v17  ;;  %v4668_v26 = vadd.f32 %v4667_v22, %v4652_v23 }
 0x420   :  { %4669 = vadd.xlane.f32.xlu0 %v4668_v26 }
 0x4a9   :  { %v4661_v50 = vpop.xlane.xlu0 %4660 }
 0x4aa   :  { %v4678_v19 = vadd.f32 %v5338_v9, %v4661_v50 }
 0x4ac   :  { %v4680_v24 = vsub.f32 0.0, %v4678_v19  ;;  %v4733_v25 = vsel %vm4696_vm1, %v4678_v19, 0.0 }
 0x4ad   :  { %v4670_v7 = vpop.xlane.xlu0 %4669  ;;  %v4734_v53 = vrot.slane %v4733_v25, 4 }
 0x4ae   :  { %v4682_v40 = vand.u32 2147483647, %v4680_v24  ;;  %v4679_v56 = vadd.f32 %v5338_v9, %v4670_v7  ;;  %v4681_v35 = vmax.f32 %v4680_v24, 0.0 }
 0x4af   :  { %v4735_v49 = vadd.f32 %v4734_v53, %v4733_v25 }
 0x4b0   :  { %v4683_v8 = vsub.f32 0.0, %v4682_v40  ;;  %v4708_v12 = vand.u32 2147483647, %v4679_v56  ;;  %v4741_v31 = vmul.f32 1.442695, %v4679_v56  ;;  %v4707_v6 = vmax.f32 %v4679_v56, 0.0 }
 0x4b1   :  { %v4736_v51 = vrot.slane %v4735_v49, 2 }
 0x4b2   :  { %v4684_v11 = vmul.f32 1.442695, %v4683_v8  ;;  %v4709_v18 = vsub.f32 0.0, %v4708_v12  ;;  %5415 = vpow2.f32 %v4741_v31 }
 0x4b3   :  { %v4737_v43 = vadd.f32 %v4736_v51, %v4735_v49 }
 0x4b4   :  { %5417 = vpow2.f32 %v4684_v11  ;;  %v4710_v44 = vmul.f32 1.442695, %v4709_v18 }
 0x4b5   :  { %v4738_v2 = vrot.slane %v4737_v43, 1 }
 0x4b6   :  { %5419 = vpow2.f32 %v4710_v44 }
 0x4b7   :  { %v4739_v45 = vadd.f32 %v4738_v2, %v4737_v43 }
 0x4b9   :  { %v4740_v58 = vmul.f32 0.125, %v4739_v45 }
 0x4bc   :  { %v5416_v63 = vpop.eup %5415 }
 0x4bd   :  { %v4743_v29 = vsel %vm4696_vm1, %v5416_v63, 0.0 }
 0x4be   :  { %v5418_v10 = vpop.eup %5417  ;;  %v4744_v1 = vrot.slane %v4743_v29, 4 }
 0x4bf   :  { %v4686_v57 = vadd.f32 1.0, %v5418_v10  ;;  %v4689_v33 = vmul.f32 -0.5, %v5418_v10  ;;  %v4692_v32 = vand.u32 2147483647, %v5418_v10 }
 0x4c0   :  { %v5420_v59 = vpop.eup %5419  ;;  %v4745_v0 = vadd.f32 %v4744_v1, %v4743_v29 }
 0x4c1   :  { %5421 = vlog2.f32 %v4686_v57  ;;  %v4712_v42 = vadd.f32 1.0, %v5420_v59  ;;  %v4715_v20 = vmul.f32 -0.5, %v5420_v59  ;;  %v4690_v5 = vadd.f32 1.0, %v4689_v33 }
 0x4c2   :  { %v4746_v3 = vrot.slane %v4745_v0, 2  ;;  %v4718_v37 = vand.u32 2147483647, %v5420_v59  ;;  %vm4693_vm2 = vcmp.lt.f32.partialorder %v4692_v32, 0.0004427343 }
 0x4c3   :  { %5423 = vlog2.f32 %v4712_v42  ;;  %v4716_v60 = vadd.f32 1.0, %v4715_v20  ;;  %v4691_v54 = vmul.f32 %v5418_v10, %v4690_v5 }
 0x4c4   :  { %v4747_v39 = vadd.f32 %v4746_v3, %v4745_v0  ;;  %vm4719_vm4 = vcmp.lt.f32.partialorder %v4718_v37, 0.0004427343 }
 0x4c5   :  { %v4717_v48 = vmul.f32 %v5420_v59, %v4716_v60 }
 0x4c6   :  { %v4748_v13 = vrot.slane %v4747_v39, 1 }
 0x4c8   :  { %v4749_v14 = vadd.f32 %v4748_v13, %v4747_v39 }
 0x4ca   :  { %v4750_v62 = vmul.f32 0.125, %v4749_v14 }
 0x4cb   :  { %v5422_v36 = vpop.eup %5421 }
 0x4cc   :  { %v4688_v52 = vmul.f32 0.6931472, %v5422_v36  ;;  %v4751_v55 = vsub.f32 %v4740_v58, %v4750_v62 }
 0x4cd   :  { %v5424_v27 = vpop.eup %5423 }
 0x4ce   :  { %v4694_v30 = vsel %vm4693_vm2, %v4691_v54, %v4688_v52  ;;  %v4714_v4 = vmul.f32 0.6931472, %v5424_v27  ;;  %v4752_v61 = vadd.f32 1.0, %v4751_v55 }
 0x4cf   :  { %v4695_v38 = vadd.f32 %v4694_v30, %v4681_v35 }
 0x4d0   :  { %v4720_v28 = vsel %vm4719_vm4, %v4717_v48, %v4714_v4  ;;  %4753 = vst.msk [vmem:[#allocation16] sm:$0x1] %vm4731_vm3, %v4752_v61 }
 0x4d1   :  { %v4697_v41 = vsel %vm4696_vm1, %v4695_v38, 0.0  ;;  %v4721_v21 = vadd.f32 %v4720_v28, %v4707_v6 }
 0x4d2   :  { %5590 = shalt.err (!%p5587_p4)
}
 0x4d3   :  { %s5591_s23 = scalar_lea.hbm %s6088_s9, 16 }
 0x4d4   :  { %p5592_p5 = scmp.ne.s32.totalorder %s6088_s9, %s5591_s23  ;;  %p5595_p6 = scmp.lt.u32.totalorder %s5591_s23, %s6088_s9 }
 0x4d6   :  { %p5597_p7 = pnand %p5595_p6, %p5592_p5 }
 0x4d8   :  { %5600 = shalt.err (!%p5597_p7)
}
 0x4d9   :  { %4773 = dma.vmem_to_hbm [thread:$0]  %s4771_s0, 16, %s6088_s9, [#allocation17]   ;;  %v4698_v46 = vrot.slane %v4697_v41, 4  ;;  %v4722_v34 = vsel %vm4696_vm1, %v4721_v21, 0.0 }
 0x4da   :  { %v4723_v47 = vrot.slane %v4722_v34, 4  ;;  %s5646_s30 = smov [#allocation15]  }
 0x4db   :  { %v4699_v15 = vadd.f32 %v4698_v46, %v4697_v41  ;;  %s4760_s10 = sshll.u32 %s5646_s30, 4  ;;  %s4761_s10 = int_to_ptr.vmem [resolvable:$true] %s4760_s10 }
 0x4dc   :  { %v4724_v23 = vadd.f32 %v4723_v47, %v4722_v34  ;;  %s5601_s9 = scalar_lea.vmem %s4761_s10, 16  ;;  %s5605_s5 = scalar_lea.vmem %s4761_s10, 32 }
 0x4dd   :  { %v4700_v16 = vrot.slane %v4699_v15, 2  ;;  %p5602_p8 = scmp.ne.s32.totalorder %s4761_s10, %s5601_s9  ;;  %p5606_p9 = scmp.lt.s32.totalorder %s4761_s10, %s4761_s10 }
 0x4de   :  { %v4725_v17 = vrot.slane %v4724_v23, 2  ;;  %p5607_p10 = scmp.lt.s32.totalorder %s5605_s5, %s5601_s9 }
 0x4df   :  { %v4701_v22 = vadd.f32 %v4700_v16, %v4699_v15 }
 0x4e0   :  { %v4726_v9 = vadd.f32 %v4725_v17, %v4724_v23  ;;  %p5608_p11 = por %p5607_p10, %p5606_p9 }
 0x4e1   :  { %v4702_v26 = vrot.slane %v4701_v22, 1 }
 0x4e2   :  { %v4727_v19 = vrot.slane %v4726_v9, 1  ;;  %p5609_p12 = pnand %p5608_p11, %p5602_p8 }
 0x4e3   :  { %v4703_v50 = vadd.f32 %v4702_v26, %v4701_v22 }
 0x4e4   :  { %v4728_v7 = vadd.f32 %v4727_v19, %v4726_v9 }
 0x4e5   :  { %v4705_v24 = vmul.f32 0.125, %v4703_v50 }
 0x4e6   :  { %v4729_v56 = vmul.f32 0.125, %v4728_v7 }
 0x4e7   :  { %v4706_v40 = vsub.f32 0.0, %v4705_v24 }
 0x4e9   :  { %v4730_v25 = vsub.f32 %v4706_v40, %v4729_v56 }
 0x4eb   :  { %4732 = vst.msk [vmem:[#allocation15] sm:$0x1] %vm4731_vm3, %v4730_v25 }
 0x4ec   :  { %5612 = shalt.err (!%p5609_p12)
}
 0x4ed   :  { %s5613_s11 = scalar_lea.hbm %s6087_s8, 16 }
 0x4ee   :  { %p5614_p13 = scmp.ne.s32.totalorder %s6087_s8, %s5613_s11  ;;  %p5617_p0 = scmp.lt.u32.totalorder %s5613_s11, %s6087_s8 }
 0x4f0   :  { %p5619_p1 = pnand %p5617_p0, %p5614_p13 }
 0x4f2   :  { %5622 = shalt.err (!%p5619_p1)
}
 0x4f3   :  { %4763 = dma.vmem_to_hbm [thread:$0]  %s4761_s10, 16, %s6087_s8, [#allocation5]  }
 0x4f4   :  { %5631 = dma.done.wait [#allocation5], 16  }
 0x4f5   :  { %5632 = vsyncadd [#allocation5], 4294967280 }
 0x4f6   :  { %5633 = dma.done.wait [#allocation17], 16  }
 0x4f7   :  { %5634 = vsyncadd [#allocation17], 4294967280 }
 0x4f8   :  { %4780 = vsyncpa [#allocation4], 1 }
 0x4f9   :  { %4781 = vsyncpa [#allocation7], 1 }
 0x4fa   :  { %4782 = vsyncpa [#allocation10], 1 }
 0x4fb   :  { %4783 = vsyncpa [#allocation13], 1 }
 0x4fc   :  { %4784 = vsyncpa [#allocation5], 1 }
 0x4fd   :  { %4785 = vsyncpa [#allocation17], 1 }

</bundles_post_ra>
